<compile_context>
chip_gen: v6e
topology: v6e:2x2x1
jax: 0.10.0
libtpu: 0.0.40
codegen_flags: <defaults>
</compile_context>

<pallas_src>
import functools

import numpy as np
import jax
import jax.numpy as jnp
from jax.experimental import pallas as pl
from jax.experimental.pallas import tpu as pltpu


RANKS = (20, 50, 500, 10)   # rank == out_features for every layer (torch else-branch)
C1P = 32                    # conv1 out-channels padded 20 -> 32 (bf16 sublane tile multiple)


# ----------------------------------------------------------------------------
# Fused kernel: conv1 -> pool1 -> conv2 -> pool2 -> fc1 + ReLU -> fc2
# Activation layout: (channels, positions), position index = spatial*n + batch
# (channels on sublanes, batch*spatial on lanes -> lane dense).
# ----------------------------------------------------------------------------
def _lenet_fused_kernel(p1_ref, w1_ref, b1_ref, w2_ref, b2_ref, s2_ref,
                        wf1_hbm, bf1_ref, wf2_ref, bf2_ref, out_ref,
                        wf1_vmem, wf1_sem, *, n):
    f32, bf16 = jnp.float32, jnp.bfloat16

    # Start fetching the big fc1 weight (HBM -> VMEM); hidden behind conv work.
    wf1_copy = pltpu.make_async_copy(wf1_hbm, wf1_vmem, wf1_sem)
    wf1_copy.start()

    # ---- conv1: one MXU matmul over wrapper-built, quadrant-ordered patches.
    # p1 column = (q*144 + i*12 + j)*n + b with q = (oh%2)*2 + (ow%2) and
    # (i, j) = (oh//2, ow//2), so the 2x2/2 max-pool is a max of 4 chunks.
    y1 = jnp.dot(w1_ref[...], p1_ref[...],
                 preferred_element_type=f32) + b1_ref[...]            # (32, 576n)
    q = 144 * n
    a1 = jnp.maximum(jnp.maximum(y1[:, 0:q], y1[:, q:2 * q]),
                     jnp.maximum(y1[:, 2 * q:3 * q], y1[:, 3 * q:4 * q]))
    a1 = a1.astype(bf16)                                               # (32, 144n)

    # ---- conv2: in-kernel im2col (25 contiguous lane slices; 32-row pieces
    # keep the sublane concat tile aligned), one MXU matmul, fused 2x2/2 pool.
    lc2 = ((8 - 1) * 12 + 8) * n                                       # wide width 92n
    patches2 = jnp.concatenate(
        [a1[:, (ki * 12 + kj) * n:(ki * 12 + kj) * n + lc2]
         for ki in range(5) for kj in range(5)], axis=0)               # (800, 92n)
    y2 = jnp.dot(w2_ref[...], patches2,
                 preferred_element_type=f32) + b2_ref[...]             # (50, 92n)

    lp2 = (2 * 3 * 12 + 2 * 3) * n + n                                 # 79n
    m2 = jnp.maximum(
        jnp.maximum(y2[:, 0:lp2], y2[:, n:n + lp2]),
        jnp.maximum(y2[:, 12 * n:12 * n + lp2],
                    y2[:, 13 * n:13 * n + lp2]))                       # (50, 79n)
    # tiny 0/1 stride-2 decimation (bf16 selection matrix is exact)
    a2 = jnp.dot(m2.astype(bf16), s2_ref[...],
                 preferred_element_type=f32).astype(bf16)              # (50, 16n)

    # ---- classifier: torch flatten order (c*16 + s) is absorbed into wf1's
    # column layout; here we just stack the 16 spatial positions.
    xf = jnp.concatenate([a2[:, s * n:(s + 1) * n] for s in range(16)],
                         axis=0)                                       # (800, n)
    wf1_copy.wait()                                                    # fc1 weight ready
    h1 = jnp.dot(wf1_vmem[...], xf,
                 preferred_element_type=f32) + bf1_ref[...]            # (500, n)
    h1 = jnp.maximum(h1, 0.0).astype(bf16)                             # fused ReLU
    out_ref[...] = jnp.dot(wf2_ref[...], h1,
                           preferred_element_type=f32) + bf2_ref[...]  # (10, n)


# ----------------------------------------------------------------------------
# Host-side helpers (plain XLA / numpy; parameter-only or tiny glue)
# ----------------------------------------------------------------------------
def _compose_factorized(wA, wB, wC, rank, kdim):
    """Conv2dsp_v2 / Linearsp_v2 weight composition (torch semantics)."""
    A = wA.reshape(rank, -1)
    B = wB.reshape(wC.shape[0], -1)
    eye = jnp.eye(rank, dtype=jnp.float32)
    if rank == kdim:
        w = B @ (A + eye)
    else:  # torch broadcasting requires rank == out_channels here
        w = (B + eye) @ A
    return (w + wC.reshape(wC.shape[0], -1)).reshape(wC.shape)


def _decimation_matrix(wsp, ph, pw, n):
    """0/1 matrix picking pooled positions (2i, 2j) out of the wide pooled slab."""
    src = (2 * (ph - 1) * wsp + 2 * (pw - 1)) * n + n
    dst = ph * pw * n
    s = np.zeros((src, dst), np.float32)
    for i in range(ph):
        for j in range(pw):
            for b in range(n):
                s[(2 * i * wsp + 2 * j) * n + b, (i * pw + j) * n + b] = 1.0
    return jnp.asarray(s, dtype=jnp.bfloat16)   # 0/1 exact in bf16


def _conv1_patches(x, n):
    """Quadrant-ordered im2col for conv1, built in plain XLA (input ~6 KB).

    Column index = ((dh*2 + dw)*144 + i*12 + j)*n + b for output pixel
    (oh, ow) = (2i + dh, 2j + dw): the kernel's fused pool is then an
    elementwise max of 4 contiguous lane chunks (no decimation matrix).
    """
    x2 = x[:, 0]                                                       # (n, 28, 28)
    taps = jnp.stack([x2[:, ki:ki + 24, kj:kj + 24]
                      for ki in range(5) for kj in range(5)], axis=0)  # (25,n,24,24)
    taps = taps.reshape(25, n, 12, 2, 12, 2)                           # (t,b,i,dh,j,dw)
    taps = jnp.transpose(taps, (0, 3, 5, 2, 4, 1))                     # (t,dh,dw,i,j,b)
    return taps.reshape(25, 4 * 144 * n).astype(jnp.bfloat16)


def caffelenet_sp_v2_forward(params, x, ranks=RANKS):
    n = x.shape[0]
    f32, bf16 = jnp.float32, jnp.bfloat16

    # ---- factorized weight composition: parameter-only, plain XLA ----------
    w1 = _compose_factorized(params["c1A"], params["c1B"], params["c1C"], ranks[0], 25)
    w2 = _compose_factorized(params["c2A"], params["c2B"], params["c2C"], ranks[1], 500)
    wf1 = _compose_factorized(params["f1A"], params["f1B"], params["f1C"], ranks[2], 800)
    wf2 = _compose_factorized(params["f2A"], params["f2B"], params["f2C"], ranks[3], 500)

    # ---- weight layouts for the kernel (bf16 for the MXU, biases f32) ------
    # conv1: (32, 25) with zero-padded rows 20..31; column = ki*5 + kj
    w1k = jnp.concatenate([w1.reshape(20, 25),
                           jnp.zeros((C1P - 20, 25), f32)], axis=0).astype(bf16)
    b1k = jnp.concatenate([params["c1b"],
                           jnp.zeros((C1P - 20,), f32)]).reshape(C1P, 1).astype(f32)
    # conv2: (50, 25*32), column = (ki*5 + kj)*32 + c  (c >= 20 is zero)
    w2p = jnp.transpose(w2, (0, 2, 3, 1)).reshape(50, 25, 20)
    w2k = jnp.concatenate([w2p, jnp.zeros((50, 25, C1P - 20), f32)],
                          axis=2).reshape(50, 25 * C1P).astype(bf16)
    b2k = params["c2b"].reshape(50, 1).astype(f32)
    # fc1: column = s*50 + c absorbs the torch (c*16 + s) flatten order
    wf1k = jnp.transpose(wf1.reshape(500, 50, 16), (0, 2, 1)).reshape(500, 800).astype(bf16)
    bf1k = params["f1b"].reshape(500, 1).astype(f32)
    wf2k = wf2.astype(bf16)
    bf2k = params["f2b"].reshape(10, 1).astype(f32)

    # ---- small constant inputs ----------------------------------------------
    p1 = _conv1_patches(x, n)              # (25, 576n) bf16, ~58 KB at n=2
    s2 = _decimation_matrix(12, 4, 4, n)   # (79n, 16n)  bf16, ~10 KB at n=2

    vmem = pltpu.MemorySpace.VMEM
    operands = (p1, w1k, b1k, w2k, b2k, s2, wf1k, bf1k, wf2k, bf2k)
    in_specs = [pl.BlockSpec(memory_space=vmem) for _ in operands]
    in_specs[6] = pl.BlockSpec(memory_space=pl.ANY)   # wf1k stays in HBM; manual DMA

    # NOTE: at this batch everything fits one VMEM-resident block; for large
    # batches the position (lane) axis would be tiled with a grid dimension
    # marked "parallel" (sharding across v7x's 2 TensorCores). Nothing here
    # scales O(n^2) anymore, so per-block VMEM stays bounded.
    out_t = pl.pallas_call(
        functools.partial(_lenet_fused_kernel, n=n),
        out_shape=jax.ShapeDtypeStruct((10, n), f32),
        in_specs=in_specs,
        out_specs=pl.BlockSpec(memory_space=vmem),
        scratch_shapes=[pltpu.VMEM((500, 800), bf16),   # fc1 weight landing buffer
                        pltpu.SemaphoreType.DMA],
    )(*operands)
    return out_t.T  # (N, 10)


# ----------------------------------------------------------------------------
# Parameters & pure-JAX reference (for the correctness check)
# ----------------------------------------------------------------------------
def init_params(key, ranks=RANKS):
    def nrm(k, shape, scale=0.05):
        return scale * jax.random.normal(k, shape, dtype=jnp.float32)

    def uni(k, shape, stdv):
        return jax.random.uniform(k, shape, jnp.float32, -stdv, stdv)

    ks = jax.random.split(key, 16)
    p = {}
    p["c1A"] = nrm(ks[0], (ranks[0], 1, 5, 5))
    p["c1B"] = nrm(ks[1], (20, ranks[0], 1, 1))
    p["c1C"] = nrm(ks[2], (20, 1, 5, 5))
    p["c1b"] = uni(ks[3], (20,), 1.0 / (1 * 5 * 5) ** 0.5)
    p["c2A"] = nrm(ks[4], (ranks[1], 20, 5, 5))
    p["c2B"] = nrm(ks[5], (50, ranks[1], 1, 1))
    p["c2C"] = nrm(ks[6], (50, 20, 5, 5))
    p["c2b"] = uni(ks[7], (50,), 1.0 / (20 * 5 * 5) ** 0.5)
    p["f1A"] = nrm(ks[8], (ranks[2], 800))
    p["f1B"] = nrm(ks[9], (500, ranks[2]))
    p["f1C"] = nrm(ks[10], (500, 800))
    p["f1b"] = uni(ks[11], (500,), 1.0 / 800 ** 0.5)
    p["f2A"] = nrm(ks[12], (ranks[3], 500))
    p["f2B"] = nrm(ks[13], (10, ranks[3]))
    p["f2C"] = nrm(ks[14], (10, 500))
    p["f2b"] = uni(ks[15], (10,), 1.0 / 500 ** 0.5)
    return p


def _ref_forward(params, x, ranks=RANKS):
    w1 = _compose_factorized(params["c1A"], params["c1B"], params["c1C"], ranks[0], 25)
    w2 = _compose_factorized(params["c2A"], params["c2B"], params["c2C"], ranks[1], 500)
    wf1 = _compose_factorized(params["f1A"], params["f1B"], params["f1C"], ranks[2], 800)
    wf2 = _compose_factorized(params["f2A"], params["f2B"], params["f2C"], ranks[3], 500)

    def conv(h, w, b):
        y = jax.lax.conv_general_dilated(
            h, w, (1, 1), "VALID", dimension_numbers=("NCHW", "OIHW", "NCHW"))
        return y + b[None, :, None, None]

    def pool(h):
        N, C, H, W = h.shape
        return h.reshape(N, C, H // 2, 2, W // 2, 2).max(axis=(3, 5))

    h = pool(conv(x, w1, params["c1b"]))          # (N, 20, 12, 12)
    h = pool(conv(h, w2, params["c2b"]))          # (N, 50, 4, 4)
    h = h.reshape(h.shape[0], -1)                 # NCHW flatten == torch .view
    h = jnp.maximum(h @ wf1.T + params["f1b"], 0.0)
    return h @ wf2.T + params["f2b"]


# ----------------------------------------------------------------------------
if __name__ == "__main__":
    key = jax.random.PRNGKey(0)
    pkey, xkey = jax.random.split(key)
    params = init_params(pkey, RANKS)
    x = jax.random.normal(xkey, (2, 1, 28, 28), dtype=jnp.float32)  # LeNet input

    fwd = jax.jit(caffelenet_sp_v2_forward)
    out = jax.block_until_ready(fwd(params, x))
    ref = jax.block_until_ready(_ref_forward(params, x))

    assert out.shape == (2, 10), out.shape
    # Kernel uses bf16 weights / bf16 MXU inputs with f32 accumulation vs. an
    # f32 reference; tolerance is sized for bf16 (~2^-8 relative) rounding.
    max_diff = float(jnp.max(jnp.abs(out - ref)))
    assert jnp.allclose(out, ref, rtol=5e-2, atol=5e-2), f"max abs diff {max_diff}"
    print("KERNEL_OK")
</pallas_src>

<mosaic_0001>
module attributes {stable_mosaic.version = 11 : i64} {
  func.func @_lenet_fused_kernel(%arg0: memref<25x1152xbf16, #tpu.memory_space<vmem>>, %arg1: memref<32x25xbf16, #tpu.memory_space<vmem>>, %arg2: memref<32x1xf32, #tpu.memory_space<vmem>>, %arg3: memref<50x800xbf16, #tpu.memory_space<vmem>>, %arg4: memref<50x1xf32, #tpu.memory_space<vmem>>, %arg5: memref<158x32xbf16, #tpu.memory_space<vmem>>, %arg6: memref<500x800xbf16, #tpu.memory_space<any>>, %arg7: memref<500x1xf32, #tpu.memory_space<vmem>>, %arg8: memref<10x500xbf16, #tpu.memory_space<vmem>>, %arg9: memref<10x1xf32, #tpu.memory_space<vmem>>, %arg10: memref<10x2xf32, #tpu.memory_space<vmem>>, %arg11: memref<500x800xbf16, #tpu.memory_space<vmem>>, %arg12: memref<!tpu.dma_semaphore, #tpu.memory_space<semaphore_mem>>) attributes {dimension_semantics = [], scalar_prefetch = 0 : i64, scratch_operands = 2 : i64, tpu.core_type = #tpu.core_type<tc>} {
    tpu.enqueue_dma source(%arg6 : memref<500x800xbf16, #tpu.memory_space<any>>) target(%arg11 : memref<500x800xbf16, #tpu.memory_space<vmem>>) target_semaphore(%arg12 : memref<!tpu.dma_semaphore, #tpu.memory_space<semaphore_mem>>)
    %c0 = arith.constant 0 : index
    %c0_0 = arith.constant 0 : index
    %0 = vector.load %arg1[%c0, %c0_0] : memref<32x25xbf16, #tpu.memory_space<vmem>>, vector<32x25xbf16>
    %c0_1 = arith.constant 0 : index
    %c0_2 = arith.constant 0 : index
    %1 = vector.load %arg0[%c0_1, %c0_2] : memref<25x1152xbf16, #tpu.memory_space<vmem>>, vector<25x1152xbf16>
    %cst = arith.constant dense<0.000000e+00> : vector<32x1152xf32>
    %2 = tpu.matmul %0, %1, %cst {dimension_numbers = #tpu.dot_dimension_numbers<[1], [0], [0], [1], [0, 0, 1, 1], [], []>} : vector<32x25xbf16>, vector<25x1152xbf16>, vector<32x1152xf32> -> vector<32x1152xf32>
    %c0_3 = arith.constant 0 : index
    %c0_4 = arith.constant 0 : index
    %3 = vector.load %arg2[%c0_3, %c0_4] : memref<32x1xf32, #tpu.memory_space<vmem>>, vector<32x1xf32>
    %4 = vector.broadcast %3 : vector<32x1xf32> to vector<32x1152xf32>
    %5 = arith.addf %2, %4 : vector<32x1152xf32>
    %6 = vector.extract_strided_slice %5 {offsets = [0, 0], sizes = [32, 288], strides = [1, 1]} : vector<32x1152xf32> to vector<32x288xf32>
    %7 = vector.extract_strided_slice %5 {offsets = [0, 288], sizes = [32, 288], strides = [1, 1]} : vector<32x1152xf32> to vector<32x288xf32>
    %8 = arith.maximumf %6, %7 : vector<32x288xf32>
    %9 = vector.extract_strided_slice %5 {offsets = [0, 576], sizes = [32, 288], strides = [1, 1]} : vector<32x1152xf32> to vector<32x288xf32>
    %10 = vector.extract_strided_slice %5 {offsets = [0, 864], sizes = [32, 288], strides = [1, 1]} : vector<32x1152xf32> to vector<32x288xf32>
    %11 = arith.maximumf %9, %10 : vector<32x288xf32>
    %12 = arith.maximumf %8, %11 : vector<32x288xf32>
    %13 = arith.truncf %12 : vector<32x288xf32> to vector<32x288xbf16>
    %14 = vector.extract_strided_slice %13 {offsets = [0, 0], sizes = [32, 184], strides = [1, 1]} : vector<32x288xbf16> to vector<32x184xbf16>
    %15 = vector.extract_strided_slice %13 {offsets = [0, 2], sizes = [32, 184], strides = [1, 1]} : vector<32x288xbf16> to vector<32x184xbf16>
    %16 = vector.extract_strided_slice %13 {offsets = [0, 4], sizes = [32, 184], strides = [1, 1]} : vector<32x288xbf16> to vector<32x184xbf16>
    %17 = vector.extract_strided_slice %13 {offsets = [0, 6], sizes = [32, 184], strides = [1, 1]} : vector<32x288xbf16> to vector<32x184xbf16>
    %18 = vector.extract_strided_slice %13 {offsets = [0, 8], sizes = [32, 184], strides = [1, 1]} : vector<32x288xbf16> to vector<32x184xbf16>
    %19 = vector.extract_strided_slice %13 {offsets = [0, 24], sizes = [32, 184], strides = [1, 1]} : vector<32x288xbf16> to vector<32x184xbf16>
    %20 = vector.extract_strided_slice %13 {offsets = [0, 26], sizes = [32, 184], strides = [1, 1]} : vector<32x288xbf16> to vector<32x184xbf16>
    %21 = vector.extract_strided_slice %13 {offsets = [0, 28], sizes = [32, 184], strides = [1, 1]} : vector<32x288xbf16> to vector<32x184xbf16>
    %22 = vector.extract_strided_slice %13 {offsets = [0, 30], sizes = [32, 184], strides = [1, 1]} : vector<32x288xbf16> to vector<32x184xbf16>
    %23 = vector.extract_strided_slice %13 {offsets = [0, 32], sizes = [32, 184], strides = [1, 1]} : vector<32x288xbf16> to vector<32x184xbf16>
    %24 = vector.extract_strided_slice %13 {offsets = [0, 48], sizes = [32, 184], strides = [1, 1]} : vector<32x288xbf16> to vector<32x184xbf16>
    %25 = vector.extract_strided_slice %13 {offsets = [0, 50], sizes = [32, 184], strides = [1, 1]} : vector<32x288xbf16> to vector<32x184xbf16>
    %26 = vector.extract_strided_slice %13 {offsets = [0, 52], sizes = [32, 184], strides = [1, 1]} : vector<32x288xbf16> to vector<32x184xbf16>
    %27 = vector.extract_strided_slice %13 {offsets = [0, 54], sizes = [32, 184], strides = [1, 1]} : vector<32x288xbf16> to vector<32x184xbf16>
    %28 = vector.extract_strided_slice %13 {offsets = [0, 56], sizes = [32, 184], strides = [1, 1]} : vector<32x288xbf16> to vector<32x184xbf16>
    %29 = vector.extract_strided_slice %13 {offsets = [0, 72], sizes = [32, 184], strides = [1, 1]} : vector<32x288xbf16> to vector<32x184xbf16>
    %30 = vector.extract_strided_slice %13 {offsets = [0, 74], sizes = [32, 184], strides = [1, 1]} : vector<32x288xbf16> to vector<32x184xbf16>
    %31 = vector.extract_strided_slice %13 {offsets = [0, 76], sizes = [32, 184], strides = [1, 1]} : vector<32x288xbf16> to vector<32x184xbf16>
    %32 = vector.extract_strided_slice %13 {offsets = [0, 78], sizes = [32, 184], strides = [1, 1]} : vector<32x288xbf16> to vector<32x184xbf16>
    %33 = vector.extract_strided_slice %13 {offsets = [0, 80], sizes = [32, 184], strides = [1, 1]} : vector<32x288xbf16> to vector<32x184xbf16>
    %34 = vector.extract_strided_slice %13 {offsets = [0, 96], sizes = [32, 184], strides = [1, 1]} : vector<32x288xbf16> to vector<32x184xbf16>
    %35 = vector.extract_strided_slice %13 {offsets = [0, 98], sizes = [32, 184], strides = [1, 1]} : vector<32x288xbf16> to vector<32x184xbf16>
    %36 = vector.extract_strided_slice %13 {offsets = [0, 100], sizes = [32, 184], strides = [1, 1]} : vector<32x288xbf16> to vector<32x184xbf16>
    %37 = vector.extract_strided_slice %13 {offsets = [0, 102], sizes = [32, 184], strides = [1, 1]} : vector<32x288xbf16> to vector<32x184xbf16>
    %38 = vector.extract_strided_slice %13 {offsets = [0, 104], sizes = [32, 184], strides = [1, 1]} : vector<32x288xbf16> to vector<32x184xbf16>
    %39 = tpu.concatenate %14, %15, %16, %17, %18, %19, %20, %21, %22, %23, %24, %25, %26, %27, %28, %29 in 0 : vector<32x184xbf16>, vector<32x184xbf16>, vector<32x184xbf16>, vector<32x184xbf16>, vector<32x184xbf16>, vector<32x184xbf16>, vector<32x184xbf16>, vector<32x184xbf16>, vector<32x184xbf16>, vector<32x184xbf16>, vector<32x184xbf16>, vector<32x184xbf16>, vector<32x184xbf16>, vector<32x184xbf16>, vector<32x184xbf16>, vector<32x184xbf16> -> vector<512x184xbf16>
    %40 = tpu.concatenate %30, %31, %32, %33, %34, %35, %36, %37, %38 in 0 : vector<32x184xbf16>, vector<32x184xbf16>, vector<32x184xbf16>, vector<32x184xbf16>, vector<32x184xbf16>, vector<32x184xbf16>, vector<32x184xbf16>, vector<32x184xbf16>, vector<32x184xbf16> -> vector<288x184xbf16>
    %41 = tpu.concatenate %39, %40 in 0 : vector<512x184xbf16>, vector<288x184xbf16> -> vector<800x184xbf16>
    %c0_5 = arith.constant 0 : index
    %c0_6 = arith.constant 0 : index
    %42 = vector.load %arg3[%c0_5, %c0_6] : memref<50x800xbf16, #tpu.memory_space<vmem>>, vector<50x800xbf16>
    %cst_7 = arith.constant dense<0.000000e+00> : vector<50x184xf32>
    %43 = tpu.matmul %42, %41, %cst_7 {dimension_numbers = #tpu.dot_dimension_numbers<[1], [0], [0], [1], [0, 0, 1, 1], [], []>} : vector<50x800xbf16>, vector<800x184xbf16>, vector<50x184xf32> -> vector<50x184xf32>
    %c0_8 = arith.constant 0 : index
    %c0_9 = arith.constant 0 : index
    %44 = vector.load %arg4[%c0_8, %c0_9] : memref<50x1xf32, #tpu.memory_space<vmem>>, vector<50x1xf32>
    %45 = vector.broadcast %44 : vector<50x1xf32> to vector<50x184xf32>
    %46 = arith.addf %43, %45 : vector<50x184xf32>
    %47 = vector.extract_strided_slice %46 {offsets = [0, 0], sizes = [50, 158], strides = [1, 1]} : vector<50x184xf32> to vector<50x158xf32>
    %48 = vector.extract_strided_slice %46 {offsets = [0, 2], sizes = [50, 158], strides = [1, 1]} : vector<50x184xf32> to vector<50x158xf32>
    %49 = arith.maximumf %47, %48 : vector<50x158xf32>
    %50 = vector.extract_strided_slice %46 {offsets = [0, 24], sizes = [50, 158], strides = [1, 1]} : vector<50x184xf32> to vector<50x158xf32>
    %51 = vector.extract_strided_slice %46 {offsets = [0, 26], sizes = [50, 158], strides = [1, 1]} : vector<50x184xf32> to vector<50x158xf32>
    %52 = arith.maximumf %50, %51 : vector<50x158xf32>
    %53 = arith.maximumf %49, %52 : vector<50x158xf32>
    %54 = arith.truncf %53 : vector<50x158xf32> to vector<50x158xbf16>
    %c0_10 = arith.constant 0 : index
    %c0_11 = arith.constant 0 : index
    %55 = vector.load %arg5[%c0_10, %c0_11] : memref<158x32xbf16, #tpu.memory_space<vmem>>, vector<158x32xbf16>
    %cst_12 = arith.constant dense<0.000000e+00> : vector<50x32xf32>
    %56 = tpu.matmul %54, %55, %cst_12 {dimension_numbers = #tpu.dot_dimension_numbers<[1], [0], [0], [1], [0, 0, 1, 1], [], []>} : vector<50x158xbf16>, vector<158x32xbf16>, vector<50x32xf32> -> vector<50x32xf32>
    %57 = arith.truncf %56 : vector<50x32xf32> to vector<50x32xbf16>
    %58 = vector.extract_strided_slice %57 {offsets = [0, 0], sizes = [50, 2], strides = [1, 1]} : vector<50x32xbf16> to vector<50x2xbf16>
    %59 = vector.extract_strided_slice %57 {offsets = [0, 2], sizes = [50, 2], strides = [1, 1]} : vector<50x32xbf16> to vector<50x2xbf16>
    %60 = vector.extract_strided_slice %57 {offsets = [0, 4], sizes = [50, 2], strides = [1, 1]} : vector<50x32xbf16> to vector<50x2xbf16>
    %61 = vector.extract_strided_slice %57 {offsets = [0, 6], sizes = [50, 2], strides = [1, 1]} : vector<50x32xbf16> to vector<50x2xbf16>
    %62 = vector.extract_strided_slice %57 {offsets = [0, 8], sizes = [50, 2], strides = [1, 1]} : vector<50x32xbf16> to vector<50x2xbf16>
    %63 = vector.extract_strided_slice %57 {offsets = [0, 10], sizes = [50, 2], strides = [1, 1]} : vector<50x32xbf16> to vector<50x2xbf16>
    %64 = vector.extract_strided_slice %57 {offsets = [0, 12], sizes = [50, 2], strides = [1, 1]} : vector<50x32xbf16> to vector<50x2xbf16>
    %65 = vector.extract_strided_slice %57 {offsets = [0, 14], sizes = [50, 2], strides = [1, 1]} : vector<50x32xbf16> to vector<50x2xbf16>
    %66 = vector.extract_strided_slice %57 {offsets = [0, 16], sizes = [50, 2], strides = [1, 1]} : vector<50x32xbf16> to vector<50x2xbf16>
    %67 = vector.extract_strided_slice %57 {offsets = [0, 18], sizes = [50, 2], strides = [1, 1]} : vector<50x32xbf16> to vector<50x2xbf16>
    %68 = vector.extract_strided_slice %57 {offsets = [0, 20], sizes = [50, 2], strides = [1, 1]} : vector<50x32xbf16> to vector<50x2xbf16>
    %69 = vector.extract_strided_slice %57 {offsets = [0, 22], sizes = [50, 2], strides = [1, 1]} : vector<50x32xbf16> to vector<50x2xbf16>
    %70 = vector.extract_strided_slice %57 {offsets = [0, 24], sizes = [50, 2], strides = [1, 1]} : vector<50x32xbf16> to vector<50x2xbf16>
    %71 = vector.extract_strided_slice %57 {offsets = [0, 26], sizes = [50, 2], strides = [1, 1]} : vector<50x32xbf16> to vector<50x2xbf16>
    %72 = vector.extract_strided_slice %57 {offsets = [0, 28], sizes = [50, 2], strides = [1, 1]} : vector<50x32xbf16> to vector<50x2xbf16>
    %73 = vector.extract_strided_slice %57 {offsets = [0, 30], sizes = [50, 2], strides = [1, 1]} : vector<50x32xbf16> to vector<50x2xbf16>
    %74 = tpu.concatenate %58, %59, %60, %61, %62, %63, %64, %65, %66, %67, %68, %69, %70, %71, %72, %73 in 0 : vector<50x2xbf16>, vector<50x2xbf16>, vector<50x2xbf16>, vector<50x2xbf16>, vector<50x2xbf16>, vector<50x2xbf16>, vector<50x2xbf16>, vector<50x2xbf16>, vector<50x2xbf16>, vector<50x2xbf16>, vector<50x2xbf16>, vector<50x2xbf16>, vector<50x2xbf16>, vector<50x2xbf16>, vector<50x2xbf16>, vector<50x2xbf16> -> vector<800x2xbf16>
    tpu.wait_dma2 semaphore(%arg12 : memref<!tpu.dma_semaphore, #tpu.memory_space<semaphore_mem>>) src(%arg6 : memref<500x800xbf16, #tpu.memory_space<any>>) dst(%arg11 : memref<500x800xbf16, #tpu.memory_space<vmem>>)
    %c0_13 = arith.constant 0 : index
    %c0_14 = arith.constant 0 : index
    %75 = vector.load %arg11[%c0_13, %c0_14] : memref<500x800xbf16, #tpu.memory_space<vmem>>, vector<500x800xbf16>
    %cst_15 = arith.constant dense<0.000000e+00> : vector<500x2xf32>
    %76 = tpu.matmul %75, %74, %cst_15 {dimension_numbers = #tpu.dot_dimension_numbers<[1], [0], [0], [1], [0, 0, 1, 1], [], []>} : vector<500x800xbf16>, vector<800x2xbf16>, vector<500x2xf32> -> vector<500x2xf32>
    %c0_16 = arith.constant 0 : index
    %c0_17 = arith.constant 0 : index
    %77 = vector.load %arg7[%c0_16, %c0_17] : memref<500x1xf32, #tpu.memory_space<vmem>>, vector<500x1xf32>
    %78 = vector.broadcast %77 : vector<500x1xf32> to vector<500x2xf32>
    %79 = arith.addf %76, %78 : vector<500x2xf32>
    %cst_18 = arith.constant 0.000000e+00 : f32
    %80 = vector.broadcast %cst_18 : f32 to vector<500x2xf32>
    %81 = arith.maximumf %79, %80 : vector<500x2xf32>
    %82 = arith.truncf %81 : vector<500x2xf32> to vector<500x2xbf16>
    %c0_19 = arith.constant 0 : index
    %c0_20 = arith.constant 0 : index
    %83 = vector.load %arg8[%c0_19, %c0_20] : memref<10x500xbf16, #tpu.memory_space<vmem>>, vector<10x500xbf16>
    %cst_21 = arith.constant dense<0.000000e+00> : vector<10x2xf32>
    %84 = tpu.matmul %83, %82, %cst_21 {dimension_numbers = #tpu.dot_dimension_numbers<[1], [0], [0], [1], [0, 0, 1, 1], [], []>} : vector<10x500xbf16>, vector<500x2xbf16>, vector<10x2xf32> -> vector<10x2xf32>
    %c0_22 = arith.constant 0 : index
    %c0_23 = arith.constant 0 : index
    %85 = vector.load %arg9[%c0_22, %c0_23] : memref<10x1xf32, #tpu.memory_space<vmem>>, vector<10x1xf32>
    %86 = vector.broadcast %85 : vector<10x1xf32> to vector<10x2xf32>
    %87 = arith.addf %84, %86 : vector<10x2xf32>
    %c0_24 = arith.constant 0 : index
    %c0_25 = arith.constant 0 : index
    %88 = vector.load %arg10[%c0_24, %c0_25] : memref<10x2xf32, #tpu.memory_space<vmem>>, vector<10x2xf32>
    tpu.vector_store %arg10[%c0_24, %c0_25], %87 {strides = array<i32>} : memref<10x2xf32, #tpu.memory_space<vmem>>, vector<10x2xf32>,
    return
  }
}

</mosaic_0001>

<bundles_post_ra>
// kernel: caffelenet_sp_v2_forward.1
= control target key start
LH: loop header
LB: loop body
LE: loop exit
PB: predicated region body
PF: predicated region fallthrough
CT: control target
= control target key end

     0   :  { %s10081_s0 = inlined_call_operand.vmem [shape: bf16[25,1152], index: 0, kind: input, shape index: {}]   ;;  %s10082_s1 = inlined_call_operand.vmem [shape: bf16[32,25], index: 1, kind: input, shape index: {}]   ;;  %s10083_s2 = inlined_call_operand.vmem [shape: f32[32,1], index: 2, kind: input, shape index: {}]   ;;  %s10084_s3 = inlined_call_operand.vmem [shape: bf16[50,800], index: 3, kind: input, shape index: {}]   ;;  %s10085_s4 = inlined_call_operand.vmem [shape: f32[50,1], index: 4, kind: input, shape index: {}]   ;;  %s10086_s5 = inlined_call_operand.vmem [shape: bf16[158,32], index: 5, kind: input, shape index: {}]   ;;  %s10087_s6 = inlined_call_operand.vmem [shape: bf16[500,800], index: 6, kind: input, shape index: {}]   ;;  %s10088_s7 = inlined_call_operand.vmem [shape: f32[500,1], index: 7, kind: input, shape index: {}]   ;;  %s10089_s8 = inlined_call_operand.vmem [shape: bf16[10,500], index: 8, kind: input, shape index: {}]   ;;  %s10090_s9 = inlined_call_operand.vmem [shape: f32[10,1], index: 9, kind: input, shape index: {}]   ;;  %s10091_s10 = inlined_call_operand.vmem [shape: f32[10,2], index: 10, kind: output, shape index: {}]  }
   0x1   :  { %v72_v0 = vld [vmem:[%s10087_s6] sm:$0xff]  ;;  %v74_v1 = vld [vmem:[%s10087_s6 + $0x8] sm:$0xff]  ;;  %v76_v2 = vld [vmem:[%s10087_s6 + $0x10] sm:$0xff] }
   0x2   :  { %73 = vst [vmem:[#allocation2] sm:$0xff] %v72_v0  ;;  %75 = vst [vmem:[#allocation2 + $0x8] sm:$0xff] %v74_v1  ;;  %v78_v3 = vld [vmem:[%s10087_s6 + $0x18] sm:$0xff]  ;;  %v80_v4 = vld [vmem:[%s10087_s6 + $0x20] sm:$0xff] }
   0x3   :  { %77 = vst [vmem:[#allocation2 + $0x10] sm:$0xff] %v76_v2  ;;  %v82_v5 = vld [vmem:[%s10087_s6 + $0x28] sm:$0xff]  ;;  %79 = vst [vmem:[#allocation2 + $0x18] sm:$0xff] %v78_v3  ;;  %v84_v6 = vld [vmem:[%s10087_s6 + $0x30] sm:$0xff] }
   0x4   :  { %81 = vst [vmem:[#allocation2 + $0x20] sm:$0xff] %v80_v4  ;;  %83 = vst [vmem:[#allocation2 + $0x28] sm:$0xff] %v82_v5  ;;  %v86_v7 = vld [vmem:[%s10087_s6 + $0x38] sm:$0xff]  ;;  %v88_v8 = vld [vmem:[%s10087_s6 + $0x40] sm:$0xff] }
   0x5   :  { %85 = vst [vmem:[#allocation2 + $0x30] sm:$0xff] %v84_v6  ;;  %87 = vst [vmem:[#allocation2 + $0x38] sm:$0xff] %v86_v7  ;;  %v90_v9 = vld [vmem:[%s10087_s6 + $0x48] sm:$0xff]  ;;  %v92_v10 = vld [vmem:[%s10087_s6 + $0x50] sm:$0xff] }
   0x6   :  { %89 = vst [vmem:[#allocation2 + $0x40] sm:$0xff] %v88_v8  ;;  %v94_v11 = vld [vmem:[%s10087_s6 + $0x58] sm:$0xff]  ;;  %91 = vst [vmem:[#allocation2 + $0x48] sm:$0xff] %v90_v9  ;;  %v96_v12 = vld [vmem:[%s10087_s6 + $0x60] sm:$0xff] }
   0x7   :  { %93 = vst [vmem:[#allocation2 + $0x50] sm:$0xff] %v92_v10  ;;  %95 = vst [vmem:[#allocation2 + $0x58] sm:$0xff] %v94_v11  ;;  %v98_v13 = vld [vmem:[%s10087_s6 + $0x68] sm:$0xff]  ;;  %v100_v14 = vld [vmem:[%s10087_s6 + $0x70] sm:$0xff] }
   0x8   :  { %97 = vst [vmem:[#allocation2 + $0x60] sm:$0xff] %v96_v12  ;;  %99 = vst [vmem:[#allocation2 + $0x68] sm:$0xff] %v98_v13  ;;  %v102_v15 = vld [vmem:[%s10087_s6 + $0x78] sm:$0xff]  ;;  %v104_v16 = vld [vmem:[%s10087_s6 + $0x80] sm:$0xff] }
   0x9   :  { %101 = vst [vmem:[#allocation2 + $0x70] sm:$0xff] %v100_v14  ;;  %v106_v17 = vld [vmem:[%s10087_s6 + $0x88] sm:$0xff]  ;;  %103 = vst [vmem:[#allocation2 + $0x78] sm:$0xff] %v102_v15  ;;  %v108_v18 = vld [vmem:[%s10087_s6 + $0x90] sm:$0xff] }
   0xa   :  { %105 = vst [vmem:[#allocation2 + $0x80] sm:$0xff] %v104_v16  ;;  %107 = vst [vmem:[#allocation2 + $0x88] sm:$0xff] %v106_v17  ;;  %v110_v19 = vld [vmem:[%s10087_s6 + $0x98] sm:$0xff]  ;;  %v112_v20 = vld [vmem:[%s10087_s6 + $0xa0] sm:$0xff] }
   0xb   :  { %109 = vst [vmem:[#allocation2 + $0x90] sm:$0xff] %v108_v18  ;;  %111 = vst [vmem:[#allocation2 + $0x98] sm:$0xff] %v110_v19  ;;  %v114_v21 = vld [vmem:[%s10087_s6 + $0xa8] sm:$0xff]  ;;  %v116_v22 = vld [vmem:[%s10087_s6 + $0xb0] sm:$0xff] }
   0xc   :  { %113 = vst [vmem:[#allocation2 + $0xa0] sm:$0xff] %v112_v20  ;;  %v118_v23 = vld [vmem:[%s10087_s6 + $0xb8] sm:$0xff]  ;;  %115 = vst [vmem:[#allocation2 + $0xa8] sm:$0xff] %v114_v21  ;;  %v120_v24 = vld [vmem:[%s10087_s6 + $0xc0] sm:$0xff] }
   0xd   :  { %117 = vst [vmem:[#allocation2 + $0xb0] sm:$0xff] %v116_v22  ;;  %119 = vst [vmem:[#allocation2 + $0xb8] sm:$0xff] %v118_v23  ;;  %v122_v25 = vld [vmem:[%s10087_s6 + $0xc8] sm:$0xff]  ;;  %v124_v26 = vld [vmem:[%s10087_s6 + $0xd0] sm:$0xff] }
   0xe   :  { %121 = vst [vmem:[#allocation2 + $0xc0] sm:$0xff] %v120_v24  ;;  %123 = vst [vmem:[#allocation2 + $0xc8] sm:$0xff] %v122_v25  ;;  %v126_v27 = vld [vmem:[%s10087_s6 + $0xd8] sm:$0xff]  ;;  %v128_v28 = vld [vmem:[%s10087_s6 + $0xe0] sm:$0xff] }
   0xf   :  { %125 = vst [vmem:[#allocation2 + $0xd0] sm:$0xff] %v124_v26  ;;  %v130_v29 = vld [vmem:[%s10087_s6 + $0xe8] sm:$0xff]  ;;  %127 = vst [vmem:[#allocation2 + $0xd8] sm:$0xff] %v126_v27  ;;  %v132_v30 = vld [vmem:[%s10087_s6 + $0xf0] sm:$0xff] }
  0x10   :  { %129 = vst [vmem:[#allocation2 + $0xe0] sm:$0xff] %v128_v28  ;;  %131 = vst [vmem:[#allocation2 + $0xe8] sm:$0xff] %v130_v29  ;;  %v134_v31 = vld [vmem:[%s10087_s6 + $0xf8] sm:$0xff]  ;;  %v136_v32 = vld [vmem:[%s10087_s6 + $0x100] sm:$0xff] }
  0x11   :  { %133 = vst [vmem:[#allocation2 + $0xf0] sm:$0xff] %v132_v30  ;;  %135 = vst [vmem:[#allocation2 + $0xf8] sm:$0xff] %v134_v31  ;;  %v138_v33 = vld [vmem:[%s10087_s6 + $0x108] sm:$0xff]  ;;  %v140_v34 = vld [vmem:[%s10087_s6 + $0x110] sm:$0xff] }
  0x12   :  { %137 = vst [vmem:[#allocation2 + $0x100] sm:$0xff] %v136_v32  ;;  %v142_v35 = vld [vmem:[%s10087_s6 + $0x118] sm:$0xff]  ;;  %139 = vst [vmem:[#allocation2 + $0x108] sm:$0xff] %v138_v33  ;;  %v144_v36 = vld [vmem:[%s10087_s6 + $0x120] sm:$0xff] }
  0x13   :  { %141 = vst [vmem:[#allocation2 + $0x110] sm:$0xff] %v140_v34  ;;  %143 = vst [vmem:[#allocation2 + $0x118] sm:$0xff] %v142_v35  ;;  %v146_v37 = vld [vmem:[%s10087_s6 + $0x128] sm:$0xff]  ;;  %v148_v38 = vld [vmem:[%s10087_s6 + $0x130] sm:$0xff] }
  0x14   :  { %145 = vst [vmem:[#allocation2 + $0x120] sm:$0xff] %v144_v36  ;;  %147 = vst [vmem:[#allocation2 + $0x128] sm:$0xff] %v146_v37  ;;  %v150_v39 = vld [vmem:[%s10087_s6 + $0x138] sm:$0xff]  ;;  %v152_v40 = vld [vmem:[%s10087_s6 + $0x140] sm:$0xff] }
  0x15   :  { %149 = vst [vmem:[#allocation2 + $0x130] sm:$0xff] %v148_v38  ;;  %v154_v41 = vld [vmem:[%s10087_s6 + $0x148] sm:$0xff]  ;;  %151 = vst [vmem:[#allocation2 + $0x138] sm:$0xff] %v150_v39  ;;  %v156_v42 = vld [vmem:[%s10087_s6 + $0x150] sm:$0xff] }
  0x16   :  { %153 = vst [vmem:[#allocation2 + $0x140] sm:$0xff] %v152_v40  ;;  %155 = vst [vmem:[#allocation2 + $0x148] sm:$0xff] %v154_v41  ;;  %v158_v43 = vld [vmem:[%s10087_s6 + $0x158] sm:$0xff]  ;;  %v160_v44 = vld [vmem:[%s10087_s6 + $0x160] sm:$0xff] }
  0x17   :  { %157 = vst [vmem:[#allocation2 + $0x150] sm:$0xff] %v156_v42  ;;  %159 = vst [vmem:[#allocation2 + $0x158] sm:$0xff] %v158_v43  ;;  %v162_v45 = vld [vmem:[%s10087_s6 + $0x168] sm:$0xff]  ;;  %v164_v46 = vld [vmem:[%s10087_s6 + $0x170] sm:$0xff] }
  0x18   :  { %161 = vst [vmem:[#allocation2 + $0x160] sm:$0xff] %v160_v44  ;;  %v166_v47 = vld [vmem:[%s10087_s6 + $0x178] sm:$0xff]  ;;  %163 = vst [vmem:[#allocation2 + $0x168] sm:$0xff] %v162_v45  ;;  %v168_v48 = vld [vmem:[%s10087_s6 + $0x180] sm:$0xff] }
  0x19   :  { %165 = vst [vmem:[#allocation2 + $0x170] sm:$0xff] %v164_v46  ;;  %167 = vst [vmem:[#allocation2 + $0x178] sm:$0xff] %v166_v47  ;;  %v170_v49 = vld [vmem:[%s10087_s6 + $0x188] sm:$0xff]  ;;  %v172_v50 = vld [vmem:[%s10087_s6 + $0x190] sm:$0xff] }
  0x1a   :  { %169 = vst [vmem:[#allocation2 + $0x180] sm:$0xff] %v168_v48  ;;  %171 = vst [vmem:[#allocation2 + $0x188] sm:$0xff] %v170_v49  ;;  %v174_v51 = vld [vmem:[%s10087_s6 + $0x198] sm:$0xff]  ;;  %v176_v52 = vld [vmem:[%s10087_s6 + $0x1a0] sm:$0xff] }
  0x1b   :  { %173 = vst [vmem:[#allocation2 + $0x190] sm:$0xff] %v172_v50  ;;  %v178_v53 = vld [vmem:[%s10087_s6 + $0x1a8] sm:$0xff]  ;;  %175 = vst [vmem:[#allocation2 + $0x198] sm:$0xff] %v174_v51  ;;  %v180_v54 = vld [vmem:[%s10087_s6 + $0x1b0] sm:$0xff] }
  0x1c   :  { %177 = vst [vmem:[#allocation2 + $0x1a0] sm:$0xff] %v176_v52  ;;  %179 = vst [vmem:[#allocation2 + $0x1a8] sm:$0xff] %v178_v53  ;;  %v182_v55 = vld [vmem:[%s10087_s6 + $0x1b8] sm:$0xff]  ;;  %v184_v56 = vld [vmem:[%s10087_s6 + $0x1c0] sm:$0xff] }
  0x1d   :  { %181 = vst [vmem:[#allocation2 + $0x1b0] sm:$0xff] %v180_v54  ;;  %183 = vst [vmem:[#allocation2 + $0x1b8] sm:$0xff] %v182_v55  ;;  %v186_v57 = vld [vmem:[%s10087_s6 + $0x1c8] sm:$0xff]  ;;  %v188_v58 = vld [vmem:[%s10087_s6 + $0x1d0] sm:$0xff] }
  0x1e   :  { %185 = vst [vmem:[#allocation2 + $0x1c0] sm:$0xff] %v184_v56  ;;  %v190_v59 = vld [vmem:[%s10087_s6 + $0x1d8] sm:$0xff]  ;;  %187 = vst [vmem:[#allocation2 + $0x1c8] sm:$0xff] %v186_v57  ;;  %v192_v60 = vld [vmem:[%s10087_s6 + $0x1e0] sm:$0xff] }
  0x1f   :  { %189 = vst [vmem:[#allocation2 + $0x1d0] sm:$0xff] %v188_v58  ;;  %191 = vst [vmem:[#allocation2 + $0x1d8] sm:$0xff] %v190_v59  ;;  %v194_v61 = vld [vmem:[%s10087_s6 + $0x1e8] sm:$0xff]  ;;  %v196_v62 = vld [vmem:[%s10087_s6 + $0x1f0] sm:$0xff] }
  0x20   :  { %193 = vst [vmem:[#allocation2 + $0x1e0] sm:$0xff] %v192_v60  ;;  %195 = vst [vmem:[#allocation2 + $0x1e8] sm:$0xff] %v194_v61  ;;  %v198_v63 = vld [vmem:[%s10087_s6 + $0x1f8] sm:$0xff]  ;;  %v200_v0 = vld [vmem:[%s10087_s6 + $0x200] sm:$0xff] }
  0x21   :  { %197 = vst [vmem:[#allocation2 + $0x1f0] sm:$0xff] %v196_v62  ;;  %v202_v1 = vld [vmem:[%s10087_s6 + $0x208] sm:$0xff]  ;;  %199 = vst [vmem:[#allocation2 + $0x1f8] sm:$0xff] %v198_v63  ;;  %v204_v2 = vld [vmem:[%s10087_s6 + $0x210] sm:$0xff] }
  0x22   :  { %201 = vst [vmem:[#allocation2 + $0x200] sm:$0xff] %v200_v0  ;;  %203 = vst [vmem:[#allocation2 + $0x208] sm:$0xff] %v202_v1  ;;  %v206_v3 = vld [vmem:[%s10087_s6 + $0x218] sm:$0xff]  ;;  %v208_v4 = vld [vmem:[%s10087_s6 + $0x220] sm:$0xff] }
  0x23   :  { %205 = vst [vmem:[#allocation2 + $0x210] sm:$0xff] %v204_v2  ;;  %207 = vst [vmem:[#allocation2 + $0x218] sm:$0xff] %v206_v3  ;;  %v210_v5 = vld [vmem:[%s10087_s6 + $0x228] sm:$0xff]  ;;  %v212_v6 = vld [vmem:[%s10087_s6 + $0x230] sm:$0xff] }
  0x24   :  { %209 = vst [vmem:[#allocation2 + $0x220] sm:$0xff] %v208_v4  ;;  %v214_v7 = vld [vmem:[%s10087_s6 + $0x238] sm:$0xff]  ;;  %211 = vst [vmem:[#allocation2 + $0x228] sm:$0xff] %v210_v5  ;;  %v216_v8 = vld [vmem:[%s10087_s6 + $0x240] sm:$0xff] }
  0x25   :  { %213 = vst [vmem:[#allocation2 + $0x230] sm:$0xff] %v212_v6  ;;  %215 = vst [vmem:[#allocation2 + $0x238] sm:$0xff] %v214_v7  ;;  %v218_v9 = vld [vmem:[%s10087_s6 + $0x248] sm:$0xff]  ;;  %v220_v10 = vld [vmem:[%s10087_s6 + $0x250] sm:$0xff] }
  0x26   :  { %217 = vst [vmem:[#allocation2 + $0x240] sm:$0xff] %v216_v8  ;;  %219 = vst [vmem:[#allocation2 + $0x248] sm:$0xff] %v218_v9  ;;  %v222_v11 = vld [vmem:[%s10087_s6 + $0x258] sm:$0xff]  ;;  %v224_v12 = vld [vmem:[%s10087_s6 + $0x260] sm:$0xff] }
  0x27   :  { %221 = vst [vmem:[#allocation2 + $0x250] sm:$0xff] %v220_v10  ;;  %v226_v13 = vld [vmem:[%s10087_s6 + $0x268] sm:$0xff]  ;;  %223 = vst [vmem:[#allocation2 + $0x258] sm:$0xff] %v222_v11  ;;  %v228_v14 = vld [vmem:[%s10087_s6 + $0x270] sm:$0xff] }
  0x28   :  { %225 = vst [vmem:[#allocation2 + $0x260] sm:$0xff] %v224_v12  ;;  %227 = vst [vmem:[#allocation2 + $0x268] sm:$0xff] %v226_v13  ;;  %v230_v15 = vld [vmem:[%s10087_s6 + $0x278] sm:$0xff]  ;;  %v232_v16 = vld [vmem:[%s10087_s6 + $0x280] sm:$0xff] }
  0x29   :  { %229 = vst [vmem:[#allocation2 + $0x270] sm:$0xff] %v228_v14  ;;  %231 = vst [vmem:[#allocation2 + $0x278] sm:$0xff] %v230_v15  ;;  %v234_v17 = vld [vmem:[%s10087_s6 + $0x288] sm:$0xff]  ;;  %v236_v18 = vld [vmem:[%s10087_s6 + $0x290] sm:$0xff] }
  0x2a   :  { %233 = vst [vmem:[#allocation2 + $0x280] sm:$0xff] %v232_v16  ;;  %v238_v19 = vld [vmem:[%s10087_s6 + $0x298] sm:$0xff]  ;;  %235 = vst [vmem:[#allocation2 + $0x288] sm:$0xff] %v234_v17  ;;  %v240_v20 = vld [vmem:[%s10087_s6 + $0x2a0] sm:$0xff] }
  0x2b   :  { %237 = vst [vmem:[#allocation2 + $0x290] sm:$0xff] %v236_v18  ;;  %239 = vst [vmem:[#allocation2 + $0x298] sm:$0xff] %v238_v19  ;;  %v242_v21 = vld [vmem:[%s10087_s6 + $0x2a8] sm:$0xff]  ;;  %v244_v22 = vld [vmem:[%s10087_s6 + $0x2b0] sm:$0xff] }
  0x2c   :  { %241 = vst [vmem:[#allocation2 + $0x2a0] sm:$0xff] %v240_v20  ;;  %243 = vst [vmem:[#allocation2 + $0x2a8] sm:$0xff] %v242_v21  ;;  %v246_v23 = vld [vmem:[%s10087_s6 + $0x2b8] sm:$0xff]  ;;  %v248_v24 = vld [vmem:[%s10087_s6 + $0x2c0] sm:$0xff] }
  0x2d   :  { %245 = vst [vmem:[#allocation2 + $0x2b0] sm:$0xff] %v244_v22  ;;  %v250_v25 = vld [vmem:[%s10087_s6 + $0x2c8] sm:$0xff]  ;;  %247 = vst [vmem:[#allocation2 + $0x2b8] sm:$0xff] %v246_v23  ;;  %v252_v26 = vld [vmem:[%s10087_s6 + $0x2d0] sm:$0xff] }
  0x2e   :  { %249 = vst [vmem:[#allocation2 + $0x2c0] sm:$0xff] %v248_v24  ;;  %251 = vst [vmem:[#allocation2 + $0x2c8] sm:$0xff] %v250_v25  ;;  %v254_v27 = vld [vmem:[%s10087_s6 + $0x2d8] sm:$0xff]  ;;  %v256_v28 = vld [vmem:[%s10087_s6 + $0x2e0] sm:$0xff] }
  0x2f   :  { %253 = vst [vmem:[#allocation2 + $0x2d0] sm:$0xff] %v252_v26  ;;  %255 = vst [vmem:[#allocation2 + $0x2d8] sm:$0xff] %v254_v27  ;;  %v258_v29 = vld [vmem:[%s10087_s6 + $0x2e8] sm:$0xff]  ;;  %v260_v30 = vld [vmem:[%s10087_s6 + $0x2f0] sm:$0xff] }
  0x30   :  { %257 = vst [vmem:[#allocation2 + $0x2e0] sm:$0xff] %v256_v28  ;;  %v262_v31 = vld [vmem:[%s10087_s6 + $0x2f8] sm:$0xff]  ;;  %259 = vst [vmem:[#allocation2 + $0x2e8] sm:$0xff] %v258_v29  ;;  %v264_v32 = vld [vmem:[%s10087_s6 + $0x300] sm:$0xff] }
  0x31   :  { %261 = vst [vmem:[#allocation2 + $0x2f0] sm:$0xff] %v260_v30  ;;  %263 = vst [vmem:[#allocation2 + $0x2f8] sm:$0xff] %v262_v31  ;;  %v266_v33 = vld [vmem:[%s10087_s6 + $0x308] sm:$0xff]  ;;  %v268_v34 = vld [vmem:[%s10087_s6 + $0x310] sm:$0xff] }
  0x32   :  { %265 = vst [vmem:[#allocation2 + $0x300] sm:$0xff] %v264_v32  ;;  %267 = vst [vmem:[#allocation2 + $0x308] sm:$0xff] %v266_v33  ;;  %v270_v35 = vld [vmem:[%s10087_s6 + $0x318] sm:$0xff]  ;;  %v272_v36 = vld [vmem:[%s10087_s6 + $0x320] sm:$0xff] }
  0x33   :  { %269 = vst [vmem:[#allocation2 + $0x310] sm:$0xff] %v268_v34  ;;  %v274_v37 = vld [vmem:[%s10087_s6 + $0x328] sm:$0xff]  ;;  %271 = vst [vmem:[#allocation2 + $0x318] sm:$0xff] %v270_v35  ;;  %v276_v38 = vld [vmem:[%s10087_s6 + $0x330] sm:$0xff] }
  0x34   :  { %273 = vst [vmem:[#allocation2 + $0x320] sm:$0xff] %v272_v36  ;;  %275 = vst [vmem:[#allocation2 + $0x328] sm:$0xff] %v274_v37  ;;  %v278_v39 = vld [vmem:[%s10087_s6 + $0x338] sm:$0xff]  ;;  %v280_v40 = vld [vmem:[%s10087_s6 + $0x340] sm:$0xff] }
  0x35   :  { %277 = vst [vmem:[#allocation2 + $0x330] sm:$0xff] %v276_v38  ;;  %279 = vst [vmem:[#allocation2 + $0x338] sm:$0xff] %v278_v39  ;;  %v282_v41 = vld [vmem:[%s10087_s6 + $0x348] sm:$0xff]  ;;  %v284_v42 = vld [vmem:[%s10087_s6 + $0x350] sm:$0xff] }
  0x36   :  { %281 = vst [vmem:[#allocation2 + $0x340] sm:$0xff] %v280_v40  ;;  %v286_v43 = vld [vmem:[%s10087_s6 + $0x358] sm:$0xff]  ;;  %283 = vst [vmem:[#allocation2 + $0x348] sm:$0xff] %v282_v41  ;;  %v288_v44 = vld [vmem:[%s10087_s6 + $0x360] sm:$0xff] }
  0x37   :  { %285 = vst [vmem:[#allocation2 + $0x350] sm:$0xff] %v284_v42  ;;  %287 = vst [vmem:[#allocation2 + $0x358] sm:$0xff] %v286_v43  ;;  %v290_v45 = vld [vmem:[%s10087_s6 + $0x368] sm:$0xff]  ;;  %v292_v46 = vld [vmem:[%s10087_s6 + $0x370] sm:$0xff] }
  0x38   :  { %289 = vst [vmem:[#allocation2 + $0x360] sm:$0xff] %v288_v44  ;;  %291 = vst [vmem:[#allocation2 + $0x368] sm:$0xff] %v290_v45  ;;  %v294_v47 = vld [vmem:[%s10087_s6 + $0x378] sm:$0xff]  ;;  %v296_v48 = vld [vmem:[%s10087_s6 + $0x380] sm:$0xff] }
  0x39   :  { %293 = vst [vmem:[#allocation2 + $0x370] sm:$0xff] %v292_v46  ;;  %v298_v49 = vld [vmem:[%s10087_s6 + $0x388] sm:$0xff]  ;;  %295 = vst [vmem:[#allocation2 + $0x378] sm:$0xff] %v294_v47  ;;  %v300_v50 = vld [vmem:[%s10087_s6 + $0x390] sm:$0xff] }
  0x3a   :  { %297 = vst [vmem:[#allocation2 + $0x380] sm:$0xff] %v296_v48  ;;  %299 = vst [vmem:[#allocation2 + $0x388] sm:$0xff] %v298_v49  ;;  %v302_v51 = vld [vmem:[%s10087_s6 + $0x398] sm:$0xff]  ;;  %v304_v52 = vld [vmem:[%s10087_s6 + $0x3a0] sm:$0xff] }
  0x3b   :  { %301 = vst [vmem:[#allocation2 + $0x390] sm:$0xff] %v300_v50  ;;  %303 = vst [vmem:[#allocation2 + $0x398] sm:$0xff] %v302_v51  ;;  %v306_v53 = vld [vmem:[%s10087_s6 + $0x3a8] sm:$0xff]  ;;  %v308_v54 = vld [vmem:[%s10087_s6 + $0x3b0] sm:$0xff] }
  0x3c   :  { %305 = vst [vmem:[#allocation2 + $0x3a0] sm:$0xff] %v304_v52  ;;  %v310_v55 = vld [vmem:[%s10087_s6 + $0x3b8] sm:$0xff]  ;;  %307 = vst [vmem:[#allocation2 + $0x3a8] sm:$0xff] %v306_v53  ;;  %v312_v56 = vld [vmem:[%s10087_s6 + $0x3c0] sm:$0xff] }
  0x3d   :  { %309 = vst [vmem:[#allocation2 + $0x3b0] sm:$0xff] %v308_v54  ;;  %311 = vst [vmem:[#allocation2 + $0x3b8] sm:$0xff] %v310_v55  ;;  %v314_v57 = vld [vmem:[%s10087_s6 + $0x3c8] sm:$0xff]  ;;  %v316_v58 = vld [vmem:[%s10087_s6 + $0x3d0] sm:$0xff] }
  0x3e   :  { %313 = vst [vmem:[#allocation2 + $0x3c0] sm:$0xff] %v312_v56  ;;  %315 = vst [vmem:[#allocation2 + $0x3c8] sm:$0xff] %v314_v57  ;;  %v318_v59 = vld [vmem:[%s10087_s6 + $0x3d8] sm:$0xff]  ;;  %v320_v60 = vld [vmem:[%s10087_s6 + $0x3e0] sm:$0xff] }
  0x3f   :  { %317 = vst [vmem:[#allocation2 + $0x3d0] sm:$0xff] %v316_v58  ;;  %v322_v61 = vld [vmem:[%s10087_s6 + $0x3e8] sm:$0xff]  ;;  %319 = vst [vmem:[#allocation2 + $0x3d8] sm:$0xff] %v318_v59  ;;  %v324_v62 = vld [vmem:[%s10087_s6 + $0x3f0] sm:$0xff] }
  0x40   :  { %321 = vst [vmem:[#allocation2 + $0x3e0] sm:$0xff] %v320_v60  ;;  %323 = vst [vmem:[#allocation2 + $0x3e8] sm:$0xff] %v322_v61  ;;  %v326_v63 = vld [vmem:[%s10087_s6 + $0x3f8] sm:$0xff]  ;;  %v328_v0 = vld [vmem:[%s10087_s6 + $0x400] sm:$0xff] }
  0x41   :  { %325 = vst [vmem:[#allocation2 + $0x3f0] sm:$0xff] %v324_v62  ;;  %327 = vst [vmem:[#allocation2 + $0x3f8] sm:$0xff] %v326_v63  ;;  %v330_v1 = vld [vmem:[%s10087_s6 + $0x408] sm:$0xff]  ;;  %v332_v2 = vld [vmem:[%s10087_s6 + $0x410] sm:$0xff] }
  0x42   :  { %329 = vst [vmem:[#allocation2 + $0x400] sm:$0xff] %v328_v0  ;;  %v334_v3 = vld [vmem:[%s10087_s6 + $0x418] sm:$0xff]  ;;  %331 = vst [vmem:[#allocation2 + $0x408] sm:$0xff] %v330_v1  ;;  %v336_v4 = vld [vmem:[%s10087_s6 + $0x420] sm:$0xff] }
  0x43   :  { %333 = vst [vmem:[#allocation2 + $0x410] sm:$0xff] %v332_v2  ;;  %335 = vst [vmem:[#allocation2 + $0x418] sm:$0xff] %v334_v3  ;;  %v338_v5 = vld [vmem:[%s10087_s6 + $0x428] sm:$0xff]  ;;  %v340_v6 = vld [vmem:[%s10087_s6 + $0x430] sm:$0xff] }
  0x44   :  { %337 = vst [vmem:[#allocation2 + $0x420] sm:$0xff] %v336_v4  ;;  %339 = vst [vmem:[#allocation2 + $0x428] sm:$0xff] %v338_v5  ;;  %v342_v7 = vld [vmem:[%s10087_s6 + $0x438] sm:$0xff]  ;;  %v344_v8 = vld [vmem:[%s10087_s6 + $0x440] sm:$0xff] }
  0x45   :  { %341 = vst [vmem:[#allocation2 + $0x430] sm:$0xff] %v340_v6  ;;  %v346_v9 = vld [vmem:[%s10087_s6 + $0x448] sm:$0xff]  ;;  %343 = vst [vmem:[#allocation2 + $0x438] sm:$0xff] %v342_v7  ;;  %v348_v10 = vld [vmem:[%s10087_s6 + $0x450] sm:$0xff] }
  0x46   :  { %345 = vst [vmem:[#allocation2 + $0x440] sm:$0xff] %v344_v8  ;;  %347 = vst [vmem:[#allocation2 + $0x448] sm:$0xff] %v346_v9  ;;  %v350_v11 = vld [vmem:[%s10087_s6 + $0x458] sm:$0xff]  ;;  %v352_v12 = vld [vmem:[%s10087_s6 + $0x460] sm:$0xff] }
  0x47   :  { %349 = vst [vmem:[#allocation2 + $0x450] sm:$0xff] %v348_v10  ;;  %351 = vst [vmem:[#allocation2 + $0x458] sm:$0xff] %v350_v11  ;;  %v354_v13 = vld [vmem:[%s10087_s6 + $0x468] sm:$0xff]  ;;  %v356_v14 = vld [vmem:[%s10087_s6 + $0x470] sm:$0xff] }
  0x48   :  { %353 = vst [vmem:[#allocation2 + $0x460] sm:$0xff] %v352_v12  ;;  %v358_v15 = vld [vmem:[%s10087_s6 + $0x478] sm:$0xff]  ;;  %355 = vst [vmem:[#allocation2 + $0x468] sm:$0xff] %v354_v13  ;;  %v360_v16 = vld [vmem:[%s10087_s6 + $0x480] sm:$0xff] }
  0x49   :  { %357 = vst [vmem:[#allocation2 + $0x470] sm:$0xff] %v356_v14  ;;  %359 = vst [vmem:[#allocation2 + $0x478] sm:$0xff] %v358_v15  ;;  %v362_v17 = vld [vmem:[%s10087_s6 + $0x488] sm:$0xff]  ;;  %v364_v18 = vld [vmem:[%s10087_s6 + $0x490] sm:$0xff] }
  0x4a   :  { %361 = vst [vmem:[#allocation2 + $0x480] sm:$0xff] %v360_v16  ;;  %363 = vst [vmem:[#allocation2 + $0x488] sm:$0xff] %v362_v17  ;;  %v366_v19 = vld [vmem:[%s10087_s6 + $0x498] sm:$0xff]  ;;  %v368_v20 = vld [vmem:[%s10087_s6 + $0x4a0] sm:$0xff] }
  0x4b   :  { %365 = vst [vmem:[#allocation2 + $0x490] sm:$0xff] %v364_v18  ;;  %v370_v21 = vld [vmem:[%s10087_s6 + $0x4a8] sm:$0xff]  ;;  %367 = vst [vmem:[#allocation2 + $0x498] sm:$0xff] %v366_v19  ;;  %v372_v22 = vld [vmem:[%s10087_s6 + $0x4b0] sm:$0xff] }
  0x4c   :  { %369 = vst [vmem:[#allocation2 + $0x4a0] sm:$0xff] %v368_v20  ;;  %371 = vst [vmem:[#allocation2 + $0x4a8] sm:$0xff] %v370_v21  ;;  %v374_v23 = vld [vmem:[%s10087_s6 + $0x4b8] sm:$0xff]  ;;  %v376_v24 = vld [vmem:[%s10087_s6 + $0x4c0] sm:$0xff] }
  0x4d   :  { %373 = vst [vmem:[#allocation2 + $0x4b0] sm:$0xff] %v372_v22  ;;  %375 = vst [vmem:[#allocation2 + $0x4b8] sm:$0xff] %v374_v23  ;;  %v378_v25 = vld [vmem:[%s10087_s6 + $0x4c8] sm:$0xff]  ;;  %v380_v26 = vld [vmem:[%s10087_s6 + $0x4d0] sm:$0xff] }
  0x4e   :  { %377 = vst [vmem:[#allocation2 + $0x4c0] sm:$0xff] %v376_v24  ;;  %v382_v27 = vld [vmem:[%s10087_s6 + $0x4d8] sm:$0xff]  ;;  %379 = vst [vmem:[#allocation2 + $0x4c8] sm:$0xff] %v378_v25  ;;  %v384_v28 = vld [vmem:[%s10087_s6 + $0x4e0] sm:$0xff] }
  0x4f   :  { %381 = vst [vmem:[#allocation2 + $0x4d0] sm:$0xff] %v380_v26  ;;  %383 = vst [vmem:[#allocation2 + $0x4d8] sm:$0xff] %v382_v27  ;;  %v386_v29 = vld [vmem:[%s10087_s6 + $0x4e8] sm:$0xff]  ;;  %v388_v30 = vld [vmem:[%s10087_s6 + $0x4f0] sm:$0xff] }
  0x50   :  { %385 = vst [vmem:[#allocation2 + $0x4e0] sm:$0xff] %v384_v28  ;;  %387 = vst [vmem:[#allocation2 + $0x4e8] sm:$0xff] %v386_v29  ;;  %v390_v31 = vld [vmem:[%s10087_s6 + $0x4f8] sm:$0xff]  ;;  %v392_v32 = vld [vmem:[%s10087_s6 + $0x500] sm:$0xff] }
  0x51   :  { %389 = vst [vmem:[#allocation2 + $0x4f0] sm:$0xff] %v388_v30  ;;  %v394_v33 = vld [vmem:[%s10087_s6 + $0x508] sm:$0xff]  ;;  %391 = vst [vmem:[#allocation2 + $0x4f8] sm:$0xff] %v390_v31  ;;  %v396_v34 = vld [vmem:[%s10087_s6 + $0x510] sm:$0xff] }
  0x52   :  { %393 = vst [vmem:[#allocation2 + $0x500] sm:$0xff] %v392_v32  ;;  %395 = vst [vmem:[#allocation2 + $0x508] sm:$0xff] %v394_v33  ;;  %v398_v35 = vld [vmem:[%s10087_s6 + $0x518] sm:$0xff]  ;;  %v400_v36 = vld [vmem:[%s10087_s6 + $0x520] sm:$0xff] }
  0x53   :  { %397 = vst [vmem:[#allocation2 + $0x510] sm:$0xff] %v396_v34  ;;  %399 = vst [vmem:[#allocation2 + $0x518] sm:$0xff] %v398_v35  ;;  %v402_v37 = vld [vmem:[%s10087_s6 + $0x528] sm:$0xff]  ;;  %v404_v38 = vld [vmem:[%s10087_s6 + $0x530] sm:$0xff] }
  0x54   :  { %401 = vst [vmem:[#allocation2 + $0x520] sm:$0xff] %v400_v36  ;;  %v406_v39 = vld [vmem:[%s10087_s6 + $0x538] sm:$0xff]  ;;  %403 = vst [vmem:[#allocation2 + $0x528] sm:$0xff] %v402_v37  ;;  %v408_v40 = vld [vmem:[%s10087_s6 + $0x540] sm:$0xff] }
  0x55   :  { %405 = vst [vmem:[#allocation2 + $0x530] sm:$0xff] %v404_v38  ;;  %407 = vst [vmem:[#allocation2 + $0x538] sm:$0xff] %v406_v39  ;;  %v410_v41 = vld [vmem:[%s10087_s6 + $0x548] sm:$0xff]  ;;  %v412_v42 = vld [vmem:[%s10087_s6 + $0x550] sm:$0xff] }
  0x56   :  { %409 = vst [vmem:[#allocation2 + $0x540] sm:$0xff] %v408_v40  ;;  %411 = vst [vmem:[#allocation2 + $0x548] sm:$0xff] %v410_v41  ;;  %v414_v43 = vld [vmem:[%s10087_s6 + $0x558] sm:$0xff]  ;;  %v416_v44 = vld [vmem:[%s10087_s6 + $0x560] sm:$0xff] }
  0x57   :  { %413 = vst [vmem:[#allocation2 + $0x550] sm:$0xff] %v412_v42  ;;  %v418_v45 = vld [vmem:[%s10087_s6 + $0x568] sm:$0xff]  ;;  %415 = vst [vmem:[#allocation2 + $0x558] sm:$0xff] %v414_v43  ;;  %v420_v46 = vld [vmem:[%s10087_s6 + $0x570] sm:$0xff] }
  0x58   :  { %417 = vst [vmem:[#allocation2 + $0x560] sm:$0xff] %v416_v44  ;;  %419 = vst [vmem:[#allocation2 + $0x568] sm:$0xff] %v418_v45  ;;  %v422_v47 = vld [vmem:[%s10087_s6 + $0x578] sm:$0xff]  ;;  %v424_v48 = vld [vmem:[%s10087_s6 + $0x580] sm:$0xff] }
  0x59   :  { %421 = vst [vmem:[#allocation2 + $0x570] sm:$0xff] %v420_v46  ;;  %423 = vst [vmem:[#allocation2 + $0x578] sm:$0xff] %v422_v47  ;;  %v426_v49 = vld [vmem:[%s10087_s6 + $0x588] sm:$0xff]  ;;  %v428_v50 = vld [vmem:[%s10087_s6 + $0x590] sm:$0xff] }
  0x5a   :  { %425 = vst [vmem:[#allocation2 + $0x580] sm:$0xff] %v424_v48  ;;  %v430_v51 = vld [vmem:[%s10087_s6 + $0x598] sm:$0xff]  ;;  %427 = vst [vmem:[#allocation2 + $0x588] sm:$0xff] %v426_v49  ;;  %v432_v52 = vld [vmem:[%s10087_s6 + $0x5a0] sm:$0xff] }
  0x5b   :  { %429 = vst [vmem:[#allocation2 + $0x590] sm:$0xff] %v428_v50  ;;  %431 = vst [vmem:[#allocation2 + $0x598] sm:$0xff] %v430_v51  ;;  %v434_v53 = vld [vmem:[%s10087_s6 + $0x5a8] sm:$0xff]  ;;  %v436_v54 = vld [vmem:[%s10087_s6 + $0x5b0] sm:$0xff] }
  0x5c   :  { %433 = vst [vmem:[#allocation2 + $0x5a0] sm:$0xff] %v432_v52  ;;  %435 = vst [vmem:[#allocation2 + $0x5a8] sm:$0xff] %v434_v53  ;;  %v438_v55 = vld [vmem:[%s10087_s6 + $0x5b8] sm:$0xff]  ;;  %v440_v56 = vld [vmem:[%s10087_s6 + $0x5c0] sm:$0xff] }
  0x5d   :  { %437 = vst [vmem:[#allocation2 + $0x5b0] sm:$0xff] %v436_v54  ;;  %v442_v57 = vld [vmem:[%s10087_s6 + $0x5c8] sm:$0xff]  ;;  %439 = vst [vmem:[#allocation2 + $0x5b8] sm:$0xff] %v438_v55  ;;  %v444_v58 = vld [vmem:[%s10087_s6 + $0x5d0] sm:$0xff] }
  0x5e   :  { %441 = vst [vmem:[#allocation2 + $0x5c0] sm:$0xff] %v440_v56  ;;  %443 = vst [vmem:[#allocation2 + $0x5c8] sm:$0xff] %v442_v57  ;;  %v446_v59 = vld [vmem:[%s10087_s6 + $0x5d8] sm:$0xff]  ;;  %v448_v60 = vld [vmem:[%s10087_s6 + $0x5e0] sm:$0xff] }
  0x5f   :  { %445 = vst [vmem:[#allocation2 + $0x5d0] sm:$0xff] %v444_v58  ;;  %447 = vst [vmem:[#allocation2 + $0x5d8] sm:$0xff] %v446_v59  ;;  %v450_v61 = vld [vmem:[%s10087_s6 + $0x5e8] sm:$0xff]  ;;  %v452_v62 = vld [vmem:[%s10087_s6 + $0x5f0] sm:$0xff] }
  0x60   :  { %449 = vst [vmem:[#allocation2 + $0x5e0] sm:$0xff] %v448_v60  ;;  %v454_v63 = vld [vmem:[%s10087_s6 + $0x5f8] sm:$0xff]  ;;  %451 = vst [vmem:[#allocation2 + $0x5e8] sm:$0xff] %v450_v61  ;;  %v456_v0 = vld [vmem:[%s10087_s6 + $0x600] sm:$0xff] }
  0x61   :  { %453 = vst [vmem:[#allocation2 + $0x5f0] sm:$0xff] %v452_v62  ;;  %455 = vst [vmem:[#allocation2 + $0x5f8] sm:$0xff] %v454_v63  ;;  %v458_v1 = vld [vmem:[%s10087_s6 + $0x608] sm:$0xff]  ;;  %v460_v2 = vld [vmem:[%s10087_s6 + $0x610] sm:$0xff] }
  0x62   :  { %457 = vst [vmem:[#allocation2 + $0x600] sm:$0xff] %v456_v0  ;;  %459 = vst [vmem:[#allocation2 + $0x608] sm:$0xff] %v458_v1  ;;  %v462_v3 = vld [vmem:[%s10087_s6 + $0x618] sm:$0xff]  ;;  %v464_v4 = vld [vmem:[%s10087_s6 + $0x620] sm:$0xff] }
  0x63   :  { %461 = vst [vmem:[#allocation2 + $0x610] sm:$0xff] %v460_v2  ;;  %v466_v5 = vld [vmem:[%s10087_s6 + $0x628] sm:$0xff]  ;;  %463 = vst [vmem:[#allocation2 + $0x618] sm:$0xff] %v462_v3  ;;  %v468_v6 = vld [vmem:[%s10087_s6 + $0x630] sm:$0xff] }
  0x64   :  { %465 = vst [vmem:[#allocation2 + $0x620] sm:$0xff] %v464_v4  ;;  %467 = vst [vmem:[#allocation2 + $0x628] sm:$0xff] %v466_v5  ;;  %v470_v7 = vld [vmem:[%s10087_s6 + $0x638] sm:$0xff]  ;;  %v472_v8 = vld [vmem:[%s10087_s6 + $0x640] sm:$0xff] }
  0x65   :  { %469 = vst [vmem:[#allocation2 + $0x630] sm:$0xff] %v468_v6  ;;  %471 = vst [vmem:[#allocation2 + $0x638] sm:$0xff] %v470_v7  ;;  %v474_v9 = vld [vmem:[%s10087_s6 + $0x648] sm:$0xff]  ;;  %v476_v10 = vld [vmem:[%s10087_s6 + $0x650] sm:$0xff] }
  0x66   :  { %473 = vst [vmem:[#allocation2 + $0x640] sm:$0xff] %v472_v8  ;;  %v478_v11 = vld [vmem:[%s10087_s6 + $0x658] sm:$0xff]  ;;  %475 = vst [vmem:[#allocation2 + $0x648] sm:$0xff] %v474_v9  ;;  %v480_v12 = vld [vmem:[%s10087_s6 + $0x660] sm:$0xff] }
  0x67   :  { %477 = vst [vmem:[#allocation2 + $0x650] sm:$0xff] %v476_v10  ;;  %479 = vst [vmem:[#allocation2 + $0x658] sm:$0xff] %v478_v11  ;;  %v482_v13 = vld [vmem:[%s10087_s6 + $0x668] sm:$0xff]  ;;  %v484_v14 = vld [vmem:[%s10087_s6 + $0x670] sm:$0xff] }
  0x68   :  { %481 = vst [vmem:[#allocation2 + $0x660] sm:$0xff] %v480_v12  ;;  %483 = vst [vmem:[#allocation2 + $0x668] sm:$0xff] %v482_v13  ;;  %v486_v15 = vld [vmem:[%s10087_s6 + $0x678] sm:$0xff]  ;;  %v488_v16 = vld [vmem:[%s10087_s6 + $0x680] sm:$0xff] }
  0x69   :  { %485 = vst [vmem:[#allocation2 + $0x670] sm:$0xff] %v484_v14  ;;  %v490_v17 = vld [vmem:[%s10087_s6 + $0x688] sm:$0xff]  ;;  %487 = vst [vmem:[#allocation2 + $0x678] sm:$0xff] %v486_v15  ;;  %v492_v18 = vld [vmem:[%s10087_s6 + $0x690] sm:$0xff] }
  0x6a   :  { %489 = vst [vmem:[#allocation2 + $0x680] sm:$0xff] %v488_v16  ;;  %491 = vst [vmem:[#allocation2 + $0x688] sm:$0xff] %v490_v17  ;;  %v494_v19 = vld [vmem:[%s10087_s6 + $0x698] sm:$0xff]  ;;  %v496_v20 = vld [vmem:[%s10087_s6 + $0x6a0] sm:$0xff] }
  0x6b   :  { %493 = vst [vmem:[#allocation2 + $0x690] sm:$0xff] %v492_v18  ;;  %495 = vst [vmem:[#allocation2 + $0x698] sm:$0xff] %v494_v19  ;;  %v498_v21 = vld [vmem:[%s10087_s6 + $0x6a8] sm:$0xff]  ;;  %v500_v22 = vld [vmem:[%s10087_s6 + $0x6b0] sm:$0xff] }
  0x6c   :  { %497 = vst [vmem:[#allocation2 + $0x6a0] sm:$0xff] %v496_v20  ;;  %v502_v23 = vld [vmem:[%s10087_s6 + $0x6b8] sm:$0xff]  ;;  %499 = vst [vmem:[#allocation2 + $0x6a8] sm:$0xff] %v498_v21  ;;  %v504_v24 = vld [vmem:[%s10087_s6 + $0x6c0] sm:$0xff] }
  0x6d   :  { %501 = vst [vmem:[#allocation2 + $0x6b0] sm:$0xff] %v500_v22  ;;  %503 = vst [vmem:[#allocation2 + $0x6b8] sm:$0xff] %v502_v23  ;;  %v506_v25 = vld [vmem:[%s10087_s6 + $0x6c8] sm:$0xff]  ;;  %v508_v26 = vld [vmem:[%s10087_s6 + $0x6d0] sm:$0xff] }
  0x6e   :  { %505 = vst [vmem:[#allocation2 + $0x6c0] sm:$0xff] %v504_v24  ;;  %507 = vst [vmem:[#allocation2 + $0x6c8] sm:$0xff] %v506_v25  ;;  %v510_v27 = vld [vmem:[%s10087_s6 + $0x6d8] sm:$0xff]  ;;  %v5986_v28 = vld [vmem:[%s10087_s6 + $0x6e0] sm:$0xf] }
  0x6f   :  { %509 = vst [vmem:[#allocation2 + $0x6d0] sm:$0xff] %v508_v26  ;;  %511 = vst [vmem:[#allocation2 + $0x6d8] sm:$0xff] %v510_v27 }
  0x70   :  { %523 = vst [vmem:[#allocation2 + $0x6e0] sm:$0xf] %v5986_v28 }
  0x71   :  { %527 = vsyncadd [#allocation3], 28224  ;;  %vm676_vm0 = vcmask 1043456   ;;  %v6704_v29 = vld [vmem:[%s10081_s0 + $0x4c] ss:$36 sps:$4 sm:$0x1f]  }
  0x72   :  { %vm677_vm1 = vcmask 1044480   ;;  %v7106_v30 = vmov 65535   ;;  %v6706_v32 = vld [vmem:[%s10081_s0 + $0x54] ss:$36 sps:$4 sm:$0x1f]   ;;  %v10092_v44 = vmov 0  }
  0x73   :  { %v678_v31 = vsel %vm676_vm0, 4294967295, %v7106_v30  ;;  %v6708_v34 = vld [vmem:[%s10081_s0 + $0x48] ss:$36 sps:$4 sm:$0x1f]   ;;  %v6714_v42 = vld [vmem:[%s10081_s0] ss:$36 sps:$4 sm:$0xff]   ;;  %739 = vmatprep.mubr.bf16.mxu0 %v10092_v44  ;;  %792 = vmatprep.mubr.bf16.mxu1 %v10092_v44 }
  0x74   :  { %v679_v33 = vsel %vm677_vm1, %v678_v31, 0  ;;  %v6709_v37 = vld [vmem:[%s10081_s0 + $0x50] ss:$36 sps:$4 sm:$0x1f]   ;;  %v6710_v38 = vld [vmem:[%s10081_s0 + $0x4] ss:$36 sps:$4 sm:$0xff]   ;;  %6543 = vset.pattern.permute.xlu1 %v10092_v44  ;;  %6542 = vset.pattern.permute.xlu0 %v10092_v44 }
  0x75   :  { %v684_v35 = vand.u32 %v6704_v29, %v679_v33  ;;  %v690_v36 = vand.u32 %v6706_v32, %v679_v33  ;;  %v681_v39 = vand.u32 %v6708_v34, %v679_v33  ;;  %v6712_v40 = vld [vmem:[%s10081_s0 + $0xc] ss:$36 sps:$4 sm:$0xff]   ;;  %v687_v41 = vand.u32 %v6709_v37, %v679_v33  ;;  %v6716_v45 = vld [vmem:[%s10082_s1] sm:$0xff]   ;;  %v6718_v46 = vld [vmem:[%s10081_s0 + $0x58] ss:$36 sps:$4 sm:$0x1f]  }
  0x76   :  { %v6715_v43 = vld [vmem:[%s10081_s0 + $0x8] ss:$36 sps:$4 sm:$0xff]   ;;  %v6720_v47 = vld [vmem:[%s10081_s0 + $0x5c] ss:$36 sps:$4 sm:$0x1f]   ;;  %vm669_vm2 = vcmask 203776   ;;  %v693_v52 = vand.u32 %v6718_v46, %v679_v33 }
  0x77   :  { %719 = vmatprep.subr.bf16.mxu0 %v684_v35  ;;  %772 = vmatprep.subr.bf16.mxu1 %v690_v36  ;;  %v6721_v48 = vld [vmem:[%s10081_s0 + $0x60] ss:$36 sps:$4 sm:$0x1f]   ;;  %v696_v49 = vand.u32 %v6720_v47, %v679_v33  ;;  %v6726_v54 = vld [vmem:[%s10081_s0 + $0x14] ss:$36 sps:$4 sm:$0xff]   ;;  %v6717_v57 = vld [vmem:[%s10082_s1 + $0x8] sm:$0xff]  }
  0x78   :  { %720 = vmatpush1.bf16.msra.mxu0 %v681_v39  ;;  %773 = vmatpush1.bf16.msra.mxu1 %v687_v41  ;;  %v6723_v50 = vld [vmem:[%s10081_s0 + $0x64] ss:$36 sps:$4 sm:$0x1f]   ;;  %v699_v53 = vand.u32 %v6721_v48, %v679_v33  ;;  %v6729_v55 = vld [vmem:[%s10081_s0 + $0x1c] ss:$36 sps:$4 sm:$0xff]   ;;  %v554_v60 = vld [vmem:[%s10083_s2 + $0x10] sm:$0xff] }
  0x79   :  { %721 = vmatprep.subr.bf16.mxu0 %v6710_v38  ;;  %774 = vmatprep.subr.bf16.mxu1 %v6712_v40  ;;  %v702_v51 = vand.u32 %v6723_v50, %v679_v33  ;;  %v6730_v56 = vld [vmem:[%s10081_s0 + $0x68] ss:$36 sps:$4 sm:$0x1f]   ;;  %v6724_v58 = vld [vmem:[%s10081_s0 + $0x10] ss:$36 sps:$4 sm:$0xff]   ;;  %v552_v59 = vld [vmem:[%s10083_s2] sm:$0xff] }
  0x7a   :  { %v6727_v61 = vld [vmem:[%s10081_s0 + $0x18] ss:$36 sps:$4 sm:$0xff]   ;;  %v705_v62 = vand.u32 %v6730_v56, %v679_v33  ;;  %558 = vperm.xlu1 %6543, %v552_v59   ;;  %v553_v63 = vld [vmem:[%s10083_s2 + $0x8] sm:$0xff]  ;;  %568 = vperm.xlu0 %6542, %v554_v60   ;;  %v6731_v1 = vld [vmem:[%s10081_s0 + $0x20] ss:$36 sps:$4 sm:$0xff]   ;;  %s7108_s0 = smov 96  }
  0x7b   :  { %v555_v0 = vld [vmem:[%s10083_s2 + $0x18] sm:$0xff]  ;;  %vm1004_vm3 = vcmask 785408   ;;  %s7109_s2 = smov 64   ;;  %vm1141_vm4 = vcmask 523264   ;;  %s7110_s6 = smov 106   ;;  %vm1222_vm5 = vcmask 998400  }
  0x7c   :  { %722 = vmatpush1.bf16.msra.mxu0 %v6714_v42  ;;  %775 = vmatpush1.bf16.msra.mxu1 %v6715_v43  ;;  %s7111_s20 = smov 122   ;;  %s7112_s21 = smov 98   ;;  %vm1342_vm6 = vcmask 637952   ;;  %vm1207_vm7 = vcmask 1014784   ;;  %vm1192_vm8 = vcmask 1031168   ;;  %vm1282_vm9 = vcmask 818176  }
  0x7d   :  { %825 = vmatprep.subr.bf16.mxu0 %v696_v49  ;;  %878 = vmatprep.subr.bf16.mxu1 %v702_v51  ;;  %s7113_s22 = smov 124   ;;  %s7114_s23 = smov 54   ;;  %vm1267_vm10 = vcmask 834560   ;;  %vm1252_vm11 = vcmask 850944   ;;  %vm1441_vm12 = vcmask 867328   ;;  %vm1297_vm13 = vcmask 801792  }
  0x7e   :  { %563 = vperm.xlu1 %6543, %v553_v63   ;;  %573 = vperm.xlu0 %6542, %v555_v0   ;;  %s7115_s24 = smov 126   ;;  %s7116_s25 = smov 100   ;;  %vm1327_vm14 = vcmask 654336   ;;  %vm1402_vm15 = vcmask 457728  }
  0x7f   :  { %6007 = vmatmul.mubr.msk.bf16.vlgmr.msra.gmra.mxu0 %vm669_vm2, %v6716_v45  ;;  %6009 = vmatmul.mubr.msk.bf16.vlgmr.msra.gmra.mxu1 %vm669_vm2, %v6716_v45  ;;  %s7117_s26 = smov 102   ;;  %s7118_s27 = smov 104  }
  0x80   :  { %749 = vmatprep.mubr.bf16.mxu0 %v10092_v44  ;;  %802 = vmatprep.mubr.bf16.mxu1 %v10092_v44  ;;  %s7119_s28 = smov 78   ;;  %s7120_s29 = smov 80  }
  0x81   :  { %826 = vmatpush1.bf16.msra.mxu0 %v693_v52  ;;  %879 = vmatpush1.bf16.msra.mxu1 %v699_v53  ;;  %s7121_s30 = smov 120   ;;  %s7122_s11 = smov 56  }
  0x82   :  { %827 = vmatprep.subr.bf16.mxu0 %v6726_v54  ;;  %880 = vmatprep.subr.bf16.mxu1 %v6729_v55  ;;  %s7123_s12 = smov 72   ;;  %s7124_s13 = smov 74  }
  0x83   :  { %s7125_s14 = smov 76   ;;  %s7128_s18 = smov 116  }
  0x84   :  { %s7129_s19 = smov 114  }
  0x85   :  { %828 = vmatpush1.bf16.msra.mxu0 %v6724_v58  ;;  %881 = vmatpush1.bf16.msra.mxu1 %v6727_v61 }
  0x86   :  { %6407 = vmatprep.subr.bf16.mxu0 %v705_v62 }
  0x87   :  { %6008 = vmatmul.mubr.msk.bf16.gmra.mxu0 %vm669_vm2, %v6717_v57  ;;  %6010 = vmatmul.mubr.msk.bf16.gmra.mxu1 %vm669_vm2, %v6717_v57 }
  0x88   :  { %845 = vmatprep.mubr.bf16.mxu0 %v10092_v44  ;;  %898 = vmatprep.mubr.bf16.mxu1 %v10092_v44 }
  0x8f   :  { %6011 = vmatmul.mubr.msk.bf16.vlgmr.msra.gmra.mxu0 %vm669_vm2, %v6716_v45  ;;  %6013 = vmatmul.mubr.msk.bf16.vlgmr.msra.gmra.mxu1 %vm669_vm2, %v6716_v45 }
  0x90   :  { %855 = vmatprep.mubr.bf16.mxu0 %v10092_v44  ;;  %908 = vmatprep.mubr.bf16.mxu1 %v10092_v44 }
  0x91   :  { %6408 = vmatpush3.bf16.msra.mxu0 %v705_v62 }
  0x92   :  { %6409 = vmatprep.subr.bf16.mxu0 %v6731_v1 }
  0x95   :  { %6410 = vmatpush3.bf16.msra.mxu0 %v6731_v1 }
  0x97   :  { %6012 = vmatmul.mubr.msk.bf16.gmra.mxu0 %vm669_vm2, %v6717_v57  ;;  %6014 = vmatmul.mubr.msk.bf16.gmra.mxu1 %vm669_vm2, %v6717_v57 }
  0x98   :  { %6411 = vmatprep.mubr.msk.bf16.mxu0 %vm669_vm2, %v6716_v45 }
  0x9f   :  { %6412 = vmatmul.mubr.msk.bf16.vlgmr.msra.gmra.mxu0 %vm669_vm2, %v6717_v57  ;;  %vm1237_vm2 = vcmask 982016  }
  0xf5   :  { %v7946_v3 = vpop.permute.xlu1 %558  ;;  %v7962_v15 = vpop.permute.xlu0 %568 }
  0xf9   :  { %v7972_v23 = vpop.permute.xlu1 %563  ;;  %v7997_v40 = vpop.permute.xlu0 %573 }
 0x13f   :  { %v7944_v2 = vpop.f32.mrf.mxu0  ;;  %v794_v4 = vpop.f32.mrf.mxu1 }
 0x140   :  { %v7949_v5 = vadd.f32 %v794_v4, %v7946_v3 }
 0x141   :  { %v7951_v6 = vpop.f32.mrf.mxu0  ;;  %v796_v7 = vpop.f32.mrf.mxu1 }
 0x142   :  { %v797_v8 = vadd.f32 %v796_v7, %v7946_v3 }
 0x143   :  { %v7954_v9 = vpop.f32.mrf.mxu0  ;;  %v798_v10 = vpop.f32.mrf.mxu1 }
 0x144   :  { %v6544_v11 = vpack.i.bf16 %v797_v8, %v7949_v5  ;;  %v7979_v28 = vadd.f32 %v798_v10, %v7972_v23 }
 0x145   :  { %v7957_v12 = vpop.f32.mrf.mxu0  ;;  %v800_v13 = vpop.f32.mrf.mxu1 }
 0x146   :  { %6545 = vrot.lane.b32.xlu0 %v6544_v11, %s7108_s0  ;;  %v801_v36 = vadd.f32 %v800_v13, %v7972_v23 }
 0x147   :  { %v7960_v14 = vpop.f32.mrf.mxu0  ;;  %v804_v16 = vpop.f32.mrf.mxu1 }
 0x148   :  { %v7965_v17 = vadd.f32 %v804_v16, %v7962_v15 }
 0x149   :  { %v7967_v18 = vpop.f32.mrf.mxu0  ;;  %v806_v19 = vpop.f32.mrf.mxu1 }
 0x14a   :  { %v807_v20 = vadd.f32 %v806_v19, %v7962_v15 }
 0x14b   :  { %v7970_v21 = vpop.f32.mrf.mxu0  ;;  %v808_v22 = vpop.f32.mrf.mxu1 }
 0x14c   :  { %v6549_v24 = vpack.i.bf16 %v807_v20, %v7965_v17  ;;  %v8004_v47 = vadd.f32 %v808_v22, %v7997_v40 }
 0x14d   :  { %v7975_v25 = vpop.f32.mrf.mxu0  ;;  %v810_v26 = vpop.f32.mrf.mxu1 }
 0x14e   :  { %6550 = vrot.lane.b32.xlu0 %v6549_v24, %s7108_s0  ;;  %v811_v60 = vadd.f32 %v810_v26, %v7997_v40 }
 0x14f   :  { %v847_v27 = vpop.f32.mrf.mxu0  ;;  %v900_v30 = vpop.f32.mrf.mxu1 }
 0x150   :  { %v7982_v29 = vadd.f32 %v847_v27, %v7946_v3  ;;  %v7991_v37 = vadd.f32 %v900_v30, %v7946_v3 }
 0x151   :  { %v7984_v31 = vpop.f32.mrf.mxu0  ;;  %v902_v33 = vpop.f32.mrf.mxu1 }
 0x152   :  { %v6554_v32 = vpack.i.bf16 %v7979_v28, %v7982_v29  ;;  %v903_v34 = vadd.f32 %v902_v33, %v7946_v3 }
 0x153   :  { %v851_v35 = vpop.f32.mrf.mxu0  ;;  %v904_v39 = vpop.f32.mrf.mxu1 }
 0x154   :  { %v7994_v38 = vadd.f32 %v851_v35, %v7972_v23  ;;  %6555 = vrot.lane.b32.xlu1 %v6554_v32, %s7108_s0  ;;  %v6559_v42 = vpack.i.bf16 %v903_v34, %v7991_v37  ;;  %v8034_v4 = vadd.f32 %v904_v39, %v7972_v23 }
 0x155   :  { %v7999_v41 = vpop.f32.mrf.mxu0  ;;  %v906_v45 = vpop.f32.mrf.mxu1 }
 0x156   :  { %v6564_v43 = vpack.i.bf16 %v7994_v38, %v801_v36  ;;  %v907_v20 = vadd.f32 %v906_v45, %v7972_v23  ;;  %v8058_v36 = vadd.f32 %v7951_v6, %v7946_v3  ;;  %v8075_v6 = vadd.f32 %v7957_v12, %v7972_v23 }
 0x157   :  { %v857_v46 = vpop.f32.mrf.mxu0  ;;  %v910_v49 = vpop.f32.mrf.mxu1 }
 0x158   :  { %v8007_v48 = vadd.f32 %v857_v46, %v7962_v15  ;;  %6565 = vrot.lane.b32.xlu0 %v6564_v43, %s7108_s0  ;;  %6560 = vrot.lane.b32.xlu1 %v6559_v42, %s7108_s0  ;;  %v8016_v53 = vadd.f32 %v910_v49, %v7962_v15 }
 0x159   :  { %v8011_v50 = vpop.f32.mrf.mxu0  ;;  %v912_v52 = vpop.f32.mrf.mxu1 }
 0x15a   :  { %v6569_v51 = vpack.i.bf16 %v8004_v47, %v8007_v48  ;;  %v913_v54 = vadd.f32 %v912_v52, %v7962_v15 }
 0x15b   :  { %v861_v55 = vpop.f32.mrf.mxu0  ;;  %v914_v58 = vpop.f32.mrf.mxu1 }
 0x15c   :  { %6570 = vrot.lane.b32.xlu1 %v6569_v51, %s7108_s0  ;;  %v6574_v56 = vpack.i.bf16 %v913_v54, %v8016_v53  ;;  %v8022_v57 = vadd.f32 %v861_v55, %v7997_v40  ;;  %v8029_v62 = vadd.f32 %v914_v58, %v7997_v40 }
 0x15d   :  { %v8024_v59 = vpop.f32.mrf.mxu0  ;;  %v916_v11 = vpop.f32.mrf.mxu1 }
 0x15e   :  { %6575 = vrot.lane.b32.xlu0 %v6574_v56, %s7108_s0  ;;  %v6579_v0 = vpack.i.bf16 %v8022_v57, %v811_v60  ;;  %v917_v24 = vadd.f32 %v916_v11, %v7997_v40 }
 0x15f   :  { %v6413_v61 = vpop.f32.mrf.mxu0 }
 0x160   :  { %v962_v63 = vadd.f32 %v6413_v61, %v7962_v15 }
 0x161   :  { %v953_v1 = vpop.f32.mrf.mxu0 }
 0x162   :  { %v6584_v7 = vpack.i.bf16 %v8029_v62, %v962_v63  ;;  %v954_v8 = vadd.f32 %v953_v1, %v7946_v3  ;;  %6580 = vrot.lane.b32.xlu0 %v6579_v0, %s7108_s0 }
 0x163   :  { %v6414_v10 = vpop.f32.mrf.mxu0 }
 0x164   :  { %v6589_v13 = vpack.i.bf16 %v8034_v4, %v954_v8  ;;  %6585 = vrot.lane.b32.xlu1 %v6584_v7, %s7108_s0  ;;  %v965_v16 = vadd.f32 %v6414_v10, %v7997_v40  ;;  %v860_v7 = vadd.f32 %v8011_v50, %v7962_v15 }
 0x165   :  { %v956_v19 = vpop.f32.mrf.mxu0 }
 0x166   :  { %v957_v22 = vadd.f32 %v956_v19, %v7972_v23  ;;  %6590 = vrot.lane.b32.xlu0 %v6589_v13, %s7108_s0  ;;  %v6594_v27 = vpack.i.bf16 %v965_v16, %v917_v24 }
 0x168   :  { %v6599_v26 = vpack.i.bf16 %v957_v22, %v907_v20  ;;  %v850_v20 = vadd.f32 %v7984_v31, %v7946_v3 }
 0x16a   :  { %6600 = vrot.lane.b32.xlu1 %v6599_v26, %s7108_s0  ;;  %6595 = vrot.lane.b32.xlu0 %v6594_v27, %s7108_s0 }
 0x1b8   :  { %v8048_v30 = vpop.permute.xlu0 %6545 }
 0x1b9   :  { %v6548_v34 = vunpack.i.h.bf16 %v8048_v30 }
 0x1c0   :  { %v8050_v32 = vpop.permute.xlu0 %6550 }
 0x1c6   :  { %v8052_v33 = vpop.permute.xlu1 %6555 }
 0x1c7   :  { %v10094_v35 = vunpack.i.l.bf16 %v8052_v33 }
 0x1c9   :  { %v8065_v39 = vsel %vm1004_vm3, %v6548_v34, %v10094_v35 }
 0x1ca   :  { %v1026_v42 = vmax.f32 %v8058_v36, %v8065_v39  ;;  %v8069_v43 = vpop.permute.xlu0 %6565  ;;  %v6561_v49 = vpop.permute.xlu1 %6560  ;;  %v10095_v39 = vunpack.i.l.bf16 %v8052_v33 }
 0x1cb   :  { %v6568_v45 = vunpack.i.h.bf16 %v8069_v43  ;;  %v6567_v46 = vunpack.i.l.bf16 %v8069_v43  ;;  %v6563_v12 = vunpack.i.h.bf16 %v6561_v49  ;;  %v6562_v61 = vunpack.i.l.bf16 %v6561_v49 }
 0x1cd   :  { %v8082_v51 = vsel %vm1004_vm3, %v6567_v46, %v6568_v45  ;;  %v1073_v19 = vsel %vm1004_vm3, %v6562_v61, %v6563_v12  ;;  %v864_v61 = vadd.f32 %v8024_v59, %v7997_v40  ;;  %v1030_v36 = vmax.f32 %v7979_v28, %v6568_v45 }
 0x1ce   :  { %v1029_v52 = vmax.f32 %v8075_v6, %v8082_v51  ;;  %v8086_v55 = vpop.permute.xlu1 %6570  ;;  %v1093_v50 = vmax.f32 %v7982_v29, %v1073_v19 }
 0x1d0   :  { %v6576_v54 = vpop.permute.xlu0 %6575 }
 0x1d1   :  { %v6578_v56 = vunpack.i.h.bf16 %v6576_v54  ;;  %v6577_v58 = vunpack.i.l.bf16 %v6576_v54 }
 0x1d3   :  { %v1077_v1 = vsel %vm1004_vm3, %v6577_v58, %v6578_v56 }
 0x1d4   :  { %v8088_v60 = vpop.permute.xlu0 %6580  ;;  %v1099_v13 = vmax.f32 %v8007_v48, %v1077_v1 }
 0x1d6   :  { %v6586_v63 = vpop.permute.xlu1 %6585 }
 0x1d7   :  { %v6587_v0 = vunpack.i.l.bf16 %v6586_v63 }
 0x1d8   :  { %v6591_v8 = vpop.permute.xlu0 %6590 }
 0x1d9   :  { %v1078_v10 = vsel %vm1004_vm3, %v6578_v56, %v6587_v0  ;;  %v6592_v11 = vunpack.i.l.bf16 %v6591_v8  ;;  %v6588_v56 = vunpack.i.h.bf16 %v6586_v63  ;;  %v6593_v44 = vunpack.i.h.bf16 %v6591_v8 }
 0x1da   :  { %v1100_v16 = vmax.f32 %v860_v7, %v1078_v10  ;;  %v1101_v29 = vmax.f32 %v8016_v53, %v6587_v0  ;;  %v6547_v0 = vunpack.i.l.bf16 %v8048_v30  ;;  %v6573_v30 = vunpack.i.h.bf16 %v8086_v55 }
 0x1db   :  { %v1074_v26 = vsel %vm1004_vm3, %v6563_v12, %v6592_v11 }
 0x1dc   :  { %v6601_v22 = vpop.permute.xlu1 %6600  ;;  %v6609_v24 = vpack.i.bf16 %v1100_v16, %v1099_v13  ;;  %v6596_v27 = vpop.permute.xlu0 %6595  ;;  %v1094_v58 = vmax.f32 %v850_v20, %v1074_v26  ;;  %v854_v16 = vadd.f32 %v7999_v41, %v7972_v23  ;;  %v6553_v41 = vunpack.i.h.bf16 %v8050_v32 }
 0x1dd   :  { %v6603_v49 = vunpack.i.h.bf16 %v6601_v22  ;;  %v6602_v54 = vunpack.i.l.bf16 %v6601_v22  ;;  %v6598_v35 = vunpack.i.h.bf16 %v6596_v27  ;;  %v6597_v48 = vunpack.i.l.bf16 %v6596_v27 }
 0x1de   :  { %6610 = vrot.lane.b32.xlu1 %v6609_v24, %s7109_s2  ;;  %v6619_v31 = vpack.i.bf16 %v1094_v58, %v1093_v50  ;;  %v6552_v22 = vunpack.i.l.bf16 %v8050_v32  ;;  %v1005_v26 = vsel %vm1004_vm3, %v6547_v0, %v6548_v34  ;;  %v6583_v32 = vunpack.i.h.bf16 %v8088_v60 }
 0x1df   :  { %v1104_v1 = vmax.f32 %v8029_v62, %v6598_v35  ;;  %v1079_v12 = vsel %vm1004_vm3, %v6588_v56, %v6597_v48  ;;  %v1080_v7 = vsel %vm1004_vm3, %v6597_v48, %v6598_v35  ;;  %v1075_v10 = vsel %vm1004_vm3, %v6593_v44, %v6602_v54 }
 0x1e0   :  { %v1102_v63 = vmax.f32 %v8022_v57, %v1079_v12  ;;  %v1103_v8 = vmax.f32 %v864_v61, %v1080_v7  ;;  %v1076_v13 = vsel %vm1004_vm3, %v6602_v54, %v6603_v49  ;;  %v1096_v62 = vmax.f32 %v7994_v38, %v1075_v10 }
 0x1e1   :  { %v1098_v19 = vmax.f32 %v8034_v4, %v6603_v49  ;;  %v1097_v35 = vmax.f32 %v854_v16, %v1076_v13  ;;  %v1095_v44 = vmax.f32 %v7991_v37, %v6592_v11  ;;  %v742_v38 = vadd.f32 %v7944_v2, %v7946_v3 }
 0x1e2   :  { %6620 = vrot.lane.b32.xlu1 %v6619_v31, %s7109_s2  ;;  %v6604_v59 = vpack.i.bf16 %v1102_v63, %v1101_v29  ;;  %v6624_v20 = vpack.i.bf16 %v1104_v1, %v1103_v8  ;;  %v6572_v4 = vunpack.i.l.bf16 %v8086_v55  ;;  %v8122_v37 = vadd.f32 %v7954_v9, %v7972_v23 }
 0x1e3   :  { %v6614_v53 = vpack.i.bf16 %v1096_v62, %v1095_v44  ;;  %v6629_v57 = vpack.i.bf16 %v1098_v19, %v1097_v35  ;;  %v752_v11 = vadd.f32 %v7960_v14, %v7962_v15  ;;  %v1009_v27 = vsel %vm1004_vm3, %v6552_v22, %v6553_v41 }
 0x1e4   :  { %6605 = vrot.lane.b32.xlu0 %v6604_v59, %s7109_s2  ;;  %v6582_v49 = vunpack.i.l.bf16 %v8088_v60  ;;  %v754_v54 = vadd.f32 %v7967_v18, %v7962_v15  ;;  %v756_v9 = vadd.f32 %v7970_v21, %v7997_v40  ;;  %v6558_v14 = vunpack.i.h.bf16 %v8052_v33 }
 0x1e5   :  { %v1010_v34 = vsel %vm1004_vm3, %v6553_v41, %v6572_v4  ;;  %v758_v60 = vadd.f32 %v7975_v25, %v7997_v40  ;;  %v1025_v56 = vmax.f32 %v742_v38, %v1005_v26  ;;  %v1031_v48 = vmax.f32 %v752_v11, %v1009_v27 }
 0x1e6   :  { %6625 = vrot.lane.b32.xlu1 %v6624_v20, %s7109_s2  ;;  %v1007_v15 = vsel %vm1004_vm3, %v6558_v14, %v6567_v46  ;;  %v1011_v18 = vsel %vm1004_vm3, %v6573_v30, %v6582_v49  ;;  %v1012_v21 = vsel %vm1004_vm3, %v6582_v49, %v6583_v32  ;;  %v1032_v1 = vmax.f32 %v754_v54, %v1010_v34 }
 0x1e7   :  { %v1033_v12 = vmax.f32 %v7965_v17, %v6572_v4  ;;  %v1036_v10 = vmax.f32 %v8004_v47, %v6583_v32  ;;  %v1034_v8 = vmax.f32 %v756_v9, %v1011_v18  ;;  %v1035_v13 = vmax.f32 %v758_v60, %v1012_v21 }
 0x1e8   :  { %6615 = vrot.lane.b32.xlu0 %v6614_v53, %s7109_s2  ;;  %v1028_v4 = vmax.f32 %v8122_v37, %v1007_v15 }
 0x1ea   :  { %6630 = vrot.lane.b32.xlu1 %v6629_v57, %s7109_s2  ;;  %s7131_s2 = smov 108  }
 0x250   :  { %v6611_v24 = vpop.permute.xlu1 %6610 }
 0x251   :  { %v6613_v2 = vunpack.i.h.bf16 %v6611_v24  ;;  %v6612_v3 = vunpack.i.l.bf16 %v6611_v24 }
 0x253   :  { %v1146_v61 = vsel %vm1141_vm4, %v6612_v3, %v6613_v2 }
 0x254   :  { %v6621_v23 = vpop.permute.xlu1 %6620  ;;  %v1168_v16 = vmax.f32 %v1031_v48, %v1146_v61 }
 0x255   :  { %v6623_v50 = vunpack.i.h.bf16 %v6621_v23  ;;  %v6622_v58 = vunpack.i.l.bf16 %v6621_v23 }
 0x256   :  { %v6606_v31 = vpop.permute.xlu0 %6605 }
 0x257   :  { %v1142_v55 = vsel %vm1141_vm4, %v6622_v58, %v6623_v50  ;;  %v6607_v25 = vunpack.i.l.bf16 %v6606_v31  ;;  %v6608_v29 = vunpack.i.h.bf16 %v6606_v31 }
 0x258   :  { %v1162_v7 = vmax.f32 %v1025_v56, %v1142_v55  ;;  %v6626_v40 = vpop.permute.xlu1 %6625 }
 0x259   :  { %v6628_v63 = vunpack.i.h.bf16 %v6626_v40  ;;  %v6627_v46 = vunpack.i.l.bf16 %v6626_v40  ;;  %v1147_v59 = vsel %vm1141_vm4, %v6613_v2, %v6607_v25  ;;  %v1170_v62 = vmax.f32 %v1033_v12, %v6607_v25 }
 0x25a   :  { %v6616_v17 = vpop.permute.xlu0 %6615  ;;  %v1169_v44 = vmax.f32 %v1032_v1, %v1147_v59  ;;  %v6740_v59 = vld [vmem:[%s10084_s3 + $0xc] ss:$28 sps:$4 sm:$0xff]  }
 0x25b   :  { %v1173_v19 = vmax.f32 %v1036_v10, %v6628_v63  ;;  %v1148_v20 = vsel %vm1141_vm4, %v6608_v29, %v6627_v46  ;;  %v1149_v35 = vsel %vm1141_vm4, %v6627_v46, %v6628_v63  ;;  %v6617_v0 = vunpack.i.l.bf16 %v6616_v17  ;;  %1966 = vmatprep.mubr.bf16.mxu0 %v6740_v59 }
 0x25c   :  { %v1171_v53 = vmax.f32 %v1034_v8, %v1148_v20  ;;  %v1172_v57 = vmax.f32 %v1035_v13, %v1149_v35  ;;  %v6631_v47 = vpop.permute.xlu1 %6630  ;;  %v6618_v22 = vunpack.i.h.bf16 %v6616_v17 }
 0x25d   :  { %v1179_v41 = vpack.c.bf16 %v1173_v19, %v1170_v62  ;;  %v6633_v24 = vunpack.i.h.bf16 %v6631_v47  ;;  %v6632_v38 = vunpack.i.l.bf16 %v6631_v47  ;;  %v1143_v27 = vsel %vm1141_vm4, %v6623_v50, %v6617_v0 }
 0x25e   :  { %v8154_v11 = vpack.c.bf16 %v1171_v53, %v1168_v16  ;;  %v8156_v26 = vpack.c.bf16 %v1172_v57, %v1169_v44  ;;  %v1163_v32 = vmax.f32 %v1026_v42, %v1143_v27  ;;  %v1027_v42 = vmax.f32 %v7949_v5, %v10095_v39 }
 0x25f   :  { %v1144_v49 = vsel %vm1141_vm4, %v6618_v22, %v6632_v38  ;;  %v1145_v2 = vsel %vm1141_vm4, %v6632_v38, %v6633_v24  ;;  %1439 = vrot.lane.b32.xlu1 %v1179_v41, %s7110_s6  ;;  %1425 = vrot.lane.b32.xlu0 %v1179_v41, %s7111_s20  ;;  %v1167_v6 = vmax.f32 %v1030_v36, %v6633_v24  ;;  %vm1372_vm4 = vcmask 605184  }
 0x260   :  { %v1165_v3 = vmax.f32 %v1028_v4, %v1144_v49  ;;  %v1166_v37 = vmax.f32 %v1029_v52, %v1145_v2  ;;  %v1164_v51 = vmax.f32 %v1027_v42, %v6617_v0 }
 0x262   :  { %v8169_v54 = vpack.c.bf16 %v1165_v3, %v1162_v7  ;;  %v8171_v9 = vpack.c.bf16 %v1166_v37, %v1163_v32  ;;  %v1176_v43 = vpack.c.bf16 %v1167_v6, %v1164_v51  ;;  %v6734_v7 = vld [vmem:[%s10084_s3 + $0x4] ss:$28 sps:$4 sm:$0xff]  }
 0x263   :  { %1466 = vrot.lane.b32.xlu1 %v1179_v41, %s7112_s21  ;;  %1419 = vrot.lane.b32.xlu0 %v1179_v41, %s7113_s22 }
 0x264   :  { %1895 = vmatprep.mubr.bf16.mxu1 %v6734_v7 }
 0x267   :  { %1480 = vrot.lane.b32.xlu1 %v1179_v41, %s7114_s23  ;;  %1413 = vrot.lane.b32.xlu0 %v1179_v41, %s7115_s24 }
 0x26b   :  { %1220 = vrot.lane.b32.xlu1 %v8156_v26, %s7111_s20  ;;  %1460 = vrot.lane.b32.xlu0 %v1179_v41, %s7116_s25 }
 0x26f   :  { %1203 = vrot.lane.b32.xlu1 %v8154_v11, %s7113_s22  ;;  %1454 = vrot.lane.b32.xlu0 %v1179_v41, %s7117_s26 }
 0x273   :  { %1423 = vrot.lane.b32.xlu1 %v1176_v43, %s7111_s20  ;;  %1448 = vrot.lane.b32.xlu0 %v1179_v41, %s7118_s27 }
 0x277   :  { %1188 = vrot.lane.b32.xlu1 %v8154_v11, %s7115_s24  ;;  %1218 = vrot.lane.b32.xlu0 %v8154_v11, %s7111_s20 }
 0x27b   :  { %1417 = vrot.lane.b32.xlu1 %v1176_v43, %s7113_s22  ;;  %1205 = vrot.lane.b32.xlu0 %v8156_v26, %s7113_s22 }
 0x27f   :  { %1411 = vrot.lane.b32.xlu1 %v1176_v43, %s7115_s24  ;;  %1190 = vrot.lane.b32.xlu0 %v8156_v26, %s7115_s24 }
 0x283   :  { %1280 = vrot.lane.b32.xlu1 %v8156_v26, %s7116_s25  ;;  %1278 = vrot.lane.b32.xlu0 %v8154_v11, %s7116_s25 }
 0x287   :  { %1340 = vrot.lane.b32.xlu1 %v8156_v26, %s7119_s28  ;;  %1338 = vrot.lane.b32.xlu0 %v8154_v11, %s7119_s28 }
 0x28b   :  { %1263 = vrot.lane.b32.xlu1 %v8154_v11, %s7117_s26  ;;  %1265 = vrot.lane.b32.xlu0 %v8156_v26, %s7117_s26 }
 0x28f   :  { %1458 = vrot.lane.b32.xlu1 %v1176_v43, %s7116_s25  ;;  %1323 = vrot.lane.b32.xlu0 %v8154_v11, %s7120_s29 }
 0x293   :  { %1325 = vrot.lane.b32.xlu1 %v8156_v26, %s7120_s29  ;;  %1250 = vrot.lane.b32.xlu0 %v8156_v26, %s7118_s27 }
 0x297   :  { %1248 = vrot.lane.b32.xlu1 %v8154_v11, %s7118_s27  ;;  %1308 = vrot.lane.b32.xlu0 %v8154_v11, %s7108_s0 }
 0x29b   :  { %1452 = vrot.lane.b32.xlu1 %v1176_v43, %s7117_s26  ;;  %1235 = vrot.lane.b32.xlu0 %v8156_v26, %s7121_s30 }
 0x29f   :  { %1310 = vrot.lane.b32.xlu1 %v8156_v26, %s7108_s0  ;;  %1293 = vrot.lane.b32.xlu0 %v8154_v11, %s7112_s21 }
 0x2a3   :  { %1233 = vrot.lane.b32.xlu1 %v8154_v11, %s7121_s30  ;;  %1437 = vrot.lane.b32.xlu0 %v8156_v26, %s7110_s6 }
 0x2a7   :  { %1446 = vrot.lane.b32.xlu1 %v1176_v43, %s7118_s27  ;;  %1435 = vrot.lane.b32.xlu0 %v8154_v11, %s7110_s6 }
 0x2ab   :  { %1295 = vrot.lane.b32.xlu1 %v8156_v26, %s7112_s21  ;;  %1398 = vrot.lane.b32.xlu0 %v8154_v11, %s7122_s11 }
 0x2af   :  { %1433 = vrot.lane.b32.xlu1 %v1176_v43, %s7110_s6  ;;  %1464 = vrot.lane.b32.xlu0 %v1176_v43, %s7112_s21 }
 0x2b3   :  { %1400 = vrot.lane.b32.xlu1 %v8156_v26, %s7122_s11  ;;  %1385 = vrot.lane.b32.xlu0 %v8156_v26, %s7123_s12 }
 0x2b7   :  { %1383 = vrot.lane.b32.xlu1 %v8154_v11, %s7123_s12  ;;  %1370 = vrot.lane.b32.xlu0 %v8156_v26, %s7124_s13 }
 0x2bb   :  { %1368 = vrot.lane.b32.xlu1 %v8154_v11, %s7124_s13  ;;  %1478 = vrot.lane.b32.xlu0 %v8156_v26, %s7114_s23 }
 0x2bf   :  { %1353 = vrot.lane.b32.xlu1 %v8154_v11, %s7125_s14  ;;  %1476 = vrot.lane.b32.xlu0 %v8154_v11, %s7114_s23 }
 0x2c3   :  { %1216 = vrot.lane.b32.xlu1 %v8171_v9, %s7111_s20  ;;  %1355 = vrot.lane.b32.xlu0 %v8156_v26, %s7125_s14 }
 0x2c7   :  { %1201 = vrot.lane.b32.xlu1 %v8171_v9, %s7113_s22  ;;  %1474 = vrot.lane.b32.xlu0 %v1176_v43, %s7114_s23 }
 0x2cb   :  { %1186 = vrot.lane.b32.xlu1 %v8171_v9, %s7115_s24  ;;  %1214 = vrot.lane.b32.xlu0 %v8169_v54, %s7111_s20 }
 0x2cf   :  { %1276 = vrot.lane.b32.xlu1 %v8171_v9, %s7116_s25  ;;  %1199 = vrot.lane.b32.xlu0 %v8169_v54, %s7113_s22 }
 0x2d1   :  { %v8275_v5 = vpop.permute.xlu1 %1439  ;;  %v8277_v28 = vpop.permute.xlu0 %1425 }
 0x2d3   :  { %1334 = vrot.lane.b32.xlu1 %v8169_v54, %s7119_s28  ;;  %1184 = vrot.lane.b32.xlu0 %v8169_v54, %s7115_s24 }
 0x2d5   :  { %v8283_v33 = vpop.permute.xlu1 %1466  ;;  %v8285_v45 = vpop.permute.xlu0 %1419 }
 0x2d7   :  { %1261 = vrot.lane.b32.xlu1 %v8171_v9, %s7117_s26  ;;  %1274 = vrot.lane.b32.xlu0 %v8169_v54, %s7116_s25 }
 0x2d9   :  { %v8291_v52 = vpop.permute.xlu1 %1480  ;;  %v8293_v14 = vpop.permute.xlu0 %1413 }
 0x2db   :  { %1319 = vrot.lane.b32.xlu1 %v8169_v54, %s7120_s29  ;;  %1336 = vrot.lane.b32.xlu0 %v8171_v9, %s7119_s28 }
 0x2dd   :  { %v8299_v23 = vpop.permute.xlu1 %1220  ;;  %v8301_v30 = vpop.permute.xlu0 %1460 }
 0x2de   :  { %1863 = vmatprep.subr.bf16.mxu1 %v8299_v23  ;;  %v1428_v38 = vsel %vm1222_vm5, %v8299_v23, %v8277_v28 }
 0x2df   :  { %1246 = vrot.lane.b32.xlu1 %v8171_v9, %s7118_s27  ;;  %1259 = vrot.lane.b32.xlu0 %v8169_v54, %s7117_s26 }
 0x2e1   :  { %v8308_v34 = vpop.permute.xlu1 %1203  ;;  %v8310_v50 = vpop.permute.xlu0 %1454 }
 0x2e3   :  { %1304 = vrot.lane.b32.xlu1 %v8169_v54, %s7108_s0  ;;  %1321 = vrot.lane.b32.xlu0 %v8171_v9, %s7120_s29 }
 0x2e5   :  { %v8316_v58 = vpop.permute.xlu1 %1423  ;;  %v8318_v60 = vpop.permute.xlu0 %1448 }
 0x2e7   :  { %1231 = vrot.lane.b32.xlu1 %v8171_v9, %s7121_s30  ;;  %1244 = vrot.lane.b32.xlu0 %v8169_v54, %s7118_s27 }
 0x2e9   :  { %v8324_v56 = vpop.permute.xlu1 %1188  ;;  %v1219_v48 = vpop.permute.xlu0 %1218 }
 0x2ea   :  { %v8328_v15 = vsel %vm1222_vm5, %v1219_v48, %v8299_v23 }
 0x2eb   :  { %1289 = vrot.lane.b32.xlu1 %v8169_v54, %s7112_s21  ;;  %1864 = vmatpush1.bf16.msra.mxu1 %v8328_v15 }
 0x2ec   :  { %1306 = vrot.lane.b32.xlu0 %v8171_v9, %s7108_s0  ;;  %s7130_s0 = smov 110  }
 0x2ed   :  { %v8335_v18 = vpop.permute.xlu1 %1417  ;;  %v8337_v21 = vpop.permute.xlu0 %1205 }
 0x2ee   :  { %v1422_v2 = vsel %vm1207_vm7, %v8337_v21, %v8285_v45  ;;  %v1209_v36 = vsel %vm1207_vm7, %v8308_v34, %v8337_v21 }
 0x2ef   :  { %1429 = vrot.lane.b32.xlu1 %v8169_v54, %s7110_s6 }
 0x2f0   :  { %1229 = vrot.lane.b32.xlu0 %v8169_v54, %s7121_s30 }
 0x2f1   :  { %v8343_v61 = vpop.permute.xlu1 %1411  ;;  %v8345_v55 = vpop.permute.xlu0 %1190 }
 0x2f2   :  { %v1416_v6 = vsel %vm1192_vm8, %v8345_v55, %v8293_v14 }
 0x2f3   :  { %1396 = vrot.lane.b32.xlu1 %v8171_v9, %s7122_s11 }
 0x2f4   :  { %1291 = vrot.lane.b32.xlu0 %v8171_v9, %s7112_s21 }
 0x2f5   :  { %v8351_v31 = vpop.permute.xlu1 %1280  ;;  %v8353_v1 = vpop.permute.xlu0 %1278 }
 0x2f6   :  { %v1463_v34 = vsel %vm1282_vm9, %v8351_v31, %v8301_v30 }
 0x2f7   :  { %1381 = vrot.lane.b32.xlu1 %v8171_v9, %s7123_s12 }
 0x2f8   :  { %1431 = vrot.lane.b32.xlu0 %v8171_v9, %s7110_s6 }
 0x2f9   :  { %v1341_v12 = vpop.permute.xlu1 %1340  ;;  %v1339_v25 = vpop.permute.xlu0 %1338 }
 0x2fa   :  { %1934 = vmatprep.subr.bf16.mxu0 %v1341_v12  ;;  %v1344_v40 = vsel %vm1342_vm6, %v1339_v25, %v1341_v12 }
 0x2fb   :  { %1366 = vrot.lane.b32.xlu1 %v8171_v9, %s7124_s13  ;;  %1935 = vmatpush1.bf16.msra.mxu0 %v1344_v40 }
 0x2fc   :  { %1394 = vrot.lane.b32.xlu0 %v8169_v54, %s7122_s11 }
 0x2fd   :  { %v8367_v10 = vpop.permute.xlu1 %1263  ;;  %v8369_v29 = vpop.permute.xlu0 %1265 }
 0x2fe   :  { %v1457_v7 = vsel %vm1267_vm10, %v8369_v29, %v8310_v50 }
 0x2ff   :  { %1472 = vrot.lane.b32.xlu1 %v8171_v9, %s7114_s23 }
 0x300   :  { %1379 = vrot.lane.b32.xlu0 %v8169_v54, %s7123_s12 }
 0x301   :  { %v8375_v63 = vpop.permute.xlu1 %1458  ;;  %v8377_v46 = vpop.permute.xlu0 %1323 }
 0x303   :  { %1470 = vrot.lane.b32.xlu1 %v8169_v54, %s7114_s23 }
 0x304   :  { %1364 = vrot.lane.b32.xlu0 %v8169_v54, %s7124_s13 }
 0x305   :  { %v8383_v8 = vpop.permute.xlu1 %1325  ;;  %v8385_v13 = vpop.permute.xlu0 %1250 }
 0x307   :  { %1351 = vrot.lane.b32.xlu1 %v8171_v9, %s7125_s14 }
 0x308   :  { %1349 = vrot.lane.b32.xlu0 %v8169_v54, %s7125_s14 }
 0x309   :  { %v8391_v16 = vpop.permute.xlu1 %1248  ;;  %v8396_v62 = vpop.permute.xlu0 %1308 }
 0x30b   :  { %1516 = vrot.lane.b32.xlu1 %v8277_v28, %s7114_s23 }
 0x30c   :  { %1510 = vrot.lane.b32.xlu0 %v8316_v58, %s7114_s23 }
 0x30d   :  { %v8402_v19 = vpop.permute.xlu1 %1452  ;;  %v8404_v20 = vpop.permute.xlu0 %1235 }
 0x30f   :  { %1504 = vrot.lane.b32.xlu1 %v8285_v45, %s7114_s23  ;;  %v1194_v45 = vsel %vm1192_vm8, %v8324_v56, %v8345_v55 }
 0x310   :  { %1498 = vrot.lane.b32.xlu0 %v8335_v18, %s7114_s23 }
 0x311   :  { %v8410_v35 = vpop.permute.xlu1 %1310  ;;  %v8412_v17 = vpop.permute.xlu0 %1293 }
 0x313   :  { %1492 = vrot.lane.b32.xlu1 %v8293_v14, %s7114_s23 }
 0x314   :  { %1486 = vrot.lane.b32.xlu0 %v8343_v61, %s7114_s23 }
 0x315   :  { %v8418_v44 = vpop.permute.xlu1 %1233  ;;  %v8420_v53 = vpop.permute.xlu0 %1437 }
 0x317   :  { %1564 = vrot.lane.b32.xlu1 %v8301_v30, %s7114_s23 }
 0x318   :  { %1558 = vrot.lane.b32.xlu0 %v8375_v63, %s7114_s23 }
 0x319   :  { %v8426_v57 = vpop.permute.xlu1 %1446  ;;  %v8428_v0 = vpop.permute.xlu0 %1435 }
 0x31b   :  { %1552 = vrot.lane.b32.xlu1 %v8310_v50, %s7114_s23 }
 0x31c   :  { %1546 = vrot.lane.b32.xlu0 %v8402_v19, %s7114_s23 }
 0x31d   :  { %v8434_v47 = vpop.permute.xlu1 %1295  ;;  %v8436_v41 = vpop.permute.xlu0 %1398 }
 0x31f   :  { %1540 = vrot.lane.b32.xlu1 %v8318_v60, %s7114_s23 }
 0x320   :  { %1534 = vrot.lane.b32.xlu0 %v8426_v57, %s7114_s23 }
 0x321   :  { %v8442_v22 = vpop.permute.xlu1 %1433  ;;  %v8444_v24 = vpop.permute.xlu0 %1464 }
 0x323   :  { %1528 = vrot.lane.b32.xlu1 %v8275_v5, %s7114_s23 }
 0x324   :  { %1514 = vrot.lane.b32.xlu0 %v1428_v38, %s7114_s23  ;;  %v1451_v38 = vsel %vm1252_vm11, %v8385_v13, %v8318_v60 }
 0x325   :  { %v8452_v4 = vpop.permute.xlu1 %1400  ;;  %v8454_v27 = vpop.permute.xlu0 %1385 }
 0x328   :  { %1512 = vrot.lane.b32.xlu0 %v8328_v15, %s7114_s23  ;;  %v8500_v15 = vsel %vm1282_vm9, %v8353_v1, %v8351_v31 }
 0x329   :  { %v8458_v32 = vpop.permute.xlu1 %1383  ;;  %v8460_v49 = vpop.permute.xlu0 %1370 }
 0x32c   :  { %1502 = vrot.lane.b32.xlu0 %v1422_v2, %s7114_s23 }
 0x32d   :  { %v8466_v3 = vpop.permute.xlu1 %1368  ;;  %v8468_v37 = vpop.permute.xlu0 %1478 }
 0x330   :  { %1500 = vrot.lane.b32.xlu0 %v1209_v36, %s7114_s23 }
 0x331   :  { %v8474_v39 = vpop.permute.xlu1 %1353  ;;  %v8476_v42 = vpop.permute.xlu0 %1476 }
 0x334   :  { %1490 = vrot.lane.b32.xlu0 %v1416_v6, %s7114_s23 }
 0x335   :  { %v1217_v51 = vpop.permute.xlu1 %1216  ;;  %v8482_v43 = vpop.permute.xlu0 %1355 }
 0x336   :  { %1865 = vmatprep.subr.bf16.mxu1 %v1217_v51  ;;  %v1427_v28 = vsel %vm1222_vm5, %v1217_v51, %v8316_v58 }
 0x337   :  { %1508 = vrot.lane.b32.xlu1 %v1427_v28, %s7114_s23  ;;  %v1469_v28 = vsel %vm1297_vm13, %v8434_v47, %v8283_v33 }
 0x338   :  { %1488 = vrot.lane.b32.xlu0 %v1194_v45, %s7114_s23 }
 0x339   :  { %v1202_v23 = vpop.permute.xlu1 %1201  ;;  %v8491_v14 = vpop.permute.xlu0 %1474 }
 0x33a   :  { %v1421_v1 = vsel %vm1207_vm7, %v1202_v23, %v8335_v18 }
 0x33c   :  { %1562 = vrot.lane.b32.xlu0 %v1463_v34, %s7114_s23  ;;  %v1299_v34 = vsel %vm1297_vm13, %v8412_v17, %v8434_v47 }
 0x33d   :  { %v1187_v48 = vpop.permute.xlu1 %1186  ;;  %v1215_v58 = vpop.permute.xlu0 %1214 }
 0x33e   :  { %v1223_v56 = vsel %vm1222_vm5, %v1215_v58, %v1217_v51  ;;  %v1445_v51 = vsel %vm1441_vm12, %v8420_v53, %v8275_v5  ;;  %v1444_v5 = vsel %vm1441_vm12, %v8428_v0, %v8420_v53  ;;  %vm1357_vm5 = vcmask 621568  }
 0x33f   :  { %1506 = vrot.lane.b32.xlu1 %v1223_v56, %s7114_s23  ;;  %1866 = vmatpush1.bf16.msra.mxu1 %v1223_v56 }
 0x340   :  { %1560 = vrot.lane.b32.xlu0 %v8500_v15, %s7114_s23  ;;  %1867 = vmatprep.subr.bf16.mxu1 %v8337_v21  ;;  %v8520_v21 = vsel %vm1267_vm10, %v8367_v10, %v8369_v29  ;;  %v1415_v10 = vsel %vm1192_vm8, %v1187_v48, %v8343_v61 }
 0x341   :  { %v8506_v12 = vpop.permute.xlu1 %1276  ;;  %v1200_v30 = vpop.permute.xlu0 %1199 }
 0x342   :  { %v1208_v59 = vsel %vm1207_vm7, %v1200_v30, %v1202_v23  ;;  %vm1850_vm7 = vcmask 261120  }
 0x343   :  { %1496 = vrot.lane.b32.xlu1 %v1421_v1, %s7114_s23  ;;  %1868 = vmatpush1.bf16.msra.mxu1 %v1209_v36 }
 0x344   :  { %1550 = vrot.lane.b32.xlu0 %v1457_v7, %s7114_s23  ;;  %1869 = vmatprep.subr.bf16.mxu1 %v1202_v23 }
 0x345   :  { %v1335_v25 = vpop.permute.xlu1 %1334  ;;  %v1185_v40 = vpop.permute.xlu0 %1184 }
 0x346   :  { %v1193_v6 = vsel %vm1192_vm8, %v1185_v40, %v1187_v48 }
 0x347   :  { %1494 = vrot.lane.b32.xlu1 %v1208_v59, %s7114_s23  ;;  %1870 = vmatpush1.bf16.msra.mxu1 %v1208_v59 }
 0x348   :  { %1548 = vrot.lane.b32.xlu0 %v8520_v21, %s7114_s23  ;;  %1871 = vmatprep.subr.bf16.mxu1 %v8345_v55  ;;  %v8538_v55 = vsel %vm1252_vm11, %v8391_v16, %v8385_v13 }
 0x349   :  { %v8525_v50 = vpop.permute.xlu1 %1261  ;;  %v1275_v18 = vpop.permute.xlu0 %1274 }
 0x34a   :  { %v1283_v17 = vsel %vm1282_vm9, %v1275_v18, %v8506_v12  ;;  %v6735_v18 = vld [vmem:[%s10084_s3 + $0x3c] ss:$28 sps:$4 sm:$0xff]  }
 0x34b   :  { %1484 = vrot.lane.b32.xlu1 %v1415_v10, %s7114_s23  ;;  %1872 = vmatpush1.bf16.msra.mxu1 %v1194_v45  ;;  %v1329_v45 = vsel %vm1327_vm14, %v8377_v46, %v8383_v8  ;;  %v1462_v46 = vsel %vm1282_vm9, %v8506_v12, %v8375_v63  ;;  %v1374_v10 = vsel %vm1372_vm4, %v8466_v3, %v8460_v49  ;;  %vm2403_vm9 = vcmask 1046528  }
 0x34c   :  { %1538 = vrot.lane.b32.xlu0 %v1451_v38, %s7114_s23  ;;  %1873 = vmatprep.subr.bf16.mxu1 %v1187_v48 }
 0x34d   :  { %v1320_v2 = vpop.permute.xlu1 %1319  ;;  %v1337_v36 = vpop.permute.xlu0 %1336 }
 0x34e   :  { %1936 = vmatprep.subr.bf16.mxu0 %v1337_v36  ;;  %v1343_v60 = vsel %vm1342_vm6, %v1335_v25, %v1337_v36  ;;  %v1239_v25 = vsel %vm1237_vm2, %v8418_v44, %v8404_v20  ;;  %vm1578_vm6 = vcmask 441344  }
 0x34f   :  { %1482 = vrot.lane.b32.xlu1 %v1193_v6, %s7114_s23  ;;  %1874 = vmatpush1.bf16.msra.mxu1 %v1193_v6 }
 0x350   :  { %1536 = vrot.lane.b32.xlu0 %v8538_v55, %s7114_s23  ;;  %1937 = vmatpush1.bf16.msra.mxu0 %v1343_v60  ;;  %v1682_v60 = vld [vmem:[%s10085_s4 + $0x18] sm:$0xff] }
 0x351   :  { %v8545_v61 = vpop.permute.xlu1 %1246  ;;  %1875 = vmatprep.subr.bf16.mxu1 %v8156_v26  ;;  %1938 = vmatprep.subr.bf16.mxu0 %v8383_v8  ;;  %v1260_v16 = vpop.permute.xlu0 %1259 }
 0x352   :  { %v1268_v58 = vsel %vm1267_vm10, %v1260_v16, %v8525_v50  ;;  %v1685_v16 = vld [vmem:[%s10085_s4 + $0x30] sm:$0x3] }
 0x353   :  { %1574 = vrot.lane.b32.xlu1 %v1469_v28, %s7114_s23  ;;  %1876 = vmatpush1.bf16.msra.mxu1 %v8154_v11  ;;  %v1359_v28 = vsel %vm1357_vm5, %v8474_v39, %v8482_v43  ;;  %v6738_v39 = vld [vmem:[%s10084_s3 + $0x8] ss:$28 sps:$4 sm:$0xff]  }
 0x354   :  { %1526 = vrot.lane.b32.xlu0 %v1445_v51, %s7114_s23  ;;  %1939 = vmatpush1.bf16.msra.mxu0 %v1329_v45  ;;  %v6741_v51 = vld [vmem:[%s10084_s3 + $0x74] ss:$28 sps:$4 sm:$0xff]   ;;  %v1684_v45 = vld [vmem:[%s10085_s4 + $0x28] sm:$0xff] }
 0x355   :  { %v1305_v26 = vpop.permute.xlu1 %1304  ;;  %1877 = vmatprep.subr.bf16.mxu1 %v8171_v9  ;;  %v1322_v23 = vpop.permute.xlu0 %1321 }
 0x356   :  { %1940 = vmatprep.subr.bf16.mxu0 %v1322_v23  ;;  %v1328_v48 = vsel %vm1327_vm14, %v1320_v2, %v1322_v23  ;;  %v1680_v2 = vld [vmem:[%s10085_s4 + $0x8] sm:$0xff] }
 0x357   :  { %1572 = vrot.lane.b32.xlu1 %v1299_v34, %s7114_s23  ;;  %1878 = vmatpush1.bf16.msra.mxu1 %v8169_v54  ;;  %v1314_v54 = vsel %vm1004_vm3, %v8396_v62, %v8410_v35  ;;  %v1675_v23 = vld [vmem:[%s10084_s3 + $0xa8] sm:$0x11] }
 0x358   :  { %1524 = vrot.lane.b32.xlu0 %v1444_v5, %s7114_s23  ;;  %1941 = vmatpush1.bf16.msra.mxu0 %v1328_v48  ;;  %v6039_v48 = vcombine.high %v1675_v23, %v1675_v23 }
 0x359   :  { %v8572_v11 = vpop.permute.xlu1 %1231  ;;  %1879 = vmatprep.subr.bf16.mxu1 %v8351_v31  ;;  %1942 = vmatprep.subr.bf16.mxu0 %v8410_v35  ;;  %v1245_v9 = vpop.permute.xlu0 %1244  ;;  %v1456_v35 = vsel %vm1267_vm10, %v8525_v50, %v8402_v19  ;;  %vm2479_vm10 = vcmask 1040384  }
 0x35b   :  { %1556 = vrot.lane.b32.xlu1 %v1462_v46, %s7114_s23  ;;  %1880 = vmatpush2.bf16.msra.mxu1 %v8500_v15  ;;  %v1450_v15 = vsel %vm1252_vm11, %v8545_v61, %v8426_v57  ;;  %v1253_v57 = vsel %vm1252_vm11, %v1245_v9, %v8545_v61 }
 0x35c   :  { %1576 = vrot.lane.b32.xlu0 %v8283_v33, %s7114_s23  ;;  %1943 = vmatpush1.bf16.msra.mxu0 %v1314_v54 }
 0x35d   :  { %v1290_v31 = vpop.permute.xlu1 %1289  ;;  %1881 = vmatprep.subr.bf16.mxu1 %v8506_v12  ;;  %v1404_v12 = vsel %vm1402_vm15, %v8436_v41, %v8452_v4 }
 0x35e   :  { %v1307_v8 = vpop.permute.xlu0 %1306 }
 0x35f   :  { %1944 = vmatprep.subr.bf16.mxu0 %v1307_v8  ;;  %v1313_v63 = vsel %vm1004_vm3, %v1305_v26, %v1307_v8  ;;  %1554 = vrot.lane.b32.xlu1 %v1283_v17, %s7114_s23  ;;  %vm1387_vm3 = vcmask 588800   ;;  %v6748_v8 = vld [vmem:[%s10084_s3 + $0x40] ss:$28 sps:$4 sm:$0xff]  }
 0x360   :  { %1882 = vmatpush2.bf16.msra.mxu1 %v1283_v17  ;;  %1945 = vmatpush1.bf16.msra.mxu0 %v1313_v63  ;;  %v1389_v40 = vsel %vm1387_vm3, %v8458_v32, %v8454_v27  ;;  %v6732_v32 = vld [vmem:[%s10084_s3] ss:$28 sps:$4 sm:$0xff]   ;;  %v6756_v63 = vld [vmem:[%s10084_s3 + $0x14] ss:$28 sps:$4 sm:$0xff]  }
 0x361   :  { %v1430_v33 = vpop.permute.xlu1 %1429  ;;  %1883 = vmatprep.subr.bf16.mxu1 %v8369_v29  ;;  %1946 = vmatprep.subr.bf16.mxu0 %v8434_v47  ;;  %v6749_v17 = vld [vmem:[%s10084_s3 + $0x7c] ss:$28 sps:$4 sm:$0xff]  }
 0x362   :  { %v1230_v62 = vpop.permute.xlu0 %1229 }
 0x363   :  { %1544 = vrot.lane.b32.xlu1 %v1456_v35, %s7114_s23 }
 0x364   :  { %1884 = vmatpush2.bf16.msra.mxu1 %v8520_v21  ;;  %1947 = vmatpush1.bf16.msra.mxu0 %v1299_v34  ;;  %v1679_v21 = vld [vmem:[%s10085_s4] sm:$0xff] }
 0x365   :  { %v1397_v53 = vpop.permute.xlu1 %1396  ;;  %1885 = vmatprep.subr.bf16.mxu1 %v8525_v50 }
 0x366   :  { %v1292_v0 = vpop.permute.xlu0 %1291 }
 0x367   :  { %1948 = vmatprep.subr.bf16.mxu0 %v1292_v0  ;;  %v1298_v29 = vsel %vm1297_vm13, %v1290_v31, %v1292_v0  ;;  %1542 = vrot.lane.b32.xlu1 %v1268_v58, %s7114_s23  ;;  %v1468_v44 = vsel %vm1297_vm13, %v1292_v0, %v8444_v24  ;;  %v6038_v31 = vcombine.low %v1675_v23, %v1675_v23  ;;  %vm2569_vm13 = vcmask 1045504  }
 0x368   :  { %1886 = vmatpush2.bf16.msra.mxu1 %v1268_v58  ;;  %1949 = vmatpush1.bf16.msra.mxu0 %v1298_v29  ;;  %v6751_v58 = vld [vmem:[%s10084_s3 + $0x78] ss:$28 sps:$4 sm:$0xff]   ;;  %v1581_v23 = vsel %vm1578_vm6, %v8476_v42, %v8468_v37 }
 0x369   :  { %v1382_v19 = vpop.permute.xlu1 %1381  ;;  %1887 = vmatprep.subr.bf16.mxu1 %v8385_v13  ;;  %1950 = vmatprep.subr.bf16.mxu0 %v8452_v4 }
 0x36a   :  { %v1432_v47 = vpop.permute.xlu0 %1431 }
 0x36b   :  { %v1443_v56 = vsel %vm1441_vm12, %v1432_v47, %v8442_v22  ;;  %1532 = vrot.lane.b32.xlu1 %v1450_v15, %s7114_s23  ;;  %v1442_v1 = vsel %vm1441_vm12, %v1430_v33, %v1432_v47  ;;  %vm2515_vm12 = vcmask 1042432  }
 0x36c   :  { %1520 = vrot.lane.b32.xlu0 %v1443_v56, %s7114_s23  ;;  %1888 = vmatpush2.bf16.msra.mxu1 %v8538_v55  ;;  %v1683_v55 = vld [vmem:[%s10085_s4 + $0x20] sm:$0xff] }
 0x36d   :  { %1951 = vmatpush2.bf16.msra.mxu0 %v1404_v12  ;;  %v1367_v13 = vpop.permute.xlu1 %1366  ;;  %1889 = vmatprep.subr.bf16.mxu1 %v8545_v61 }
 0x36e   :  { %1952 = vmatprep.subr.bf16.mxu0 %v1397_v53  ;;  %v1395_v30 = vpop.permute.xlu0 %1394 }
 0x36f   :  { %v1403_v7 = vsel %vm1402_vm15, %v1395_v30, %v1397_v53  ;;  %1530 = vrot.lane.b32.xlu1 %v1253_v57, %s7114_s23  ;;  %v1676_v53 = vld [vmem:[%s10084_s3 + $0xb0] sm:$0x11] }
 0x370   :  { %1518 = vrot.lane.b32.xlu0 %v1442_v1, %s7114_s23  ;;  %1890 = vmatpush2.bf16.msra.mxu1 %v1253_v57 }
 0x371   :  { %1953 = vmatpush2.bf16.msra.mxu0 %v1403_v7  ;;  %v8623_v41 = vpop.permute.xlu1 %1472  ;;  %1891 = vmatprep.subr.bf16.mxu1 %v8404_v20  ;;  %v10096_v7 = vmov 0  }
 0x372   :  { %1954 = vmatprep.subr.bf16.mxu0 %v8454_v27  ;;  %v1380_v4 = vpop.permute.xlu0 %1379 }
 0x373   :  { %1522 = vrot.lane.b32.xlu1 %v8442_v22, %s7114_s23  ;;  %v1238_v22 = vsel %vm1237_vm2, %v1230_v62, %v8572_v11  ;;  %v1388_v27 = vsel %vm1387_vm3, %v1380_v4, %v1382_v19 }
 0x374   :  { %1570 = vrot.lane.b32.xlu0 %v8444_v24, %s7114_s23  ;;  %1892 = vmatpush2.bf16.msra.mxu1 %v1239_v25  ;;  %v1681_v24 = vld [vmem:[%s10085_s4 + $0x10] sm:$0xff] }
 0x375   :  { %1955 = vmatpush2.bf16.msra.mxu0 %v1389_v40  ;;  %v8637_v59 = vpop.permute.xlu1 %1470  ;;  %1893 = vmatprep.subr.bf16.mxu1 %v8572_v11  ;;  %v6745_v11 = vld [vmem:[%s10084_s3 + $0x44] ss:$28 sps:$4 sm:$0xff]  }
 0x376   :  { %1956 = vmatprep.subr.bf16.mxu0 %v1382_v19  ;;  %v1365_v20 = vpop.permute.xlu0 %1364  ;;  %v6041_v19 = vcombine.high %v1676_v53, %v1676_v53 }
 0x377   :  { %1568 = vrot.lane.b32.xlu1 %v1468_v44, %s7114_s23  ;;  %v1373_v6 = vsel %vm1372_vm4, %v1365_v20, %v1367_v13 }
 0x378   :  { %1688 = vperm.xlu0 %6542, %v1679_v21   ;;  %1894 = vmatpush2.bf16.msra.mxu1 %v1238_v22 }
 0x379   :  { %1957 = vmatpush2.bf16.msra.mxu0 %v1388_v27  ;;  %v1352_v38 = vpop.permute.xlu1 %1351 }
 0x37a   :  { %1958 = vmatprep.subr.bf16.mxu0 %v8460_v49  ;;  %v1350_v50 = vpop.permute.xlu0 %1349  ;;  %v6737_v49 = vld [vmem:[%s10084_s3 + $0x38] ss:$28 sps:$4 sm:$0xff]  }
 0x37b   :  { %1896 = vmatmul.mubr.bf16.vlgmr.msra.gmra.mxu1 %v6732_v32  ;;  %1566 = vrot.lane.b32.xlu1 %v1298_v29, %s7114_s23  ;;  %v1358_v34 = vsel %vm1357_vm5, %v1350_v50, %v1352_v38  ;;  %s7127_s23 = smov 118  }
 0x37c   :  { %1698 = vperm.xlu0 %6542, %v1681_v24   ;;  %1905 = vmatprep.mubr.bf16.mxu1 %v6735_v18 }
 0x37d   :  { %1959 = vmatpush2.bf16.msra.mxu0 %v1374_v10  ;;  %v1517_v3 = vpop.permute.xlu1 %1516 }
 0x37e   :  { %1960 = vmatprep.subr.bf16.mxu0 %v1367_v13  ;;  %v8666_v36 = vpop.permute.xlu0 %1510  ;;  %v6040_v13 = vcombine.low %v1676_v53, %v1676_v53 }
 0x37f   :  { %1693 = vperm.xlu1 %6543, %v1680_v2  }
 0x380   :  { %1708 = vperm.xlu0 %6542, %v1683_v55  }
 0x381   :  { %1961 = vmatpush2.bf16.msra.mxu0 %v1373_v6  ;;  %v1505_v5 = vpop.permute.xlu1 %1504 }
 0x382   :  { %1962 = vmatprep.subr.bf16.mxu0 %v8482_v43  ;;  %v8679_v61 = vpop.permute.xlu0 %1498  ;;  %v6743_v43 = vld [vmem:[%s10084_s3 + $0x70] ss:$28 sps:$4 sm:$0xff]  }
 0x383   :  { %1906 = vmatmul.mubr.bf16.gmra.mxu1 %v6737_v49  ;;  %1703 = vperm.xlu1 %6543, %v1682_v60  }
 0x384   :  { %1718 = vperm.xlu0 %6542, %v1685_v16   ;;  %1915 = vmatprep.mubr.bf16.mxu1 %v6741_v51  ;;  %v1582_v51 = vsel %vm1578_vm6, %v8468_v37, %v8291_v52 }
 0x385   :  { %1963 = vmatpush2.bf16.msra.mxu0 %v1359_v28  ;;  %v1493_v46 = vpop.permute.xlu1 %1492 }
 0x386   :  { %1964 = vmatprep.subr.bf16.mxu0 %v1352_v38  ;;  %v8693_v26 = vpop.permute.xlu0 %1486 }
 0x387   :  { %1713 = vperm.xlu1 %6543, %v1684_v45  }
 0x389   :  { %1965 = vmatpush2.bf16.msra.mxu0 %v1358_v34  ;;  %v8723_v62 = vpop.permute.xlu1 %1564 }
 0x38a   :  { %v8708_v9 = vpop.permute.xlu0 %1558 }
 0x38b   :  { %1916 = vmatmul.mubr.bf16.gmra.mxu1 %v6743_v43 }
 0x38c   :  { %1967 = vmatmul.mubr.bf16.vlgmr.msra.gmra.mxu0 %v6738_v39  ;;  %1925 = vmatprep.mubr.bf16.mxu1 %v6039_v48  ;;  %v1579_v39 = vsel %vm1578_vm6, %v8637_v59, %v8623_v41 }
 0x38d   :  { %1976 = vmatprep.mubr.bf16.mxu0 %v6745_v11  ;;  %v8732_v29 = vpop.permute.xlu1 %1552 }
 0x38e   :  { %v8710_v54 = vpop.permute.xlu0 %1546 }
 0x391   :  { %v8735_v12 = vpop.permute.xlu1 %1540 }
 0x392   :  { %v8721_v33 = vpop.permute.xlu0 %1534 }
 0x393   :  { %1926 = vmatmul.mubr.bf16.gmra.mxu1 %v6038_v31 }
 0x394   :  { %1977 = vmatmul.mubr.bf16.gmra.mxu0 %v6748_v8  ;;  %2037 = vmatprep.mubr.bf16.mxu1 %v6756_v63 }
 0x395   :  { %1986 = vmatprep.mubr.bf16.mxu0 %v6749_v17  ;;  %v8737_v57 = vpop.permute.xlu1 %1528 }
 0x396   :  { %v1515_v35 = vpop.permute.xlu0 %1514 }
 0x397   :  { %v1594_v0 = vsel %vm1578_vm6, %v1515_v35, %v1517_v3 }
 0x398   :  { %2005 = vmatprep.subr.bf16.mxu1 %v1594_v0 }
 0x39a   :  { %v1513_v47 = vpop.permute.xlu0 %1512 }
 0x39b   :  { %v1593_v15 = vsel %vm1578_vm6, %v1513_v47, %v1515_v35 }
 0x39c   :  { %1987 = vmatmul.mubr.bf16.gmra.mxu0 %v6751_v58  ;;  %2006 = vmatpush1.bf16.msra.mxu1 %v1593_v15 }
 0x39d   :  { %1996 = vmatprep.mubr.bf16.mxu0 %v6041_v19 }
 0x39e   :  { %v1503_v56 = vpop.permute.xlu0 %1502 }
 0x39f   :  { %v1590_v27 = vsel %vm1578_vm6, %v1503_v56, %v1505_v5 }
 0x3a2   :  { %v1501_v30 = vpop.permute.xlu0 %1500 }
 0x3a3   :  { %v1589_v24 = vsel %vm1578_vm6, %v1501_v30, %v1503_v56 }
 0x3a4   :  { %1997 = vmatmul.mubr.bf16.gmra.mxu0 %v6040_v13 }
 0x3a5   :  { %2108 = vmatprep.mubr.bf16.mxu0 %v10096_v7 }
 0x3a6   :  { %v1491_v1 = vpop.permute.xlu0 %1490 }
 0x3a9   :  { %v1509_v4 = vpop.permute.xlu1 %1508 }
 0x3aa   :  { %v1489_v25 = vpop.permute.xlu0 %1488  ;;  %v1592_v40 = vsel %vm1578_vm6, %v1509_v4, %v8666_v36  ;;  %v1586_v36 = vsel %vm1578_vm6, %v1491_v1, %v1493_v46 }
 0x3ab   :  { %2007 = vmatprep.subr.bf16.mxu1 %v1592_v40  ;;  %v1585_v49 = vsel %vm1578_vm6, %v1489_v25, %v1491_v1 }
 0x3ae   :  { %v1563_v21 = vpop.permute.xlu0 %1562 }
 0x3af   :  { %v1610_v52 = vsel %vm1578_vm6, %v1563_v21, %v8723_v62 }
 0x3b1   :  { %v1507_v20 = vpop.permute.xlu1 %1506 }
 0x3b2   :  { %v1561_v44 = vpop.permute.xlu0 %1560  ;;  %v1591_v22 = vsel %vm1578_vm6, %v1507_v20, %v1509_v4  ;;  %v6754_v4 = vld [vmem:[%s10084_s3 + $0x10] ss:$28 sps:$4 sm:$0xff]   ;;  %v6760_v20 = vld [vmem:[%s10084_s3 + $0x48] ss:$28 sps:$4 sm:$0xff]  }
 0x3b3   :  { %2008 = vmatpush1.bf16.msra.mxu1 %v1591_v22  ;;  %v1609_v37 = vsel %vm1578_vm6, %v1561_v44, %v1563_v21  ;;  %v6757_v21 = vld [vmem:[%s10084_s3 + $0x18] ss:$28 sps:$4 sm:$0xff]   ;;  %v6762_v44 = vld [vmem:[%s10084_s3 + $0x84] ss:$28 sps:$4 sm:$0xff]   ;;  %v6761_v22 = vld [vmem:[%s10084_s3 + $0x50] ss:$28 sps:$4 sm:$0xff]  }
 0x3b4   :  { %2009 = vmatprep.subr.bf16.mxu1 %v1590_v27  ;;  %v1677_v27 = vld [vmem:[%s10084_s3 + $0xb8] sm:$0x11] }
 0x3b5   :  { %v1497_v32 = vpop.permute.xlu1 %1496 }
 0x3b6   :  { %v1551_v50 = vpop.permute.xlu0 %1550  ;;  %v1588_v18 = vsel %vm1578_vm6, %v1497_v32, %v8679_v61 }
 0x3b7   :  { %2010 = vmatpush1.bf16.msra.mxu1 %v1589_v24  ;;  %v1606_v46 = vsel %vm1578_vm6, %v1551_v50, %v8732_v29  ;;  %v6765_v24 = vld [vmem:[%s10084_s3 + $0x88] ss:$28 sps:$4 sm:$0xff]  }
 0x3b8   :  { %2011 = vmatprep.subr.bf16.mxu1 %v1588_v18  ;;  %v6042_v18 = vcombine.low %v1677_v27, %v1677_v27 }
 0x3b9   :  { %v1495_v38 = vpop.permute.xlu1 %1494 }
 0x3ba   :  { %v1549_v10 = vpop.permute.xlu0 %1548  ;;  %v1587_v2 = vsel %vm1578_vm6, %v1495_v38, %v1497_v32  ;;  %v6764_v32 = vld [vmem:[%s10084_s3 + $0x80] ss:$28 sps:$4 sm:$0xff]  }
 0x3bb   :  { %2012 = vmatpush1.bf16.msra.mxu1 %v1587_v2  ;;  %v1605_v8 = vsel %vm1578_vm6, %v1549_v10, %v1551_v50  ;;  %v6043_v50 = vcombine.high %v1677_v27, %v1677_v27  ;;  %v6768_v38 = vld [vmem:[%s10084_s3 + $0xc0] ss:$0 sps:$4 sm:$0x11]  }
 0x3bc   :  { %2013 = vmatprep.subr.bf16.mxu1 %v1586_v36 }
 0x3bd   :  { %v1485_v55 = vpop.permute.xlu1 %1484 }
 0x3be   :  { %v1539_v6 = vpop.permute.xlu0 %1538  ;;  %v1584_v3 = vsel %vm1578_vm6, %v1485_v55, %v8693_v26  ;;  %v1580_v26 = vsel %vm1578_vm6, %v8623_v41, %v8491_v14 }
 0x3bf   :  { %2014 = vmatpush1.bf16.msra.mxu1 %v1585_v49  ;;  %v1602_v62 = vsel %vm1578_vm6, %v1539_v6, %v8735_v12 }
 0x3c0   :  { %2015 = vmatprep.subr.bf16.mxu1 %v1584_v3 }
 0x3c1   :  { %v1483_v60 = vpop.permute.xlu1 %1482 }
 0x3c2   :  { %v1537_v61 = vpop.permute.xlu0 %1536  ;;  %v1583_v16 = vsel %vm1578_vm6, %v1483_v60, %v1485_v55 }
 0x3c3   :  { %2016 = vmatpush1.bf16.msra.mxu1 %v1583_v16  ;;  %v1601_v0 = vsel %vm1578_vm6, %v1537_v61, %v1539_v6 }
 0x3c4   :  { %2017 = vmatprep.subr.bf16.mxu1 %v1582_v51 }
 0x3c5   :  { %v1575_v28 = vpop.permute.xlu1 %1574 }
 0x3c6   :  { %v1527_v45 = vpop.permute.xlu0 %1526 }
 0x3c7   :  { %2018 = vmatpush1.bf16.msra.mxu1 %v1581_v23  ;;  %v1598_v47 = vsel %vm1578_vm6, %v1527_v45, %v8737_v57  ;;  %v6758_v57 = vld [vmem:[%s10084_s3 + $0x4c] ss:$28 sps:$4 sm:$0xff]  }
 0x3c8   :  { %2019 = vmatprep.subr.bf16.mxu1 %v1580_v26 }
 0x3c9   :  { %v1573_v5 = vpop.permute.xlu1 %1572 }
 0x3ca   :  { %v1525_v34 = vpop.permute.xlu0 %1524  ;;  %v1613_v11 = vsel %vm1578_vm6, %v1573_v5, %v1575_v28 }
 0x3cb   :  { %2020 = vmatpush1.bf16.msra.mxu1 %v1579_v39  ;;  %v1597_v56 = vsel %vm1578_vm6, %v1525_v34, %v1527_v45 }
 0x3cc   :  { %2021 = vmatprep.subr.bf16.mxu1 %v1610_v52 }
 0x3cd   :  { %v1557_v43 = vpop.permute.xlu1 %1556 }
 0x3ce   :  { %v1577_v48 = vpop.permute.xlu0 %1576  ;;  %v1608_v14 = vsel %vm1578_vm6, %v1557_v43, %v8708_v9 }
 0x3cf   :  { %v1614_v42 = vsel %vm1578_vm6, %v1575_v28, %v1577_v48  ;;  %2022 = vmatpush2.bf16.msra.mxu1 %v1609_v37 }
 0x3d0   :  { %2088 = vmatprep.subr.bf16.mxu0 %v1614_v42  ;;  %2023 = vmatprep.subr.bf16.mxu1 %v1608_v14 }
 0x3d1   :  { %2089 = vmatpush1.bf16.msra.mxu0 %v1613_v11  ;;  %v1555_v41 = vpop.permute.xlu1 %1554 }
 0x3d2   :  { %v1607_v59 = vsel %vm1578_vm6, %v1555_v41, %v1557_v43 }
 0x3d3   :  { %2024 = vmatpush2.bf16.msra.mxu1 %v1607_v59 }
 0x3d4   :  { %2025 = vmatprep.subr.bf16.mxu1 %v1606_v46 }
 0x3d5   :  { %v1545_v31 = vpop.permute.xlu1 %1544 }
 0x3d6   :  { %v1604_v9 = vsel %vm1578_vm6, %v1545_v31, %v8710_v54 }
 0x3d7   :  { %2026 = vmatpush2.bf16.msra.mxu1 %v1605_v8 }
 0x3d8   :  { %2027 = vmatprep.subr.bf16.mxu1 %v1604_v9 }
 0x3d9   :  { %v1543_v17 = vpop.permute.xlu1 %1542 }
 0x3da   :  { %v1603_v63 = vsel %vm1578_vm6, %v1543_v17, %v1545_v31 }
 0x3db   :  { %2028 = vmatpush2.bf16.msra.mxu1 %v1603_v63 }
 0x3dc   :  { %2029 = vmatprep.subr.bf16.mxu1 %v1602_v62 }
 0x3dd   :  { %v1533_v35 = vpop.permute.xlu1 %1532 }
 0x3de   :  { %v1521_v53 = vpop.permute.xlu0 %1520  ;;  %v1600_v58 = vsel %vm1578_vm6, %v1533_v35, %v8721_v33 }
 0x3df   :  { %2030 = vmatpush2.bf16.msra.mxu1 %v1601_v0 }
 0x3e0   :  { %2031 = vmatprep.subr.bf16.mxu1 %v1600_v58 }
 0x3e1   :  { %v1531_v54 = vpop.permute.xlu1 %1530 }
 0x3e2   :  { %v1599_v29 = vsel %vm1578_vm6, %v1531_v54, %v1533_v35  ;;  %v1519_v19 = vpop.permute.xlu0 %1518 }
 0x3e3   :  { %2032 = vmatpush2.bf16.msra.mxu1 %v1599_v29  ;;  %v1595_v30 = vsel %vm1578_vm6, %v1519_v19, %v1521_v53 }
 0x3e4   :  { %2033 = vmatprep.subr.bf16.mxu1 %v1598_v47 }
 0x3e5   :  { %v1523_v15 = vpop.permute.xlu1 %1522 }
 0x3e6   :  { %v1596_v12 = vsel %vm1578_vm6, %v1521_v53, %v1523_v15  ;;  %v1571_v13 = vpop.permute.xlu0 %1570 }
 0x3e7   :  { %2034 = vmatpush2.bf16.msra.mxu1 %v1597_v56 }
 0x3e8   :  { %2035 = vmatprep.subr.bf16.mxu1 %v1596_v12 }
 0x3e9   :  { %v1569_v33 = vpop.permute.xlu1 %1568 }
 0x3ea   :  { %v1612_v1 = vsel %vm1578_vm6, %v1569_v33, %v1571_v13 }
 0x3eb   :  { %2036 = vmatpush2.bf16.msra.mxu1 %v1595_v30  ;;  %2090 = vmatprep.subr.bf16.mxu0 %v1612_v1 }
 0x3ec   :  { %4587 = vmatprep.subr.bf16.mxu1 %v10096_v7 }
 0x3ed   :  { %v1567_v25 = vpop.permute.xlu1 %1566 }
 0x3ee   :  { %v1611_v40 = vsel %vm1578_vm6, %v1567_v25, %v1569_v33  ;;  %2038 = vmatmul.mubr.bf16.vlgmr.msra.gmra.mxu1 %v6754_v4 }
 0x3ef   :  { %2091 = vmatpush1.bf16.msra.mxu0 %v1611_v40  ;;  %2047 = vmatprep.mubr.bf16.mxu1 %v6758_v57 }
 0x3f0   :  { %2407 = vmatprep.subr.bf16.mxu0 %v10096_v7 }
 0x3f2   :  { %6045 = vmatmul.mubr.msk.bf16.vlgmr.msra.gmra.mxu0 %vm1850_vm7, %v6757_v21 }
 0x3f3   :  { %2118 = vmatprep.mubr.bf16.mxu0 %v10096_v7  ;;  %v1689_v60 = vpop.permute.xlu0 %1688 }
 0x3f6   :  { %2048 = vmatmul.mubr.bf16.gmra.mxu1 %v6760_v20 }
 0x3f7   :  { %2057 = vmatprep.mubr.bf16.mxu1 %v6762_v44  ;;  %v1699_v37 = vpop.permute.xlu0 %1698 }
 0x3fa   :  { %6046 = vmatmul.mubr.msk.bf16.gmra.mxu0 %vm1850_vm7, %v6761_v22  ;;  %v1694_v45 = vpop.permute.xlu1 %1693 }
 0x3fb   :  { %2128 = vmatprep.mubr.bf16.mxu0 %v10096_v7  ;;  %v1709_v29 = vpop.permute.xlu0 %1708 }
 0x3fe   :  { %2058 = vmatmul.mubr.bf16.gmra.mxu1 %v6764_v32  ;;  %v1704_v9 = vpop.permute.xlu1 %1703 }
 0x3ff   :  { %2067 = vmatprep.mubr.bf16.mxu1 %v6043_v50  ;;  %v1719_v22 = vpop.permute.xlu0 %1718 }
 0x402   :  { %6047 = vmatmul.mubr.msk.bf16.gmra.mxu0 %vm1850_vm7, %v6765_v24  ;;  %v1714_v4 = vpop.permute.xlu1 %1713 }
 0x403   :  { %2138 = vmatprep.mubr.bf16.mxu0 %v10096_v7 }
 0x406   :  { %2068 = vmatmul.mubr.bf16.gmra.mxu1 %v6042_v18 }
 0x40a   :  { %6048 = vmatmul.mubr.msk.bf16.gmra.mxu0 %vm1850_vm7, %v6768_v38 }
 0x43b   :  { %v1897_v10 = vpop.f32.mrf.mxu1 }
 0x43c   :  { %v1898_v16 = vadd.f32 %v1897_v10, %v1689_v60 }
 0x43d   :  { %v1899_v2 = vpop.f32.mrf.mxu1 }
 0x43e   :  { %v1900_v23 = vadd.f32 %v1899_v2, %v1689_v60 }
 0x43f   :  { %v1901_v36 = vpop.f32.mrf.mxu1 }
 0x440   :  { %v1902_v39 = vadd.f32 %v1901_v36, %v1694_v45 }
 0x441   :  { %v1903_v55 = vpop.f32.mrf.mxu1 }
 0x442   :  { %v1904_v42 = vadd.f32 %v1903_v55, %v1694_v45 }
 0x443   :  { %v1907_v6 = vpop.f32.mrf.mxu1 }
 0x444   :  { %v1908_v59 = vadd.f32 %v1907_v6, %v1699_v37 }
 0x445   :  { %v1909_v49 = vpop.f32.mrf.mxu1 }
 0x446   :  { %v1910_v17 = vadd.f32 %v1909_v49, %v1699_v37 }
 0x447   :  { %v1911_v3 = vpop.f32.mrf.mxu1 }
 0x448   :  { %v1912_v53 = vadd.f32 %v1911_v3, %v1704_v9 }
 0x449   :  { %v1913_v61 = vpop.f32.mrf.mxu1 }
 0x44a   :  { %v1914_v19 = vadd.f32 %v1913_v61, %v1704_v9 }
 0x44b   :  { %v1917_v51 = vpop.f32.mrf.mxu1 }
 0x44c   :  { %v1968_v28 = vpop.f32.mrf.mxu0  ;;  %v1918_v12 = vadd.f32 %v1917_v51, %v1709_v29 }
 0x44d   :  { %v1969_v26 = vadd.f32 %v1968_v28, %v1898_v16  ;;  %v1919_v5 = vpop.f32.mrf.mxu1 }
 0x44e   :  { %v1970_v34 = vpop.f32.mrf.mxu0  ;;  %v1920_v30 = vadd.f32 %v1919_v5, %v1709_v29 }
 0x44f   :  { %v1971_v52 = vadd.f32 %v1970_v34, %v1900_v23  ;;  %v1921_v43 = vpop.f32.mrf.mxu1 }
 0x450   :  { %v1972_v48 = vpop.f32.mrf.mxu0  ;;  %v1922_v25 = vadd.f32 %v1921_v43, %v1714_v4 }
 0x451   :  { %v1973_v14 = vadd.f32 %v1972_v48, %v1902_v39  ;;  %v1923_v11 = vpop.f32.mrf.mxu1 }
 0x452   :  { %v1974_v41 = vpop.f32.mrf.mxu0  ;;  %v1924_v20 = vadd.f32 %v1923_v11, %v1714_v4 }
 0x453   :  { %v1975_v46 = vadd.f32 %v1974_v41, %v1904_v42  ;;  %v1927_v31 = vpop.f32.mrf.mxu1 }
 0x454   :  { %v1978_v8 = vpop.f32.mrf.mxu0  ;;  %v1928_v32 = vadd.f32 %v1927_v31, %v1719_v22 }
 0x455   :  { %v1979_v63 = vadd.f32 %v1978_v8, %v1908_v59  ;;  %v1929_v62 = vpop.f32.mrf.mxu1 }
 0x456   :  { %v1980_v35 = vpop.f32.mrf.mxu0  ;;  %v1930_v18 = vadd.f32 %v1929_v62, %v1719_v22 }
 0x457   :  { %v1981_v0 = vadd.f32 %v1980_v35, %v1910_v17  ;;  %v1931_v54 = vpop.f32.mrf.mxu1 }
 0x458   :  { %v1982_v58 = vpop.f32.mrf.mxu0 }
 0x459   :  { %v1983_v47 = vadd.f32 %v1982_v58, %v1912_v53  ;;  %v1932_v56 = vpop.f32.mrf.mxu1 }
 0x45a   :  { %v1984_v15 = vpop.f32.mrf.mxu0 }
 0x45b   :  { %v1985_v13 = vadd.f32 %v1984_v15, %v1914_v19 }
 0x45c   :  { %v1988_v33 = vpop.f32.mrf.mxu0 }
 0x45d   :  { %v1989_v1 = vadd.f32 %v1988_v33, %v1918_v12 }
 0x45e   :  { %v1990_v57 = vpop.f32.mrf.mxu0 }
 0x45f   :  { %v1991_v40 = vadd.f32 %v1990_v57, %v1920_v30 }
 0x460   :  { %v1992_v21 = vpop.f32.mrf.mxu0 }
 0x461   :  { %v8830_v44 = vadd.f32 %v1992_v21, %v1922_v25 }
 0x462   :  { %v1994_v27 = vpop.f32.mrf.mxu0 }
 0x463   :  { %v1995_v50 = vadd.f32 %v1994_v27, %v1924_v20 }
 0x464   :  { %v1998_v24 = vpop.f32.mrf.mxu0 }
 0x465   :  { %v8832_v38 = vadd.f32 %v1998_v24, %v1928_v32 }
 0x466   :  { %v2000_v10 = vpop.f32.mrf.mxu0 }
 0x467   :  { %v8834_v2 = vadd.f32 %v2000_v10, %v1930_v18 }
 0x468   :  { %v2002_v36 = vpop.f32.mrf.mxu0 }
 0x46a   :  { %v2003_v55 = vpop.f32.mrf.mxu0 }
 0x4ae   :  { %v2039_v6 = vpop.f32.mrf.mxu1 }
 0x4af   :  { %v2040_v61 = vadd.f32 %v2039_v6, %v1969_v26 }
 0x4b0   :  { %v2041_v49 = vpop.f32.mrf.mxu1 }
 0x4b1   :  { %v2042_v16 = vadd.f32 %v2041_v49, %v1971_v52 }
 0x4b2   :  { %v2043_v3 = vpop.f32.mrf.mxu1  ;;  %v2110_v60 = vpop.f32.mrf.mxu0 }
 0x4b3   :  { %v8836_v45 = vadd.f32 %v2110_v60, %v2040_v61  ;;  %v2044_v39 = vadd.f32 %v2043_v3, %v1973_v14 }
 0x4b4   :  { %v2045_v51 = vpop.f32.mrf.mxu1  ;;  %v2112_v28 = vpop.f32.mrf.mxu0 }
 0x4b5   :  { %v8838_v23 = vadd.f32 %v2112_v28, %v2042_v16  ;;  %v2046_v43 = vadd.f32 %v2045_v51, %v1975_v46  ;;  %v6771_v51 = vld [vmem:[%s10086_s5 + $0x28] sm:$0xff]   ;;  %v6772_v28 = vld [vmem:[%s10086_s5 + $0x20] sm:$0xff]  }
 0x4b6   :  { %v2049_v5 = vpop.f32.mrf.mxu1  ;;  %v2114_v34 = vpop.f32.mrf.mxu0 }
 0x4b7   :  { %v6634_v48 = vpack.i.bf16 %v8838_v23, %v8836_v45  ;;  %v8842_v11 = vadd.f32 %v2114_v34, %v2044_v39  ;;  %v2050_v59 = vadd.f32 %v2049_v5, %v1979_v63  ;;  %v6773_v5 = vld [vmem:[%s10086_s5 + $0x18] sm:$0xff]   ;;  %v6774_v34 = vld [vmem:[%s10086_s5 + $0x10] sm:$0xff]   ;;  %v6775_v39 = vld [vmem:[%s10086_s5 + $0x8] sm:$0xff]  }
 0x4b8   :  { %v2051_v37 = vpop.f32.mrf.mxu1  ;;  %v2116_v42 = vpop.f32.mrf.mxu0 }
 0x4b9   :  { %v8844_v41 = vadd.f32 %v2116_v42, %v2046_v43  ;;  %6635 = vrot.lane.b32.xlu1 %v6634_v48, %s7115_s24  ;;  %v2052_v31 = vadd.f32 %v2051_v37, %v1981_v0  ;;  %v6776_v43 = vld [vmem:[%s10086_s5] sm:$0xff]   ;;  %v6777_v48 = vld [vmem:[%s10086_s5 + $0x48] sm:$0x7f]  }
 0x4ba   :  { %v2053_v26 = vpop.f32.mrf.mxu1  ;;  %v2120_v52 = vpop.f32.mrf.mxu0  ;;  %v2405_v37 = vsel %vm2403_vm9, %v6777_v48, 0 }
 0x4bb   :  { %v6639_v8 = vpack.i.bf16 %v8844_v41, %v8842_v11  ;;  %v8849_v9 = vadd.f32 %v2120_v52, %v2050_v59  ;;  %v2054_v53 = vadd.f32 %v2053_v26, %v1983_v47  ;;  %v6778_v59 = vld [vmem:[%s10086_s5 + $0x40] sm:$0xff]  }
 0x4bc   :  { %v2055_v14 = vpop.f32.mrf.mxu1  ;;  %v2122_v46 = vpop.f32.mrf.mxu0 }
 0x4bd   :  { %v8851_v17 = vadd.f32 %v2122_v46, %v2052_v31  ;;  %6640 = vrot.lane.b32.xlu0 %v6639_v8, %s7115_s24  ;;  %v2056_v58 = vadd.f32 %v2055_v14, %v1985_v13 }
 0x4be   :  { %v2059_v62 = vpop.f32.mrf.mxu1  ;;  %v2124_v35 = vpop.f32.mrf.mxu0 }
 0x4bf   :  { %v6644_v54 = vpack.i.bf16 %v8851_v17, %v8849_v9  ;;  %v8856_v29 = vadd.f32 %v2124_v35, %v2054_v53  ;;  %v2060_v12 = vadd.f32 %v2059_v62, %v1989_v1 }
 0x4c0   :  { %v2061_v63 = vpop.f32.mrf.mxu1  ;;  %v2126_v0 = vpop.f32.mrf.mxu0 }
 0x4c1   :  { %v8858_v19 = vadd.f32 %v2126_v0, %v2056_v58  ;;  %6645 = vrot.lane.b32.xlu1 %v6644_v54, %s7115_s24  ;;  %v2062_v33 = vadd.f32 %v2061_v63, %v1991_v40 }
 0x4c2   :  { %v2063_v15 = vpop.f32.mrf.mxu1  ;;  %v2130_v56 = vpop.f32.mrf.mxu0 }
 0x4c3   :  { %v6649_v30 = vpack.i.bf16 %v8858_v19, %v8856_v29  ;;  %v8863_v4 = vadd.f32 %v2130_v56, %v2060_v12  ;;  %v2064_v20 = vadd.f32 %v2063_v15, %v8830_v44 }
 0x4c4   :  { %v2065_v47 = vpop.f32.mrf.mxu1  ;;  %v2132_v13 = vpop.f32.mrf.mxu0 }
 0x4c5   :  { %v8865_v57 = vadd.f32 %v2132_v13, %v2062_v33  ;;  %6650 = vrot.lane.b32.xlu0 %v6649_v30, %s7115_s24  ;;  %v2066_v22 = vadd.f32 %v2065_v47, %v1995_v50  ;;  %v6769_v50 = vld [vmem:[%s10086_s5 + $0x38] sm:$0xff]  }
 0x4c6   :  { %v2069_v25 = vpop.f32.mrf.mxu1  ;;  %v2134_v21 = vpop.f32.mrf.mxu0  ;;  %2408 = vmatpush1.bf16.msra.mxu0 %v6769_v50 }
 0x4c7   :  { %v6654_v1 = vpack.i.bf16 %v8865_v57, %v8863_v4  ;;  %v8871_v32 = vadd.f32 %v2134_v21, %v2064_v20  ;;  %v2070_v36 = vadd.f32 %v2069_v25, %v8832_v38  ;;  %v6770_v38 = vld [vmem:[%s10086_s5 + $0x30] sm:$0xff]   ;;  %2409 = vmatprep.subr.bf16.mxu0 %v10096_v7  ;;  %s7126_s5 = smov 112  }
 0x4c8   :  { %v2071_v40 = vpop.f32.mrf.mxu1  ;;  %v2136_v27 = vpop.f32.mrf.mxu0 }
 0x4c9   :  { %v8873_v24 = vadd.f32 %v2136_v27, %v2066_v22  ;;  %6655 = vrot.lane.b32.xlu1 %v6654_v1, %s7115_s24  ;;  %v2072_v55 = vadd.f32 %v2071_v40, %v8834_v2 }
 0x4ca   :  { %v2140_v18 = vpop.f32.mrf.mxu0  ;;  %v2073_v10 = vpop.f32.mrf.mxu1  ;;  %2410 = vmatpush1.bf16.msra.mxu0 %v6770_v38 }
 0x4cb   :  { %v6659_v44 = vpack.i.bf16 %v8873_v24, %v8871_v32  ;;  %v8883_v3 = vadd.f32 %v2140_v18, %v2070_v36  ;;  %2411 = vmatprep.subr.bf16.mxu0 %v10096_v7 }
 0x4cc   :  { %v2142_v6 = vpop.f32.mrf.mxu0  ;;  %v2074_v49 = vpop.f32.mrf.mxu1 }
 0x4cd   :  { %v8885_v60 = vadd.f32 %v2142_v6, %v2072_v55  ;;  %6660 = vrot.lane.b32.xlu0 %v6659_v44, %s7115_s24 }
 0x4ce   :  { %v2144_v2 = vpop.f32.mrf.mxu0  ;;  %2412 = vmatpush1.bf16.msra.mxu0 %v6771_v51 }
 0x4cf   :  { %v6664_v61 = vpack.i.bf16 %v8885_v60, %v8883_v3  ;;  %2413 = vmatprep.subr.bf16.mxu0 %v10096_v7 }
 0x4d0   :  { %v2145_v16 = vpop.f32.mrf.mxu0 }
 0x4d1   :  { %6665 = vrot.lane.b32.xlu1 %v6664_v61, %s7115_s24 }
 0x4d2   :  { %2414 = vmatpush1.bf16.msra.mxu0 %v6772_v28 }
 0x4d3   :  { %2415 = vmatprep.subr.bf16.mxu0 %v10096_v7 }
 0x4d6   :  { %2416 = vmatpush1.bf16.msra.mxu0 %v6773_v5 }
 0x4d7   :  { %2417 = vmatprep.subr.bf16.mxu0 %v10096_v7 }
 0x4da   :  { %2418 = vmatpush1.bf16.msra.mxu0 %v6774_v34 }
 0x4db   :  { %2419 = vmatprep.subr.bf16.mxu0 %v10096_v7 }
 0x4de   :  { %2420 = vmatpush1.bf16.msra.mxu0 %v6775_v39 }
 0x4df   :  { %2421 = vmatprep.subr.bf16.mxu0 %v10096_v7 }
 0x4e2   :  { %2422 = vmatpush1.bf16.msra.mxu0 %v6776_v43 }
 0x4e3   :  { %2435 = vmatprep.subr.bf16.mxu0 %v10096_v7 }
 0x4e6   :  { %2436 = vmatpush2.bf16.msra.mxu0 %v2405_v37 }
 0x4e7   :  { %2437 = vmatprep.subr.bf16.mxu0 %v10096_v7 }
 0x4ea   :  { %2438 = vmatpush2.bf16.msra.mxu0 %v6778_v59 }
 0x4eb   :  { %4875 = vmatprep.subr.bf16.mxu0 %v10096_v7 }
 0x52b   :  { %v6636_v42 = vpop.permute.xlu1 %6635 }
 0x52c   :  { %v6638_v26 = vunpack.i.h.bf16 %v6636_v42  ;;  %v6637_v52 = vunpack.i.l.bf16 %v6636_v42 }
 0x52e   :  { %v2212_v31 = vmax.f32 %v8838_v23, %v6638_v26  ;;  %v2190_v8 = vsel %vm1192_vm8, %v6637_v52, %v6638_v26 }
 0x52f   :  { %v8931_v14 = vmax.f32 %v8836_v45, %v2190_v8  ;;  %v6641_v46 = vpop.permute.xlu0 %6640 }
 0x530   :  { %v6643_v62 = vunpack.i.h.bf16 %v6641_v46  ;;  %v6642_v35 = vunpack.i.l.bf16 %v6641_v46 }
 0x531   :  { %v6669_v53 = vpack.i.bf16 %v2212_v31, %v8931_v14 }
 0x532   :  { %v2214_v58 = vmax.f32 %v8844_v41, %v6643_v62  ;;  %v2191_v54 = vsel %vm1192_vm8, %v6642_v35, %v6643_v62 }
 0x533   :  { %v2213_v63 = vmax.f32 %v8842_v11, %v2191_v54  ;;  %6670 = vrot.lane.b32.xlu0 %v6669_v53, %s7118_s27  ;;  %v6646_v23 = vpop.permute.xlu1 %6645 }
 0x534   :  { %v6648_v0 = vunpack.i.h.bf16 %v6646_v23  ;;  %v6647_v15 = vunpack.i.l.bf16 %v6646_v23 }
 0x535   :  { %v6674_v56 = vpack.i.bf16 %v2214_v58, %v2213_v63 }
 0x536   :  { %v2216_v45 = vmax.f32 %v8851_v17, %v6648_v0  ;;  %v2192_v12 = vsel %vm1192_vm8, %v6647_v15, %v6648_v0 }
 0x537   :  { %v8941_v33 = vmax.f32 %v8849_v9, %v2192_v12  ;;  %v6651_v30 = vpop.permute.xlu0 %6650  ;;  %6675 = vrot.lane.b32.xlu1 %v6674_v56, %s7118_s27 }
 0x538   :  { %v6653_v41 = vunpack.i.h.bf16 %v6651_v30  ;;  %v6652_v47 = vunpack.i.l.bf16 %v6651_v30 }
 0x539   :  { %v6679_v11 = vpack.i.bf16 %v2216_v45, %v8941_v33 }
 0x53a   :  { %v2218_v13 = vmax.f32 %v8858_v19, %v6653_v41  ;;  %v2193_v25 = vsel %vm1192_vm8, %v6652_v47, %v6653_v41 }
 0x53b   :  { %v2217_v21 = vmax.f32 %v8856_v29, %v2193_v25  ;;  %6680 = vrot.lane.b32.xlu0 %v6679_v11, %s7118_s27  ;;  %v6656_v17 = vpop.permute.xlu1 %6655 }
 0x53c   :  { %v6658_v20 = vunpack.i.h.bf16 %v6656_v17  ;;  %v6657_v22 = vunpack.i.l.bf16 %v6656_v17 }
 0x53d   :  { %v6684_v9 = vpack.i.bf16 %v2218_v13, %v2217_v21 }
 0x53e   :  { %v2220_v1 = vmax.f32 %v8865_v57, %v6658_v20  ;;  %v2194_v40 = vsel %vm1192_vm8, %v6657_v22, %v6658_v20 }
 0x53f   :  { %v8952_v27 = vmax.f32 %v8863_v4, %v2194_v40  ;;  %v6661_v18 = vpop.permute.xlu0 %6660  ;;  %6685 = vrot.lane.b32.xlu1 %v6684_v9, %s7118_s27 }
 0x540   :  { %v6663_v19 = vunpack.i.h.bf16 %v6661_v18  ;;  %v6662_v10 = vunpack.i.l.bf16 %v6661_v18 }
 0x541   :  { %v6689_v29 = vpack.i.bf16 %v2220_v1, %v8952_v27 }
 0x542   :  { %v2222_v36 = vmax.f32 %v8873_v24, %v6663_v19  ;;  %v2195_v55 = vsel %vm1192_vm8, %v6662_v10, %v6663_v19 }
 0x543   :  { %v2221_v44 = vmax.f32 %v8871_v32, %v2195_v55  ;;  %6690 = vrot.lane.b32.xlu0 %v6689_v29, %s7118_s27  ;;  %v6666_v57 = vpop.permute.xlu1 %6665 }
 0x544   :  { %v6668_v50 = vunpack.i.h.bf16 %v6666_v57  ;;  %v6667_v6 = vunpack.i.l.bf16 %v6666_v57 }
 0x545   :  { %v6694_v4 = vpack.i.bf16 %v2222_v36, %v2221_v44 }
 0x546   :  { %v2224_v49 = vmax.f32 %v8885_v60, %v6668_v50  ;;  %v2196_v38 = vsel %vm1192_vm8, %v6667_v6, %v6668_v50  ;;  %vm2390_vm8 = vcmask 244736  }
 0x547   :  { %v2223_v2 = vmax.f32 %v8883_v3, %v2196_v38  ;;  %6695 = vrot.lane.b32.xlu1 %v6694_v4, %s7118_s27 }
 0x549   :  { %v6699_v61 = vpack.i.bf16 %v2224_v49, %v2223_v2 }
 0x54b   :  { %6700 = vrot.lane.b32.xlu0 %v6699_v61, %s7118_s27 }
 0x5a5   :  { %v6671_v24 = vpop.permute.xlu0 %6670 }
 0x5a6   :  { %v6673_v16 = vunpack.i.h.bf16 %v6671_v24  ;;  %v6672_v32 = vunpack.i.l.bf16 %v6671_v24 }
 0x5a8   :  { %v2268_v28 = vsel %vm1252_vm11, %v6672_v32, %v6673_v16  ;;  %v2290_v39 = vmax.f32 %v2212_v31, %v6673_v16 }
 0x5a9   :  { %v6676_v51 = vpop.permute.xlu1 %6675  ;;  %v2289_v48 = vmax.f32 %v8931_v14, %v2268_v28 }
 0x5aa   :  { %v6678_v5 = vunpack.i.h.bf16 %v6676_v51  ;;  %v6677_v34 = vunpack.i.l.bf16 %v6676_v51 }
 0x5ac   :  { %v2292_v43 = vmax.f32 %v2214_v58, %v6678_v5  ;;  %v2269_v60 = vsel %vm1252_vm11, %v6677_v34, %v6678_v5 }
 0x5ad   :  { %v2291_v3 = vmax.f32 %v2213_v63, %v2269_v60  ;;  %v6681_v37 = vpop.permute.xlu0 %6680 }
 0x5ae   :  { %v2304_v42 = vpack.c.bf16 %v2292_v43, %v2290_v39  ;;  %v6683_v26 = vunpack.i.h.bf16 %v6681_v37  ;;  %v6682_v52 = vunpack.i.l.bf16 %v6681_v37 }
 0x5af   :  { %v2303_v59 = vpack.c.bf16 %v2291_v3, %v2289_v48 }
 0x5b0   :  { %6059 = vmatprep.mubr.msk.bf16.mxu0 %vm2390_vm8, %v2304_v42  ;;  %v2270_v46 = vsel %vm1252_vm11, %v6682_v52, %v6683_v26  ;;  %v2294_v35 = vmax.f32 %v2216_v45, %v6683_v26 }
 0x5b1   :  { %v6686_v8 = vpop.permute.xlu1 %6685  ;;  %2440 = vmatmul.mubr.bf16.vlgmr.msra.gmra.mxu0 %v2303_v59  ;;  %v2293_v54 = vmax.f32 %v8941_v33, %v2270_v46 }
 0x5b2   :  { %v6688_v62 = vunpack.i.h.bf16 %v6686_v8  ;;  %v6687_v31 = vunpack.i.l.bf16 %v6686_v8 }
 0x5b4   :  { %v2296_v53 = vmax.f32 %v2218_v13, %v6688_v62  ;;  %v2271_v58 = vsel %vm1252_vm11, %v6687_v31, %v6688_v62 }
 0x5b5   :  { %v6691_v14 = vpop.permute.xlu0 %6690  ;;  %v2295_v63 = vmax.f32 %v2217_v21, %v2271_v58 }
 0x5b6   :  { %v2306_v23 = vpack.c.bf16 %v2296_v53, %v2294_v35  ;;  %v6693_v0 = vunpack.i.h.bf16 %v6691_v14  ;;  %v6692_v15 = vunpack.i.l.bf16 %v6691_v14 }
 0x5b7   :  { %v2305_v56 = vpack.c.bf16 %v2295_v63, %v2293_v54 }
 0x5b8   :  { %6060 = vmatprep.mubr.msk.bf16.mxu0 %vm2390_vm8, %v2306_v23  ;;  %v2272_v30 = vsel %vm1252_vm11, %v6692_v15, %v6693_v0  ;;  %v2298_v45 = vmax.f32 %v2220_v1, %v6693_v0 }
 0x5b9   :  { %v6696_v12 = vpop.permute.xlu1 %6695  ;;  %2448 = vmatmul.mubr.bf16.gmra.mxu0 %v2305_v56  ;;  %v2297_v33 = vmax.f32 %v8952_v27, %v2272_v30 }
 0x5ba   :  { %v6698_v41 = vunpack.i.h.bf16 %v6696_v12  ;;  %v6697_v47 = vunpack.i.l.bf16 %v6696_v12 }
 0x5bc   :  { %v2300_v11 = vmax.f32 %v2222_v36, %v6698_v41  ;;  %v2273_v13 = vsel %vm1252_vm11, %v6697_v47, %v6698_v41 }
 0x5bd   :  { %v6701_v25 = vpop.permute.xlu0 %6700  ;;  %v2299_v21 = vmax.f32 %v2221_v44, %v2273_v13 }
 0x5be   :  { %v2308_v17 = vpack.c.bf16 %v2300_v11, %v2298_v45  ;;  %v6703_v20 = vunpack.i.h.bf16 %v6701_v25  ;;  %v6702_v22 = vunpack.i.l.bf16 %v6701_v25 }
 0x5bf   :  { %v2307_v9 = vpack.c.bf16 %v2299_v21, %v2297_v33 }
 0x5c0   :  { %v2302_v40 = vmax.f32 %v2224_v49, %v6703_v20  ;;  %6061 = vmatprep.mubr.msk.bf16.mxu0 %vm2390_vm8, %v2308_v17  ;;  %v2274_v18 = vsel %vm1252_vm11, %v6702_v22, %v6703_v20  ;;  %vm2497_vm11 = vcmask 1041408  }
 0x5c1   :  { %2456 = vmatmul.mubr.bf16.gmra.mxu0 %v2307_v9  ;;  %v2301_v10 = vmax.f32 %v2223_v2, %v2274_v18 }
 0x5c2   :  { %v2310_v19 = vpack.c.bf16 %v2302_v40, %v2302_v40 }
 0x5c3   :  { %v2309_v1 = vpack.c.bf16 %v2301_v10, %v2301_v10 }
 0x5c4   :  { %6062 = vmatprep.mubr.msk.bf16.mxu0 %vm2390_vm8, %v2310_v19 }
 0x5c9   :  { %2464 = vmatmul.mubr.bf16.gmra.mxu0 %v2309_v1 }
 0x671   :  { %v2441_v29 = vpop.f32.mrf.mxu0 }
 0x673   :  { %v2443_v36 = vpop.f32.mrf.mxu0 }
 0x675   :  { %v2444_v27 = vpop.f32.mrf.mxu0 }
 0x676   :  { %v8979_v55 = vpack.c.bf16 %v2444_v27, %v2441_v29 }
 0x677   :  { %v2446_v44 = vpop.f32.mrf.mxu0 }
 0x678   :  { %2606 = vrot.lane.b32.xlu1 %v8979_v55, %s7126_s5  ;;  %v2480_v50 = vrot.slane %v8979_v55, 7  ;;  %v2498_v38 = vrot.slane %v8979_v55, 6  ;;  %v2516_v16 = vrot.slane %v8979_v55, 5  ;;  %v2534_v34 = vrot.slane %v8979_v55, 4 }
 0x679   :  { %v2449_v57 = vpop.f32.mrf.mxu0  ;;  %v2552_v3 = vrot.slane %v8979_v55, 3  ;;  %v2570_v59 = vrot.slane %v8979_v55, 2  ;;  %v2588_v31 = vrot.slane %v8979_v55, 1 }
 0x67b   :  { %v2451_v6 = vpop.f32.mrf.mxu0 }
 0x67c   :  { %2487 = vrot.lane.b32.xlu1 %v2480_v50, %s7115_s24 }
 0x67d   :  { %v2452_v4 = vpop.f32.mrf.mxu0 }
 0x67e   :  { %v8985_v49 = vpack.c.bf16 %v2452_v4, %v2449_v57 }
 0x67f   :  { %v2454_v2 = vpop.f32.mrf.mxu0 }
 0x680   :  { %2505 = vrot.lane.b32.xlu1 %v2498_v38, %s7113_s22  ;;  %2608 = vrot.lane.b32.xlu0 %v8985_v49, %s7126_s5  ;;  %v2481_v61 = vrot.slane %v8985_v49, 7  ;;  %v2499_v28 = vrot.slane %v8985_v49, 6  ;;  %v2517_v60 = vrot.slane %v8985_v49, 5  ;;  %v2535_v26 = vrot.slane %v8985_v49, 4 }
 0x681   :  { %v2457_v24 = vpop.f32.mrf.mxu0  ;;  %v2553_v62 = vrot.slane %v8985_v49, 3  ;;  %v2571_v53 = vrot.slane %v8985_v49, 2  ;;  %v2589_v14 = vrot.slane %v8985_v49, 1 }
 0x682   :  { %v2482_v32 = vsel %vm2479_vm10, %v2480_v50, %v2481_v61  ;;  %v2500_v43 = vsel %vm2497_vm11, %v2498_v38, %v2499_v28  ;;  %v2518_v42 = vsel %vm2515_vm12, %v2516_v16, %v2517_v60  ;;  %v2536_v46 = vsel %vm676_vm0, %v2534_v34, %v2535_v26 }
 0x683   :  { %v2459_v51 = vpop.f32.mrf.mxu0  ;;  %v2554_v35 = vsel %vm677_vm1, %v2552_v3, %v2553_v62  ;;  %v2572_v58 = vsel %vm2569_vm13, %v2570_v59, %v2571_v53  ;;  %v2590_v54 = vsel %vm2403_vm9, %v2588_v31, %v2589_v14 }
 0x684   :  { %2523 = vrot.lane.b32.xlu1 %v2516_v16, %s7111_s20  ;;  %2489 = vrot.lane.b32.xlu0 %v2482_v32, %s7115_s24 }
 0x685   :  { %v2460_v5 = vpop.f32.mrf.mxu0 }
 0x686   :  { %v9036_v63 = vpack.c.bf16 %v2460_v5, %v2457_v24 }
 0x687   :  { %v2462_v39 = vpop.f32.mrf.mxu0 }
 0x688   :  { %2541 = vrot.lane.b32.xlu1 %v2534_v34, %s7121_s30  ;;  %2507 = vrot.lane.b32.xlu0 %v2500_v43, %s7113_s22  ;;  %v2483_v23 = vrot.slane %v9036_v63, 7  ;;  %v2501_v56 = vrot.slane %v9036_v63, 6  ;;  %v2519_v30 = vrot.slane %v9036_v63, 5  ;;  %v2537_v11 = vrot.slane %v9036_v63, 4 }
 0x689   :  { %v2465_v48 = vpop.f32.mrf.mxu0  ;;  %v2555_v21 = vrot.slane %v9036_v63, 3  ;;  %v2573_v9 = vrot.slane %v9036_v63, 2  ;;  %v2591_v10 = vrot.slane %v9036_v63, 1 }
 0x68a   :  { %v2474_v0 = vpack.c.bf16 %v2465_v48, %v2465_v48  ;;  %v2484_v15 = vsel %vm2479_vm10, %v2481_v61, %v2483_v23  ;;  %v2502_v12 = vsel %vm2497_vm11, %v2499_v28, %v2501_v56  ;;  %v2520_v47 = vsel %vm2515_vm12, %v2517_v60, %v2519_v30 }
 0x68b   :  { %v2467_v37 = vpop.f32.mrf.mxu0  ;;  %v2538_v25 = vsel %vm676_vm0, %v2535_v26, %v2537_v11  ;;  %v2556_v20 = vsel %vm677_vm1, %v2553_v62, %v2555_v21  ;;  %v2574_v18 = vsel %vm2569_vm13, %v2571_v53, %v2573_v9  ;;  %v2592_v29 = vsel %vm2403_vm9, %v2589_v14, %v2591_v10 }
 0x68c   :  { %2559 = vrot.lane.b32.xlu1 %v2552_v3, %s7127_s23  ;;  %2525 = vrot.lane.b32.xlu0 %v2518_v42, %s7111_s20  ;;  %v2485_v41 = vrot.slane %v2474_v0, 7  ;;  %v2503_v13 = vrot.slane %v2474_v0, 6  ;;  %v2521_v17 = vrot.slane %v2474_v0, 5  ;;  %v2539_v40 = vrot.slane %v2474_v0, 4 }
 0x68d   :  { %v2468_v52 = vpop.f32.mrf.mxu0  ;;  %v2557_v1 = vrot.slane %v2474_v0, 3  ;;  %v2575_v27 = vrot.slane %v2474_v0, 2  ;;  %v2593_v57 = vrot.slane %v2474_v0, 1 }
 0x68e   :  { %v2486_v45 = vsel %vm2479_vm10, %v2483_v23, %v2485_v41  ;;  %v2504_v33 = vsel %vm2497_vm11, %v2501_v56, %v2503_v13  ;;  %v2522_v22 = vsel %vm2515_vm12, %v2519_v30, %v2521_v17  ;;  %v2540_v19 = vsel %vm676_vm0, %v2537_v11, %v2539_v40 }
 0x68f   :  { %v2469_v8 = vpop.f32.mrf.mxu0  ;;  %v2558_v36 = vsel %vm677_vm1, %v2555_v21, %v2557_v1  ;;  %v2576_v44 = vsel %vm2569_vm13, %v2573_v9, %v2575_v27 }
 0x690   :  { %2577 = vrot.lane.b32.xlu1 %v2570_v59, %s7128_s18  ;;  %2543 = vrot.lane.b32.xlu0 %v2536_v46, %s7121_s30 }
 0x694   :  { %2595 = vrot.lane.b32.xlu1 %v2588_v31, %s7129_s19  ;;  %2561 = vrot.lane.b32.xlu0 %v2554_v35, %s7127_s23 }
 0x698   :  { %2617 = vrot.lane.b32.xlu1 %v2480_v50, %s7130_s0  ;;  %2579 = vrot.lane.b32.xlu0 %v2572_v58, %s7128_s18  ;;  %v2594_v50 = vsel %vm2403_vm9, %v2591_v10, %v2593_v57 }
 0x69c   :  { %2627 = vrot.lane.b32.xlu1 %v2498_v38, %s7131_s2  ;;  %2597 = vrot.lane.b32.xlu0 %v2590_v54, %s7129_s19 }
 0x6a0   :  { %2637 = vrot.lane.b32.xlu1 %v2516_v16, %s7110_s6  ;;  %2619 = vrot.lane.b32.xlu0 %v2482_v32, %s7130_s0 }
 0x6a4   :  { %2647 = vrot.lane.b32.xlu1 %v2534_v34, %s7118_s27  ;;  %2629 = vrot.lane.b32.xlu0 %v2500_v43, %s7131_s2 }
 0x6a8   :  { %2657 = vrot.lane.b32.xlu1 %v2552_v3, %s7117_s26  ;;  %2639 = vrot.lane.b32.xlu0 %v2518_v42, %s7110_s6 }
 0x6ac   :  { %2667 = vrot.lane.b32.xlu1 %v2570_v59, %s7116_s25  ;;  %2649 = vrot.lane.b32.xlu0 %v2536_v46, %s7118_s27 }
 0x6b0   :  { %2677 = vrot.lane.b32.xlu1 %v2588_v31, %s7112_s21  ;;  %2659 = vrot.lane.b32.xlu0 %v2554_v35, %s7117_s26 }
 0x6b4   :  { %2669 = vrot.lane.b32.xlu0 %v2572_v58, %s7116_s25  ;;  %2610 = vrot.lane.b32.xlu1 %v9036_v63, %s7126_s5 }
 0x6b8   :  { %2679 = vrot.lane.b32.xlu0 %v2590_v54, %s7112_s21  ;;  %2491 = vrot.lane.b32.xlu1 %v2484_v15, %s7115_s24 }
 0x6bc   :  { %2509 = vrot.lane.b32.xlu1 %v2502_v12, %s7113_s22  ;;  %2612 = vrot.lane.b32.xlu0 %v2474_v0, %s7126_s5 }
 0x6c0   :  { %2527 = vrot.lane.b32.xlu1 %v2520_v47, %s7111_s20  ;;  %2493 = vrot.lane.b32.xlu0 %v2486_v45, %s7115_s24 }
 0x6c4   :  { %2545 = vrot.lane.b32.xlu1 %v2538_v25, %s7121_s30  ;;  %2511 = vrot.lane.b32.xlu0 %v2504_v33, %s7113_s22 }
 0x6c8   :  { %2563 = vrot.lane.b32.xlu1 %v2556_v20, %s7127_s23  ;;  %2529 = vrot.lane.b32.xlu0 %v2522_v22, %s7111_s20 }
 0x6cc   :  { %2581 = vrot.lane.b32.xlu1 %v2574_v18, %s7128_s18  ;;  %2547 = vrot.lane.b32.xlu0 %v2540_v19, %s7121_s30 }
 0x6d0   :  { %2599 = vrot.lane.b32.xlu1 %v2592_v29, %s7129_s19  ;;  %2565 = vrot.lane.b32.xlu0 %v2558_v36, %s7127_s23 }
 0x6d4   :  { %2621 = vrot.lane.b32.xlu1 %v2484_v15, %s7130_s0  ;;  %2583 = vrot.lane.b32.xlu0 %v2576_v44, %s7128_s18 }
 0x6d8   :  { %2631 = vrot.lane.b32.xlu1 %v2502_v12, %s7131_s2  ;;  %2601 = vrot.lane.b32.xlu0 %v2594_v50, %s7129_s19 }
 0x6dc   :  { %2641 = vrot.lane.b32.xlu1 %v2520_v47, %s7110_s6  ;;  %2623 = vrot.lane.b32.xlu0 %v2486_v45, %s7130_s0 }
 0x6e0   :  { %2651 = vrot.lane.b32.xlu1 %v2538_v25, %s7118_s27  ;;  %2633 = vrot.lane.b32.xlu0 %v2504_v33, %s7131_s2 }
 0x6e4   :  { %2661 = vrot.lane.b32.xlu1 %v2556_v20, %s7117_s26  ;;  %2643 = vrot.lane.b32.xlu0 %v2522_v22, %s7110_s6 }
 0x6e8   :  { %2671 = vrot.lane.b32.xlu1 %v2574_v18, %s7116_s25  ;;  %2653 = vrot.lane.b32.xlu0 %v2540_v19, %s7118_s27 }
 0x6ea   :  { %v9094_v6 = vpop.permute.xlu1 %2606 }
 0x6ec   :  { %2681 = vrot.lane.b32.xlu1 %v2592_v29, %s7112_s21  ;;  %2663 = vrot.lane.b32.xlu0 %v2558_v36, %s7117_s26 }
 0x6ee   :  { %v2488_v4 = vpop.permute.xlu1 %2487 }
 0x6ef   :  { %v9099_v38 = vsel %vm2479_vm10, %v2474_v0, %v2488_v4 }
 0x6f0   :  { %2673 = vrot.lane.b32.xlu0 %v2576_v44, %s7116_s25 }
 0x6f2   :  { %v2506_v2 = vpop.permute.xlu1 %2505  ;;  %v9102_v61 = vpop.permute.xlu0 %2608 }
 0x6f4   :  { %2683 = vrot.lane.b32.xlu0 %v2594_v50, %s7112_s21 }
 0x6f6   :  { %v2524_v24 = vpop.permute.xlu1 %2523  ;;  %v9105_v16 = vpop.permute.xlu0 %2489 }
 0x6fa   :  { %v2542_v32 = vpop.permute.xlu1 %2541  ;;  %v9107_v51 = vpop.permute.xlu0 %2507 }
 0x6fe   :  { %v2560_v28 = vpop.permute.xlu1 %2559  ;;  %v9109_v5 = vpop.permute.xlu0 %2525 }
 0x702   :  { %v2578_v34 = vpop.permute.xlu1 %2577  ;;  %v9111_v39 = vpop.permute.xlu0 %2543 }
 0x706   :  { %v2596_v43 = vpop.permute.xlu1 %2595  ;;  %v9113_v60 = vpop.permute.xlu0 %2561 }
 0x70a   :  { %v2618_v48 = vpop.permute.xlu1 %2617  ;;  %v9115_v3 = vpop.permute.xlu0 %2579 }
 0x70e   :  { %v2628_v37 = vpop.permute.xlu1 %2627  ;;  %v9117_v42 = vpop.permute.xlu0 %2597 }
 0x712   :  { %v2638_v26 = vpop.permute.xlu1 %2637  ;;  %v9119_v52 = vpop.permute.xlu0 %2619 }
 0x716   :  { %v2648_v59 = vpop.permute.xlu1 %2647  ;;  %v9121_v8 = vpop.permute.xlu0 %2629 }
 0x71a   :  { %v2658_v46 = vpop.permute.xlu1 %2657  ;;  %v9123_v62 = vpop.permute.xlu0 %2639 }
 0x71e   :  { %v2668_v31 = vpop.permute.xlu1 %2667  ;;  %v9125_v35 = vpop.permute.xlu0 %2649 }
 0x722   :  { %v2678_v53 = vpop.permute.xlu1 %2677  ;;  %v9127_v58 = vpop.permute.xlu0 %2659 }
 0x726   :  { %v9129_v14 = vpop.permute.xlu0 %2669  ;;  %v9131_v54 = vpop.permute.xlu1 %2610 }
 0x72a   :  { %v9133_v23 = vpop.permute.xlu0 %2679  ;;  %v2492_v0 = vpop.permute.xlu1 %2491 }
 0x72e   :  { %v9135_v15 = vpop.permute.xlu1 %2509  ;;  %v2613_v56 = vpop.permute.xlu0 %2612 }
 0x72f   :  { %v9138_v12 = vsel %vm2479_vm10, %v2613_v56, %v2618_v48 }
 0x732   :  { %v9140_v30 = vpop.permute.xlu1 %2527  ;;  %v2494_v41 = vpop.permute.xlu0 %2493 }
 0x733   :  { %v2696_v47 = vsel %vm2497_vm11, %v2494_v41, %v2506_v2 }
 0x736   :  { %v9143_v45 = vpop.permute.xlu1 %2545  ;;  %v2512_v11 = vpop.permute.xlu0 %2511 }
 0x737   :  { %v9146_v13 = vsel %vm2515_vm12, %v2512_v11, %v2524_v24 }
 0x73a   :  { %v9148_v25 = vpop.permute.xlu1 %2563  ;;  %v2530_v33 = vpop.permute.xlu0 %2529 }
 0x73b   :  { %v9151_v21 = vsel %vm676_vm0, %v2530_v33, %v2542_v32 }
 0x73e   :  { %v2582_v17 = vpop.permute.xlu1 %2581  ;;  %v2548_v20 = vpop.permute.xlu0 %2547 }
 0x73f   :  { %v9154_v22 = vsel %vm677_vm1, %v2548_v20, %v2560_v28 }
 0x742   :  { %v2600_v9 = vpop.permute.xlu1 %2599  ;;  %v2566_v40 = vpop.permute.xlu0 %2565 }
 0x743   :  { %v9157_v18 = vsel %vm2569_vm13, %v2566_v40, %v2578_v34 }
 0x746   :  { %v9159_v19 = vpop.permute.xlu1 %2621  ;;  %v2584_v10 = vpop.permute.xlu0 %2583 }
 0x747   :  { %v2718_v1 = vsel %vm2403_vm9, %v2584_v10, %v2596_v43 }
 0x74a   :  { %v9162_v29 = vpop.permute.xlu1 %2631  ;;  %v9164_v36 = vpop.permute.xlu0 %2601 }
 0x74e   :  { %v9166_v27 = vpop.permute.xlu1 %2641  ;;  %v2624_v44 = vpop.permute.xlu0 %2623 }
 0x74f   :  { %v9169_v57 = vsel %vm2497_vm11, %v2624_v44, %v2628_v37 }
 0x752   :  { %v9171_v50 = vpop.permute.xlu1 %2651  ;;  %v2634_v4 = vpop.permute.xlu0 %2633 }
 0x753   :  { %v9174_v2 = vsel %vm2515_vm12, %v2634_v4, %v2638_v26 }
 0x756   :  { %v9176_v24 = vpop.permute.xlu1 %2661  ;;  %v2644_v32 = vpop.permute.xlu0 %2643 }
 0x757   :  { %v9179_v28 = vsel %vm676_vm0, %v2644_v32, %v2648_v59 }
 0x75a   :  { %v9181_v34 = vpop.permute.xlu1 %2671  ;;  %v2654_v43 = vpop.permute.xlu0 %2653 }
 0x75b   :  { %v9184_v48 = vsel %vm677_vm1, %v2654_v43, %v2658_v46 }
 0x75e   :  { %v9186_v37 = vpop.permute.xlu1 %2681  ;;  %v2664_v56 = vpop.permute.xlu0 %2663 }
 0x75f   :  { %v9189_v41 = vsel %vm2569_vm13, %v2664_v56, %v2668_v31 }
 0x762   :  { %v2674_v26 = vpop.permute.xlu0 %2673 }
 0x763   :  { %v9192_v11 = vsel %vm2403_vm9, %v2674_v26, %v2678_v53 }
 0x766   :  { %v9194_v33 = vpop.permute.xlu0 %2683 }
 0x767   :  { %7104 = dma.done.wait [#allocation3], 28224 }
 0x768   :  { %7105 = vsyncadd [#allocation3], 4294939072  ;;  %4588 = vmatpush1.bf16.msra.mxu1 %v9107_v51  ;;  %4876 = vmatpush1.bf16.msra.mxu0 %v2600_v9  ;;  %v6783_v59 = vld [vmem:[#allocation2 + $0x4] ss:$28 sps:$4 sm:$0xff]   ;;  %v6786_v51 = vld [vmem:[#allocation2 + $0xc] ss:$28 sps:$4 sm:$0xff]  }
 0x769   :  { %4589 = vmatprep.subr.bf16.mxu1 %v10096_v7  ;;  %4877 = vmatprep.subr.bf16.mxu0 %v10096_v7  ;;  %v3034_v46 = vld [vmem:[%s10088_s7 + $0xf0] sm:$0xff]  ;;  %v3035_v31 = vld [vmem:[%s10088_s7 + $0xf8] sm:$0xff]  ;;  %v3013_v20 = vld [vmem:[%s10088_s7 + $0x48] sm:$0xff]  ;;  %vm5869_vm0 = vcmask 949248   ;;  %vm5958_vm1 = vcmask 15360   ;;  %vm5960_vm14 = vcmask 9216  }
 0x76a   :  { %6779 = vset.pattern.permute.xlu0 %v10096_v7  ;;  %6780 = vset.pattern.permute.xlu1 %v10096_v7  ;;  %v3019_v53 = vld [vmem:[%s10088_s7 + $0x78] sm:$0xff]  ;;  %v3022_v9 = vld [vmem:[%s10088_s7 + $0x90] sm:$0xff]  ;;  %v3004_v4 = vld [vmem:[%s10088_s7] sm:$0xff] }
 0x76b   :  { %4619 = vmatprep.mubr.bf16.mxu1 %v6783_v59  ;;  %4907 = vmatprep.mubr.bf16.mxu0 %v6786_v51  ;;  %v3023_v40 = vld [vmem:[%s10088_s7 + $0x98] sm:$0xff]  ;;  %v6793_v44 = vld [vmem:[#allocation2 + $0x74] ss:$28 sps:$4 sm:$0xff]   ;;  %v6799_v56 = vld [vmem:[#allocation2 + $0xac] ss:$28 sps:$4 sm:$0xff]  }
 0x76c   :  { %4590 = vmatpush1.bf16.msra.mxu1 %v2696_v47  ;;  %4878 = vmatpush1.bf16.msra.mxu0 %v9117_v42  ;;  %v3018_v42 = vld [vmem:[%s10088_s7 + $0x70] sm:$0xff]  ;;  %v3031_v47 = vld [vmem:[%s10088_s7 + $0xd8] sm:$0xff]  ;;  %v6803_v51 = vld [vmem:[#allocation2 + $0xa8] ss:$28 sps:$4 sm:$0xff]  }
 0x76d   :  { %4591 = vmatprep.subr.bf16.mxu1 %v10096_v7  ;;  %4879 = vmatprep.subr.bf16.mxu0 %v10096_v7  ;;  %v6792_v10 = vld [vmem:[#allocation2 + $0x40] ss:$28 sps:$4 sm:$0xff]   ;;  %v6797_v32 = vld [vmem:[#allocation2 + $0x70] ss:$28 sps:$4 sm:$0xff]   ;;  %v6798_v43 = vld [vmem:[#allocation2 + $0x78] ss:$28 sps:$4 sm:$0xff]  }
 0x76e   :  { %3219 = vperm.xlu0 %6779, %v3034_v46   ;;  %3139 = vperm.xlu1 %6780, %v3018_v42   ;;  %v6801_v26 = vld [vmem:[#allocation2 + $0xb4] ss:$28 sps:$4 sm:$0xff]   ;;  %v6807_v42 = vld [vmem:[#allocation2 + $0xec] ss:$28 sps:$4 sm:$0xff]  }
 0x76f   :  { %v3066_v59 = vld [vmem:[%s10088_s7 + $0x1f0] sm:$0xf] }
 0x770   :  { %4592 = vmatpush1.bf16.msra.mxu1 %v2492_v0  ;;  %4880 = vmatpush1.bf16.msra.mxu0 %v2718_v1  ;;  %v3033_v0 = vld [vmem:[%s10088_s7 + $0xe8] sm:$0xff]  ;;  %v3020_v1 = vld [vmem:[%s10088_s7 + $0x80] sm:$0xff] }
 0x771   :  { %4593 = vmatprep.subr.bf16.mxu1 %v10096_v7  ;;  %4881 = vmatprep.subr.bf16.mxu0 %v10096_v7  ;;  %v6804_v46 = vld [vmem:[#allocation2 + $0xb0] ss:$28 sps:$4 sm:$0xff]  }
 0x772   :  { %3224 = vperm.xlu0 %6779, %v3035_v31   ;;  %3144 = vperm.xlu1 %6780, %v3019_v53   ;;  %v3064_v31 = vld [vmem:[%s10088_s7 + $0x1e0] sm:$0xff] }
 0x773   :  { %v6809_v53 = vld [vmem:[#allocation2 + $0xe0] ss:$28 sps:$4 sm:$0xff]  }
 0x774   :  { %4594 = vmatpush1.bf16.msra.mxu1 %v9105_v16  ;;  %4882 = vmatpush1.bf16.msra.mxu0 %v2582_v17  ;;  %v3032_v16 = vld [vmem:[%s10088_s7 + $0xe0] sm:$0xff] }
 0x775   :  { %4595 = vmatprep.subr.bf16.mxu1 %v10096_v7  ;;  %4883 = vmatprep.subr.bf16.mxu0 %v10096_v7  ;;  %v3012_v17 = vld [vmem:[%s10088_s7 + $0x40] sm:$0xff] }
 0x776   :  { %3209 = vperm.xlu0 %6779, %v3032_v16   ;;  %3214 = vperm.xlu1 %6780, %v3033_v0   ;;  %v6810_v16 = vld [vmem:[#allocation2 + $0xe8] ss:$28 sps:$4 sm:$0xff]  }
 0x777   :  { %v3065_v0 = vld [vmem:[%s10088_s7 + $0x1e8] sm:$0xff] }
 0x778   :  { %4596 = vmatpush1.bf16.msra.mxu1 %v9099_v38  ;;  %4884 = vmatpush1.bf16.msra.mxu0 %v9115_v3  ;;  %v3016_v38 = vld [vmem:[%s10088_s7 + $0x60] sm:$0xff]  ;;  %v3017_v3 = vld [vmem:[%s10088_s7 + $0x68] sm:$0xff] }
 0x779   :  { %4597 = vmatprep.subr.bf16.mxu1 %v10096_v7  ;;  %4885 = vmatprep.subr.bf16.mxu0 %v10096_v7 }
 0x77a   :  { %3129 = vperm.xlu0 %6779, %v3016_v38   ;;  %3134 = vperm.xlu1 %6780, %v3017_v3   ;;  %v6811_v38 = vld [vmem:[#allocation2 + $0x11c] ss:$28 sps:$4 sm:$0xff]   ;;  %v6813_v3 = vld [vmem:[#allocation2 + $0x124] ss:$28 sps:$4 sm:$0xff]  }
 0x77c   :  { %4598 = vmatpush1.bf16.msra.mxu1 %v9036_v63  ;;  %4886 = vmatpush1.bf16.msra.mxu0 %v9157_v18  ;;  %v3030_v63 = vld [vmem:[%s10088_s7 + $0xd0] sm:$0xff] }
 0x77d   :  { %4599 = vmatprep.subr.bf16.mxu1 %v10096_v7  ;;  %4887 = vmatprep.subr.bf16.mxu0 %v10096_v7  ;;  %v3006_v18 = vld [vmem:[%s10088_s7 + $0x10] sm:$0xff] }
 0x77e   :  { %3199 = vperm.xlu0 %6779, %v3030_v63   ;;  %3204 = vperm.xlu1 %6780, %v3031_v47   ;;  %v3062_v63 = vld [vmem:[%s10088_s7 + $0x1d0] sm:$0xff]  ;;  %v3049_v47 = vld [vmem:[%s10088_s7 + $0x168] sm:$0xff] }
 0x780   :  { %4600 = vmatpush1.bf16.msra.mxu1 %v8985_v49  ;;  %4888 = vmatpush1.bf16.msra.mxu0 %v9148_v25  ;;  %v3014_v49 = vld [vmem:[%s10088_s7 + $0x50] sm:$0xff]  ;;  %v3015_v25 = vld [vmem:[%s10088_s7 + $0x58] sm:$0xff] }
 0x781   :  { %4601 = vmatprep.subr.bf16.mxu1 %v10096_v7  ;;  %4889 = vmatprep.subr.bf16.mxu0 %v10096_v7 }
 0x782   :  { %3119 = vperm.xlu0 %6779, %v3014_v49   ;;  %3124 = vperm.xlu1 %6780, %v3015_v25   ;;  %v6815_v49 = vld [vmem:[#allocation2 + $0x118] ss:$28 sps:$4 sm:$0xff]   ;;  %v6816_v25 = vld [vmem:[#allocation2 + $0x120] ss:$28 sps:$4 sm:$0xff]  }
 0x784   :  { %4602 = vmatpush1.bf16.msra.mxu1 %v8979_v55  ;;  %4890 = vmatpush1.bf16.msra.mxu0 %v9113_v60  ;;  %v3028_v55 = vld [vmem:[%s10088_s7 + $0xc0] sm:$0xff]  ;;  %v3029_v60 = vld [vmem:[%s10088_s7 + $0xc8] sm:$0xff] }
 0x785   :  { %4603 = vmatprep.subr.bf16.mxu1 %v10096_v7  ;;  %4891 = vmatprep.subr.bf16.mxu0 %v10096_v7 }
 0x786   :  { %3189 = vperm.xlu0 %6779, %v3028_v55   ;;  %3194 = vperm.xlu1 %6780, %v3029_v60   ;;  %v3063_v55 = vld [vmem:[%s10088_s7 + $0x1d8] sm:$0xff]  ;;  %v6817_v60 = vld [vmem:[#allocation2 + $0x154] ss:$28 sps:$4 sm:$0xff]  }
 0x788   :  { %4604 = vmatpush2.bf16.msra.mxu1 %v9154_v22  ;;  %4892 = vmatpush2.bf16.msra.mxu0 %v9169_v57  ;;  %v3027_v22 = vld [vmem:[%s10088_s7 + $0xb8] sm:$0xff] }
 0x789   :  { %4605 = vmatprep.subr.bf16.mxu1 %v10096_v7  ;;  %4893 = vmatprep.subr.bf16.mxu0 %v10096_v7  ;;  %v6795_v57 = vld [vmem:[#allocation2 + $0x7c] ss:$28 sps:$4 sm:$0xff]  }
 0x78a   :  { %3109 = vperm.xlu0 %6779, %v3012_v17   ;;  %3114 = vperm.xlu1 %6780, %v3013_v20   ;;  %v6819_v17 = vld [vmem:[#allocation2 + $0x15c] ss:$28 sps:$4 sm:$0xff]   ;;  %v3060_v20 = vld [vmem:[%s10088_s7 + $0x1c0] sm:$0xff] }
 0x78c   :  { %4606 = vmatpush2.bf16.msra.mxu1 %v9143_v45  ;;  %4894 = vmatpush2.bf16.msra.mxu0 %v9159_v19  ;;  %v3026_v45 = vld [vmem:[%s10088_s7 + $0xb0] sm:$0xff] }
 0x78d   :  { %4607 = vmatprep.subr.bf16.mxu1 %v10096_v7  ;;  %4895 = vmatprep.subr.bf16.mxu0 %v10096_v7  ;;  %v6791_v19 = vld [vmem:[#allocation2 + $0x38] ss:$28 sps:$4 sm:$0xff]  }
 0x78e   :  { %3179 = vperm.xlu0 %6779, %v3026_v45   ;;  %3184 = vperm.xlu1 %6780, %v3027_v22   ;;  %v3047_v45 = vld [vmem:[%s10088_s7 + $0x158] sm:$0xff]  ;;  %v6821_v22 = vld [vmem:[#allocation2 + $0x150] ss:$28 sps:$4 sm:$0xff]  }
 0x790   :  { %4608 = vmatpush2.bf16.msra.mxu1 %v9111_v39  ;;  %4896 = vmatpush2.bf16.msra.mxu0 %v9119_v52  ;;  %v3010_v39 = vld [vmem:[%s10088_s7 + $0x30] sm:$0xff]  ;;  %v3011_v52 = vld [vmem:[%s10088_s7 + $0x38] sm:$0xff] }
 0x791   :  { %4609 = vmatprep.subr.bf16.mxu1 %v10096_v7  ;;  %4897 = vmatprep.subr.bf16.mxu0 %v10096_v7 }
 0x792   :  { %3099 = vperm.xlu0 %6779, %v3010_v39   ;;  %3104 = vperm.xlu1 %6780, %v3011_v52   ;;  %v6822_v39 = vld [vmem:[#allocation2 + $0x158] ss:$28 sps:$4 sm:$0xff]   ;;  %v3061_v52 = vld [vmem:[%s10088_s7 + $0x1c8] sm:$0xff] }
 0x794   :  { %4610 = vmatpush2.bf16.msra.mxu1 %v9151_v21  ;;  %4898 = vmatpush2.bf16.msra.mxu0 %v9138_v12  ;;  %v3024_v12 = vld [vmem:[%s10088_s7 + $0xa0] sm:$0xff]  ;;  %v3025_v21 = vld [vmem:[%s10088_s7 + $0xa8] sm:$0xff] }
 0x795   :  { %4611 = vmatprep.subr.bf16.mxu1 %v10096_v7  ;;  %4899 = vmatprep.subr.bf16.mxu0 %v10096_v7 }
 0x796   :  { %3169 = vperm.xlu0 %6779, %v3024_v12   ;;  %3174 = vperm.xlu1 %6780, %v3025_v21   ;;  %v6823_v12 = vld [vmem:[#allocation2 + $0x18c] ss:$28 sps:$4 sm:$0xff]   ;;  %v6825_v21 = vld [vmem:[#allocation2 + $0x194] ss:$28 sps:$4 sm:$0xff]  }
 0x798   :  { %4612 = vmatpush2.bf16.msra.mxu1 %v9140_v30  ;;  %4900 = vmatpush2.bf16.msra.mxu0 %v9131_v54  ;;  %v3008_v54 = vld [vmem:[%s10088_s7 + $0x20] sm:$0xff]  ;;  %v3009_v30 = vld [vmem:[%s10088_s7 + $0x28] sm:$0xff] }
 0x799   :  { %4613 = vmatprep.subr.bf16.mxu1 %v10096_v7  ;;  %4901 = vmatprep.subr.bf16.mxu0 %v10096_v7 }
 0x79a   :  { %3089 = vperm.xlu0 %6779, %v3008_v54   ;;  %3094 = vperm.xlu1 %6780, %v3009_v30   ;;  %v3058_v54 = vld [vmem:[%s10088_s7 + $0x1b0] sm:$0xff]  ;;  %v3045_v30 = vld [vmem:[%s10088_s7 + $0x148] sm:$0xff] }
 0x79c   :  { %4614 = vmatpush2.bf16.msra.mxu1 %v9109_v5  ;;  %4902 = vmatpush2.bf16.msra.mxu0 %v9102_v61  ;;  %v6781_v61 = vld [vmem:[#allocation2] ss:$28 sps:$4 sm:$0xff]   ;;  %v6784_v5 = vld [vmem:[#allocation2 + $0x8] ss:$28 sps:$4 sm:$0xff]  }
 0x79d   :  { %4615 = vmatprep.subr.bf16.mxu1 %v10096_v7  ;;  %4903 = vmatprep.subr.bf16.mxu0 %v10096_v7 }
 0x79e   :  { %3159 = vperm.xlu0 %6779, %v3022_v9   ;;  %3164 = vperm.xlu1 %6780, %v3023_v40   ;;  %v3059_v9 = vld [vmem:[%s10088_s7 + $0x1b8] sm:$0xff]  ;;  %v6829_v40 = vld [vmem:[#allocation2 + $0x1c4] ss:$28 sps:$4 sm:$0xff]  }
 0x7a0   :  { %4616 = vmatpush2.bf16.msra.mxu1 %v9146_v13  ;;  %4904 = vmatpush2.bf16.msra.mxu0 %v9094_v6  ;;  %v6787_v6 = vld [vmem:[#allocation2 + $0x3c] ss:$28 sps:$4 sm:$0xff]   ;;  %v6789_v13 = vld [vmem:[#allocation2 + $0x44] ss:$28 sps:$4 sm:$0xff]  }
 0x7a1   :  { %4617 = vmatprep.subr.bf16.mxu1 %v10096_v7  ;;  %4905 = vmatprep.subr.bf16.mxu0 %v10096_v7 }
 0x7a2   :  { %3079 = vperm.xlu0 %6779, %v3006_v18   ;;  %v3040_v18 = vld [vmem:[%s10088_s7 + $0x120] sm:$0xff] }
 0x7a4   :  { %4618 = vmatpush2.bf16.msra.mxu1 %v9135_v15  ;;  %4906 = vmatpush2.bf16.msra.mxu0 %v9164_v36  ;;  %v3007_v15 = vld [vmem:[%s10088_s7 + $0x18] sm:$0xff]  ;;  %v3021_v36 = vld [vmem:[%s10088_s7 + $0x88] sm:$0xff] }
 0x7a5   :  { %6483 = vmatprep.subr.bf16.mxu1 %v10096_v7  ;;  %5163 = vmatprep.subr.bf16.mxu0 %v10096_v7 }
 0x7a6   :  { %3084 = vperm.xlu1 %6780, %v3007_v15   ;;  %3149 = vperm.xlu0 %6779, %v3020_v1   ;;  %v6833_v15 = vld [vmem:[#allocation2 + $0x1c0] ss:$28 sps:$4 sm:$0xff]  }
 0x7a7   :  { %4620 = vmatmul.mubr.bf16.vlgmr.msra.gmra.mxu1 %v6781_v61  ;;  %4908 = vmatmul.mubr.bf16.vlgmr.msra.gmra.mxu0 %v6784_v5  ;;  %v6827_v61 = vld [vmem:[#allocation2 + $0x188] ss:$28 sps:$4 sm:$0xff]   ;;  %v6828_v5 = vld [vmem:[#allocation2 + $0x190] ss:$28 sps:$4 sm:$0xff]  }
 0x7a8   :  { %6499 = vmatpush1.bf16.msra.mxu1 %v9171_v50  ;;  %4627 = vmatprep.mubr.bf16.mxu1 %v6787_v6  ;;  %v6831_v6 = vld [vmem:[#allocation2 + $0x1cc] ss:$28 sps:$4 sm:$0xff]   ;;  %v6837_v1 = vld [vmem:[#allocation2 + $0x204] ss:$28 sps:$4 sm:$0xff]  }
 0x7a9   :  { %4915 = vmatprep.mubr.bf16.mxu0 %v6789_v13  ;;  %6484 = vmatprep.subr.bf16.mxu1 %v10096_v7  ;;  %v3056_v13 = vld [vmem:[%s10088_s7 + $0x1a0] sm:$0xff] }
 0x7aa   :  { %5164 = vmatpush1.bf16.msra.mxu0 %v9171_v50  ;;  %3154 = vperm.xlu1 %6780, %v3021_v36   ;;  %v3005_v50 = vld [vmem:[%s10088_s7 + $0x8] sm:$0xff]  ;;  %v3054_v36 = vld [vmem:[%s10088_s7 + $0x190] sm:$0xff] }
 0x7ab   :  { %5165 = vmatprep.subr.bf16.mxu0 %v10096_v7  ;;  %3069 = vperm.xlu0 %6779, %v3004_v4   ;;  %v6840_v4 = vld [vmem:[#allocation2 + $0x200] ss:$28 sps:$4 sm:$0xff]  }
 0x7ac   :  { %6500 = vmatpush1.bf16.msra.mxu1 %v9125_v35 }
 0x7ad   :  { %6485 = vmatprep.subr.bf16.mxu1 %v10096_v7 }
 0x7ae   :  { %5166 = vmatpush1.bf16.msra.mxu0 %v9125_v35  ;;  %3074 = vperm.xlu1 %6780, %v3005_v50   ;;  %v3050_v35 = vld [vmem:[%s10088_s7 + $0x170] sm:$0xff]  ;;  %v3055_v50 = vld [vmem:[%s10088_s7 + $0x198] sm:$0xff] }
 0x7af   :  { %4628 = vmatmul.mubr.bf16.gmra.mxu1 %v6791_v19  ;;  %4916 = vmatmul.mubr.bf16.gmra.mxu0 %v6792_v10  ;;  %v6834_v19 = vld [vmem:[#allocation2 + $0x1c8] ss:$28 sps:$4 sm:$0xff]   ;;  %v6835_v10 = vld [vmem:[#allocation2 + $0x1fc] ss:$28 sps:$4 sm:$0xff]  }
 0x7b0   :  { %4635 = vmatprep.mubr.bf16.mxu1 %v6793_v44  ;;  %4923 = vmatprep.mubr.bf16.mxu0 %v6795_v57  ;;  %v3041_v44 = vld [vmem:[%s10088_s7 + $0x128] sm:$0xff]  ;;  %v6839_v57 = vld [vmem:[#allocation2 + $0x1f8] ss:$28 sps:$4 sm:$0xff]  }
 0x7b1   :  { %6501 = vmatpush1.bf16.msra.mxu1 %v9179_v28  ;;  %5167 = vmatprep.subr.bf16.mxu0 %v10096_v7 }
 0x7b2   :  { %6486 = vmatprep.subr.bf16.mxu1 %v10096_v7  ;;  %5168 = vmatpush1.bf16.msra.mxu0 %v9179_v28  ;;  %v6805_v28 = vld [vmem:[#allocation2 + $0xe4] ss:$28 sps:$4 sm:$0xff]  }
 0x7b3   :  { %5169 = vmatprep.subr.bf16.mxu0 %v10096_v7  ;;  %3299 = vperm.xlu1 %6780, %v3050_v35   ;;  %v6845_v35 = vld [vmem:[#allocation2 + $0x230] ss:$28 sps:$4 sm:$0xff]  }
 0x7b4   :  { %3379 = vperm.xlu0 %6779, %v3066_v59   ;;  %v6846_v59 = vld [vmem:[#allocation2 + $0x238] ss:$28 sps:$4 sm:$0xff]  }
 0x7b5   :  { %6502 = vmatpush1.bf16.msra.mxu1 %v9166_v27 }
 0x7b6   :  { %6487 = vmatprep.subr.bf16.mxu1 %v10096_v7  ;;  %5170 = vmatpush1.bf16.msra.mxu0 %v9166_v27  ;;  %v3051_v27 = vld [vmem:[%s10088_s7 + $0x178] sm:$0xff] }
 0x7b7   :  { %4636 = vmatmul.mubr.bf16.gmra.mxu1 %v6797_v32  ;;  %4924 = vmatmul.mubr.bf16.gmra.mxu0 %v6798_v43  ;;  %v6841_v32 = vld [vmem:[#allocation2 + $0x234] ss:$28 sps:$4 sm:$0xff]   ;;  %v6843_v43 = vld [vmem:[#allocation2 + $0x23c] ss:$28 sps:$4 sm:$0xff]  }
 0x7b8   :  { %4643 = vmatprep.mubr.bf16.mxu1 %v6799_v56  ;;  %4931 = vmatprep.mubr.bf16.mxu0 %v6801_v26  ;;  %v3052_v56 = vld [vmem:[%s10088_s7 + $0x180] sm:$0xff] }
 0x7b9   :  { %6503 = vmatpush1.bf16.msra.mxu1 %v9123_v62  ;;  %5171 = vmatprep.subr.bf16.mxu0 %v10096_v7  ;;  %v3036_v26 = vld [vmem:[%s10088_s7 + $0x100] sm:$0xff] }
 0x7ba   :  { %6488 = vmatprep.subr.bf16.mxu1 %v10096_v7  ;;  %5172 = vmatpush1.bf16.msra.mxu0 %v9123_v62  ;;  %v3048_v62 = vld [vmem:[%s10088_s7 + $0x160] sm:$0xff] }
 0x7bb   :  { %5173 = vmatprep.subr.bf16.mxu0 %v10096_v7  ;;  %3369 = vperm.xlu1 %6780, %v3064_v31   ;;  %v6853_v31 = vld [vmem:[#allocation2 + $0x2a4] ss:$28 sps:$4 sm:$0xff]  }
 0x7bc   :  { %3304 = vperm.xlu0 %6779, %v3051_v27   ;;  %v6855_v27 = vld [vmem:[#allocation2 + $0x2ac] ss:$28 sps:$4 sm:$0xff]  }
 0x7bd   :  { %6504 = vmatpush1.bf16.msra.mxu1 %v9174_v2 }
 0x7be   :  { %6489 = vmatprep.subr.bf16.mxu1 %v10096_v7  ;;  %5174 = vmatpush1.bf16.msra.mxu0 %v9174_v2  ;;  %v3046_v2 = vld [vmem:[%s10088_s7 + $0x150] sm:$0xff] }
 0x7bf   :  { %4644 = vmatmul.mubr.bf16.gmra.mxu1 %v6803_v51  ;;  %4932 = vmatmul.mubr.bf16.gmra.mxu0 %v6804_v46  ;;  %v6847_v51 = vld [vmem:[#allocation2 + $0x26c] ss:$28 sps:$4 sm:$0xff]   ;;  %v6849_v46 = vld [vmem:[#allocation2 + $0x274] ss:$28 sps:$4 sm:$0xff]  }
 0x7c0   :  { %4651 = vmatprep.mubr.bf16.mxu1 %v6805_v28  ;;  %4939 = vmatprep.mubr.bf16.mxu0 %v6807_v42  ;;  %v3037_v28 = vld [vmem:[%s10088_s7 + $0x108] sm:$0xff] }
 0x7c1   :  { %6505 = vmatpush1.bf16.msra.mxu1 %v9162_v29  ;;  %5175 = vmatprep.subr.bf16.mxu0 %v10096_v7  ;;  %v6852_v42 = vld [vmem:[#allocation2 + $0x270] ss:$28 sps:$4 sm:$0xff]  }
 0x7c2   :  { %6490 = vmatprep.subr.bf16.mxu1 %v10096_v7  ;;  %3289 = vperm.xlu1 %6780, %v3048_v62   ;;  %v6858_v62 = vld [vmem:[#allocation2 + $0x2a8] ss:$28 sps:$4 sm:$0xff]  }
 0x7c3   :  { %3374 = vperm.xlu0 %6779, %v3065_v0   ;;  %5176 = vmatpush1.bf16.msra.mxu0 %v9162_v29  ;;  %v3044_v29 = vld [vmem:[%s10088_s7 + $0x140] sm:$0xff] }
 0x7c4   :  { %5177 = vmatprep.subr.bf16.mxu0 %v10096_v7 }
 0x7c5   :  { %6506 = vmatpush1.bf16.msra.mxu1 %v9121_v8 }
 0x7c6   :  { %6491 = vmatprep.subr.bf16.mxu1 %v10096_v7  ;;  %3359 = vperm.xlu1 %6780, %v3062_v63  }
 0x7c7   :  { %4652 = vmatmul.mubr.bf16.gmra.mxu1 %v6809_v53  ;;  %4940 = vmatmul.mubr.bf16.gmra.mxu0 %v6810_v16  ;;  %v6861_v53 = vld [vmem:[#allocation2 + $0x2e4] ss:$28 sps:$4 sm:$0xff]  }
 0x7c8   :  { %4659 = vmatprep.mubr.bf16.mxu1 %v6811_v38  ;;  %4947 = vmatprep.mubr.bf16.mxu0 %v6813_v3  ;;  %v6864_v16 = vld [vmem:[#allocation2 + $0x2e0] ss:$28 sps:$4 sm:$0xff]   ;;  %v6865_v38 = vld [vmem:[#allocation2 + $0x314] ss:$28 sps:$4 sm:$0xff]  }
 0x7c9   :  { %6507 = vmatpush2.bf16.msra.mxu1 %v9133_v23  ;;  %3294 = vperm.xlu0 %6779, %v3049_v47   ;;  %v6867_v3 = vld [vmem:[#allocation2 + $0x31c] ss:$28 sps:$4 sm:$0xff]  }
 0x7ca   :  { %6492 = vmatprep.subr.bf16.mxu1 %v10096_v7  ;;  %3279 = vperm.xlu1 %6780, %v3046_v2   ;;  %v6869_v2 = vld [vmem:[#allocation2 + $0x310] ss:$28 sps:$4 sm:$0xff]  }
 0x7cb   :  { %5178 = vmatpush1.bf16.msra.mxu0 %v9121_v8  ;;  %v3042_v8 = vld [vmem:[%s10088_s7 + $0x130] sm:$0xff] }
 0x7cc   :  { %5179 = vmatprep.subr.bf16.mxu0 %v10096_v7 }
 0x7cd   :  { %6508 = vmatpush2.bf16.msra.mxu1 %v9192_v11  ;;  %3364 = vperm.xlu0 %6779, %v3063_v55   ;;  %v6873_v55 = vld [vmem:[#allocation2 + $0x354] ss:$28 sps:$4 sm:$0xff]  }
 0x7ce   :  { %6493 = vmatprep.subr.bf16.mxu1 %v10096_v7  ;;  %3349 = vperm.xlu1 %6780, %v3060_v20  }
 0x7cf   :  { %4660 = vmatmul.mubr.bf16.gmra.mxu1 %v6815_v49  ;;  %4948 = vmatmul.mubr.bf16.gmra.mxu0 %v6816_v25  ;;  %v6870_v49 = vld [vmem:[#allocation2 + $0x318] ss:$28 sps:$4 sm:$0xff]   ;;  %v6871_v25 = vld [vmem:[#allocation2 + $0x34c] ss:$28 sps:$4 sm:$0xff]  }
 0x7d0   :  { %4667 = vmatprep.mubr.bf16.mxu1 %v6817_v60  ;;  %4955 = vmatprep.mubr.bf16.mxu0 %v6819_v17 }
 0x7d1   :  { %6509 = vmatpush2.bf16.msra.mxu1 %v9181_v34  ;;  %3284 = vperm.xlu0 %6779, %v3047_v45   ;;  %v6875_v45 = vld [vmem:[#allocation2 + $0x348] ss:$28 sps:$4 sm:$0xff]  }
 0x7d2   :  { %6494 = vmatprep.subr.bf16.mxu1 %v10096_v7  ;;  %3269 = vperm.xlu1 %6780, %v3044_v29   ;;  %v6876_v29 = vld [vmem:[#allocation2 + $0x350] ss:$28 sps:$4 sm:$0xff]  }
 0x7d3   :  { %5180 = vmatpush2.bf16.msra.mxu0 %v9133_v23  ;;  %v3043_v23 = vld [vmem:[%s10088_s7 + $0x138] sm:$0xff] }
 0x7d4   :  { %5181 = vmatprep.subr.bf16.mxu0 %v10096_v7 }
 0x7d5   :  { %6510 = vmatpush2.bf16.msra.mxu1 %v9129_v14  ;;  %3354 = vperm.xlu0 %6779, %v3061_v52  }
 0x7d6   :  { %6495 = vmatprep.subr.bf16.mxu1 %v10096_v7  ;;  %3339 = vperm.xlu1 %6780, %v3058_v54   ;;  %v6882_v54 = vld [vmem:[#allocation2 + $0x388] ss:$28 sps:$4 sm:$0xff]  }
 0x7d7   :  { %4668 = vmatmul.mubr.bf16.gmra.mxu1 %v6821_v22  ;;  %4956 = vmatmul.mubr.bf16.gmra.mxu0 %v6822_v39  ;;  %v6877_v22 = vld [vmem:[#allocation2 + $0x384] ss:$28 sps:$4 sm:$0xff]   ;;  %v6879_v39 = vld [vmem:[#allocation2 + $0x38c] ss:$28 sps:$4 sm:$0xff]  }
 0x7d8   :  { %4675 = vmatprep.mubr.bf16.mxu1 %v6823_v12  ;;  %4963 = vmatprep.mubr.bf16.mxu0 %v6825_v21  ;;  %v6881_v21 = vld [vmem:[#allocation2 + $0x380] ss:$28 sps:$4 sm:$0xff]  }
 0x7d9   :  { %3274 = vperm.xlu0 %6779, %v3045_v30   ;;  %6511 = vmatpush2.bf16.msra.mxu1 %v9189_v41 }
 0x7da   :  { %6496 = vmatprep.subr.bf16.mxu1 %v10096_v7  ;;  %3259 = vperm.xlu1 %6780, %v3042_v8   ;;  %v6883_v8 = vld [vmem:[#allocation2 + $0x3bc] ss:$28 sps:$4 sm:$0xff]  }
 0x7db   :  { %5182 = vmatpush2.bf16.msra.mxu0 %v9192_v11  ;;  %v3057_v11 = vld [vmem:[%s10088_s7 + $0x1a8] sm:$0xff] }
 0x7dc   :  { %5183 = vmatprep.subr.bf16.mxu0 %v10096_v7 }
 0x7dd   :  { %3344 = vperm.xlu0 %6779, %v3059_v9   ;;  %6512 = vmatpush2.bf16.msra.mxu1 %v9176_v24 }
 0x7de   :  { %3329 = vperm.xlu1 %6780, %v3056_v13   ;;  %6497 = vmatprep.subr.bf16.mxu1 %v10096_v7  ;;  %v6889_v13 = vld [vmem:[#allocation2 + $0x3f4] ss:$28 sps:$4 sm:$0xff]  }
 0x7df   :  { %4676 = vmatmul.mubr.bf16.gmra.mxu1 %v6827_v61  ;;  %4964 = vmatmul.mubr.bf16.gmra.mxu0 %v6828_v5  ;;  %v6885_v61 = vld [vmem:[#allocation2 + $0x3c4] ss:$28 sps:$4 sm:$0xff]  }
 0x7e0   :  { %4683 = vmatprep.mubr.bf16.mxu1 %v6829_v40  ;;  %4971 = vmatprep.mubr.bf16.mxu0 %v6831_v6  ;;  %v6887_v40 = vld [vmem:[#allocation2 + $0x3b8] ss:$28 sps:$4 sm:$0xff]   ;;  %v6888_v6 = vld [vmem:[#allocation2 + $0x3c0] ss:$28 sps:$4 sm:$0xff]  }
 0x7e1   :  { %3264 = vperm.xlu0 %6779, %v3043_v23   ;;  %5184 = vmatpush2.bf16.msra.mxu0 %v9181_v34  ;;  %v3038_v34 = vld [vmem:[%s10088_s7 + $0x110] sm:$0xff]  ;;  %v6891_v23 = vld [vmem:[#allocation2 + $0x3fc] ss:$28 sps:$4 sm:$0xff]  }
 0x7e2   :  { %6513 = vmatpush2.bf16.msra.mxu1 %v9127_v58  ;;  %5185 = vmatprep.subr.bf16.mxu0 %v10096_v7 }
 0x7e3   :  { %6498 = vmatprep.subr.bf16.mxu1 %v10096_v7  ;;  %3249 = vperm.xlu1 %6780, %v3040_v18  }
 0x7e5   :  { %3334 = vperm.xlu0 %6779, %v3057_v11   ;;  %5186 = vmatpush2.bf16.msra.mxu0 %v9129_v14  ;;  %v3039_v14 = vld [vmem:[%s10088_s7 + $0x118] sm:$0xff]  ;;  %v6893_v11 = vld [vmem:[#allocation2 + $0x3f0] ss:$28 sps:$4 sm:$0xff]  }
 0x7e6   :  { %5187 = vmatprep.subr.bf16.mxu0 %v10096_v7  ;;  %6514 = vmatpush2.bf16.msra.mxu1 %v9184_v48 }
 0x7e7   :  { %4684 = vmatmul.mubr.bf16.gmra.mxu1 %v6833_v15  ;;  %4972 = vmatmul.mubr.bf16.gmra.mxu0 %v6834_v19 }
 0x7e8   :  { %4691 = vmatprep.mubr.bf16.mxu1 %v6835_v10  ;;  %4979 = vmatprep.mubr.bf16.mxu0 %v6837_v1  ;;  %v6894_v10 = vld [vmem:[#allocation2 + $0x3f8] ss:$28 sps:$4 sm:$0xff]   ;;  %v6895_v1 = vld [vmem:[#allocation2 + $0x42c] ss:$28 sps:$4 sm:$0xff]  }
 0x7e9   :  { %3319 = vperm.xlu1 %6780, %v3054_v36   ;;  %3254 = vperm.xlu0 %6779, %v3041_v44   ;;  %v9511_v0 = vpop.permute.xlu0 %3219  ;;  %v9513_v63 = vpop.permute.xlu1 %3139  ;;  %v6897_v36 = vld [vmem:[#allocation2 + $0x434] ss:$28 sps:$4 sm:$0xff]  }
 0x7ea   :  { %5188 = vmatpush2.bf16.msra.mxu0 %v9189_v41  ;;  %v3053_v41 = vld [vmem:[%s10088_s7 + $0x188] sm:$0xff] }
 0x7eb   :  { %5189 = vmatprep.subr.bf16.mxu0 %v10096_v7 }
 0x7ed   :  { %3239 = vperm.xlu1 %6780, %v3038_v34   ;;  %3324 = vperm.xlu0 %6779, %v3055_v50   ;;  %v9515_v47 = vpop.permute.xlu0 %3224  ;;  %v9517_v60 = vpop.permute.xlu1 %3144 }
 0x7ee   :  { %5190 = vmatpush2.bf16.msra.mxu0 %v9176_v24  ;;  %v6851_v24 = vld [vmem:[#allocation2 + $0x268] ss:$28 sps:$4 sm:$0xff]  }
 0x7ef   :  { %4692 = vmatmul.mubr.bf16.gmra.mxu1 %v6839_v57  ;;  %4980 = vmatmul.mubr.bf16.gmra.mxu0 %v6840_v4  ;;  %v6899_v57 = vld [vmem:[#allocation2 + $0x428] ss:$28 sps:$4 sm:$0xff]   ;;  %v6900_v4 = vld [vmem:[#allocation2 + $0x430] ss:$28 sps:$4 sm:$0xff]  }
 0x7f0   :  { %4699 = vmatprep.mubr.bf16.mxu1 %v6841_v32  ;;  %4987 = vmatprep.mubr.bf16.mxu0 %v6843_v43  ;;  %v6901_v32 = vld [vmem:[#allocation2 + $0x464] ss:$28 sps:$4 sm:$0xff]   ;;  %v6903_v43 = vld [vmem:[#allocation2 + $0x46c] ss:$28 sps:$4 sm:$0xff]  }
 0x7f1   :  { %3309 = vperm.xlu1 %6780, %v3052_v56   ;;  %3244 = vperm.xlu0 %6779, %v3039_v14   ;;  %v9519_v17 = vpop.permute.xlu0 %3209  ;;  %v9521_v20 = vpop.permute.xlu1 %3214 }
 0x7f2   :  { %5191 = vmatprep.subr.bf16.mxu0 %v10096_v7 }
 0x7f3   :  { %5192 = vmatpush2.bf16.msra.mxu0 %v9127_v58  ;;  %v6857_v58 = vld [vmem:[#allocation2 + $0x2a0] ss:$28 sps:$4 sm:$0xff]  }
 0x7f4   :  { %5193 = vmatprep.subr.bf16.mxu0 %v10096_v7  ;;  %v6859_v7 = vld [vmem:[#allocation2 + $0x2dc] ss:$28 sps:$4 sm:$0xff]  }
 0x7f5   :  { %3229 = vperm.xlu1 %6780, %v3036_v26   ;;  %3314 = vperm.xlu0 %6779, %v3053_v41   ;;  %v9523_v52 = vpop.permute.xlu0 %3129  ;;  %v9525_v12 = vpop.permute.xlu1 %3134  ;;  %v6905_v26 = vld [vmem:[#allocation2 + $0x460] ss:$28 sps:$4 sm:$0xff]  }
 0x7f6   :  { %v6909_v41 = vld [vmem:[#allocation2 + $0x4a4] ss:$28 sps:$4 sm:$0xff]  }
 0x7f7   :  { %4700 = vmatmul.mubr.bf16.gmra.mxu1 %v6845_v35  ;;  %4988 = vmatmul.mubr.bf16.gmra.mxu0 %v6846_v59  ;;  %v6906_v35 = vld [vmem:[#allocation2 + $0x468] ss:$28 sps:$4 sm:$0xff]   ;;  %v6907_v59 = vld [vmem:[#allocation2 + $0x49c] ss:$28 sps:$4 sm:$0xff]  }
 0x7f8   :  { %4707 = vmatprep.mubr.bf16.mxu1 %v6847_v51  ;;  %4995 = vmatprep.mubr.bf16.mxu0 %v6849_v46 }
 0x7f9   :  { %5194 = vmatpush2.bf16.msra.mxu0 %v9184_v48  ;;  %3234 = vperm.xlu0 %6779, %v3037_v28   ;;  %v6863_v48 = vld [vmem:[#allocation2 + $0x2d8] ss:$28 sps:$4 sm:$0xff]   ;;  %v9527_v30 = vpop.permute.xlu0 %3199  ;;  %v9529_v5 = vpop.permute.xlu1 %3204 }
 0x7fa   :  { %6415 = vmatprep.subr.bf16.mxu0 %v9194_v33 }
 0x7fd   :  { %v9531_v9 = vpop.permute.xlu0 %3119  ;;  %v9533_v18 = vpop.permute.xlu1 %3124 }
 0x7ff   :  { %4708 = vmatmul.mubr.bf16.gmra.mxu1 %v6851_v24  ;;  %4996 = vmatmul.mubr.bf16.gmra.mxu0 %v6852_v42  ;;  %v6911_v24 = vld [vmem:[#allocation2 + $0x498] ss:$28 sps:$4 sm:$0xff]   ;;  %v6912_v42 = vld [vmem:[#allocation2 + $0x4a0] ss:$28 sps:$4 sm:$0xff]  }
 0x800   :  { %4715 = vmatprep.mubr.bf16.mxu1 %v6853_v31  ;;  %5003 = vmatprep.mubr.bf16.mxu0 %v6855_v27  ;;  %v6913_v31 = vld [vmem:[#allocation2 + $0x4d4] ss:$28 sps:$4 sm:$0xff]   ;;  %v6915_v27 = vld [vmem:[#allocation2 + $0x4dc] ss:$28 sps:$4 sm:$0xff]  }
 0x801   :  { %v9535_v15 = vpop.permute.xlu0 %3189  ;;  %v9537_v19 = vpop.permute.xlu1 %3194 }
 0x805   :  { %v9539_v44 = vpop.permute.xlu0 %3109  ;;  %v9541_v34 = vpop.permute.xlu1 %3114 }
 0x807   :  { %4716 = vmatmul.mubr.bf16.gmra.mxu1 %v6857_v58  ;;  %5004 = vmatmul.mubr.bf16.gmra.mxu0 %v6858_v62 }
 0x808   :  { %4723 = vmatprep.mubr.bf16.mxu1 %v6859_v7  ;;  %5011 = vmatprep.mubr.bf16.mxu0 %v6861_v53  ;;  %v6917_v7 = vld [vmem:[#allocation2 + $0x4d0] ss:$28 sps:$4 sm:$0xff]   ;;  %v6918_v53 = vld [vmem:[#allocation2 + $0x4d8] ss:$28 sps:$4 sm:$0xff]  }
 0x809   :  { %v9543_v50 = vpop.permute.xlu0 %3179  ;;  %v9545_v56 = vpop.permute.xlu1 %3184 }
 0x80d   :  { %v9547_v14 = vpop.permute.xlu0 %3099  ;;  %v9549_v51 = vpop.permute.xlu1 %3104 }
 0x80f   :  { %4724 = vmatmul.mubr.bf16.gmra.mxu1 %v6863_v48  ;;  %5012 = vmatmul.mubr.bf16.gmra.mxu0 %v6864_v16  ;;  %v6919_v16 = vld [vmem:[#allocation2 + $0x50c] ss:$28 sps:$4 sm:$0xff]  }
 0x810   :  { %4731 = vmatprep.mubr.bf16.mxu1 %v6865_v38  ;;  %5019 = vmatprep.mubr.bf16.mxu0 %v6867_v3  ;;  %v6921_v38 = vld [vmem:[#allocation2 + $0x514] ss:$28 sps:$4 sm:$0xff]  }
 0x811   :  { %v9551_v46 = vpop.permute.xlu0 %3169  ;;  %v9553_v28 = vpop.permute.xlu1 %3174 }
 0x815   :  { %v9555_v58 = vpop.permute.xlu0 %3089  ;;  %v9557_v62 = vpop.permute.xlu1 %3094 }
 0x817   :  { %4732 = vmatmul.mubr.bf16.gmra.mxu1 %v6869_v2  ;;  %5020 = vmatmul.mubr.bf16.gmra.mxu0 %v6870_v49  ;;  %v6923_v49 = vld [vmem:[#allocation2 + $0x508] ss:$28 sps:$4 sm:$0xff]  }
 0x818   :  { %4739 = vmatprep.mubr.bf16.mxu1 %v6871_v25  ;;  %5027 = vmatprep.mubr.bf16.mxu0 %v6873_v55  ;;  %v6924_v25 = vld [vmem:[#allocation2 + $0x510] ss:$28 sps:$4 sm:$0xff]  }
 0x819   :  { %v9559_v48 = vpop.permute.xlu0 %3159  ;;  %v9561_v3 = vpop.permute.xlu1 %3164 }
 0x81d   :  { %v3080_v2 = vpop.permute.xlu0 %3079 }
 0x81f   :  { %4740 = vmatmul.mubr.bf16.gmra.mxu1 %v6875_v45  ;;  %5028 = vmatmul.mubr.bf16.gmra.mxu0 %v6876_v29  ;;  %v6925_v45 = vld [vmem:[#allocation2 + $0x544] ss:$28 sps:$4 sm:$0xff]   ;;  %v6927_v29 = vld [vmem:[#allocation2 + $0x54c] ss:$28 sps:$4 sm:$0xff]  }
 0x820   :  { %4747 = vmatprep.mubr.bf16.mxu1 %v6877_v22  ;;  %5035 = vmatprep.mubr.bf16.mxu0 %v6879_v39 }
 0x821   :  { %v3085_v55 = vpop.permute.xlu1 %3084  ;;  %v9563_v22 = vpop.permute.xlu0 %3149 }
 0x825   :  { %v9565_v39 = vpop.permute.xlu1 %3154 }
 0x827   :  { %4748 = vmatmul.mubr.bf16.gmra.mxu1 %v6881_v21  ;;  %5036 = vmatmul.mubr.bf16.gmra.mxu0 %v6882_v54  ;;  %v6929_v21 = vld [vmem:[#allocation2 + $0x540] ss:$28 sps:$4 sm:$0xff]   ;;  %v6930_v54 = vld [vmem:[#allocation2 + $0x548] ss:$28 sps:$4 sm:$0xff]  }
 0x828   :  { %4755 = vmatprep.mubr.bf16.mxu1 %v6883_v8  ;;  %5043 = vmatprep.mubr.bf16.mxu0 %v6885_v61  ;;  %v6931_v8 = vld [vmem:[#allocation2 + $0x57c] ss:$28 sps:$4 sm:$0xff]   ;;  %v6933_v61 = vld [vmem:[#allocation2 + $0x584] ss:$28 sps:$4 sm:$0xff]  }
 0x82f   :  { %4756 = vmatmul.mubr.bf16.gmra.mxu1 %v6887_v40  ;;  %5044 = vmatmul.mubr.bf16.gmra.mxu0 %v6888_v6  ;;  %v3070_v40 = vpop.permute.xlu0 %3069 }
 0x830   :  { %4763 = vmatprep.mubr.bf16.mxu1 %v6889_v13  ;;  %5051 = vmatprep.mubr.bf16.mxu0 %v6891_v23 }
 0x837   :  { %4764 = vmatmul.mubr.bf16.gmra.mxu1 %v6893_v11  ;;  %5052 = vmatmul.mubr.bf16.gmra.mxu0 %v6894_v10  ;;  %v3075_v11 = vpop.permute.xlu1 %3074 }
 0x838   :  { %4771 = vmatprep.mubr.bf16.mxu1 %v6895_v1  ;;  %5059 = vmatprep.mubr.bf16.mxu0 %v6897_v36 }
 0x83f   :  { %4772 = vmatmul.mubr.bf16.gmra.mxu1 %v6899_v57  ;;  %5060 = vmatmul.mubr.bf16.gmra.mxu0 %v6900_v4 }
 0x840   :  { %4779 = vmatprep.mubr.bf16.mxu1 %v6901_v32  ;;  %5067 = vmatprep.mubr.bf16.mxu0 %v6903_v43  ;;  %v6935_v32 = vld [vmem:[#allocation2 + $0x578] ss:$28 sps:$4 sm:$0xff]   ;;  %v6936_v43 = vld [vmem:[#allocation2 + $0x580] ss:$28 sps:$4 sm:$0xff]  }
 0x847   :  { %4780 = vmatmul.mubr.bf16.gmra.mxu1 %v6905_v26  ;;  %5068 = vmatmul.mubr.bf16.gmra.mxu0 %v6906_v35  ;;  %v6937_v35 = vld [vmem:[#allocation2 + $0x5b4] ss:$28 sps:$4 sm:$0xff]  }
 0x848   :  { %4787 = vmatprep.mubr.bf16.mxu1 %v6907_v59  ;;  %5075 = vmatprep.mubr.bf16.mxu0 %v6909_v41  ;;  %v6939_v59 = vld [vmem:[#allocation2 + $0x5bc] ss:$28 sps:$4 sm:$0xff]  }
 0x84f   :  { %4788 = vmatmul.mubr.bf16.gmra.mxu1 %v6911_v24  ;;  %5076 = vmatmul.mubr.bf16.gmra.mxu0 %v6912_v42 }
 0x850   :  { %4795 = vmatprep.mubr.bf16.mxu1 %v6913_v31  ;;  %5083 = vmatprep.mubr.bf16.mxu0 %v6915_v27 }
 0x857   :  { %4796 = vmatmul.mubr.bf16.gmra.mxu1 %v6917_v7  ;;  %5084 = vmatmul.mubr.bf16.gmra.mxu0 %v6918_v53 }
 0x858   :  { %4803 = vmatprep.mubr.bf16.mxu1 %v6919_v16  ;;  %5091 = vmatprep.mubr.bf16.mxu0 %v6921_v38 }
 0x85f   :  { %4804 = vmatmul.mubr.bf16.gmra.mxu1 %v6923_v49  ;;  %5092 = vmatmul.mubr.bf16.gmra.mxu0 %v6924_v25 }
 0x860   :  { %4811 = vmatprep.mubr.bf16.mxu1 %v6925_v45  ;;  %5099 = vmatprep.mubr.bf16.mxu0 %v6927_v29  ;;  %v6941_v45 = vld [vmem:[#allocation2 + $0x5b0] ss:$28 sps:$4 sm:$0xff]   ;;  %v6942_v29 = vld [vmem:[#allocation2 + $0x5b8] ss:$28 sps:$4 sm:$0xff]  }
 0x867   :  { %v4621_v6 = vpop.f32.mrf.mxu1  ;;  %4812 = vmatmul.mubr.bf16.gmra.mxu1 %v6929_v21  ;;  %v4909_v13 = vpop.f32.mrf.mxu0  ;;  %5100 = vmatmul.mubr.bf16.gmra.mxu0 %v6930_v54  ;;  %v6943_v54 = vld [vmem:[#allocation2 + $0x5ec] ss:$28 sps:$4 sm:$0xff]  }
 0x868   :  { %v4622_v23 = vadd.f32 %v4621_v6, %v3070_v40  ;;  %4819 = vmatprep.mubr.bf16.mxu1 %v6931_v8  ;;  %5107 = vmatprep.mubr.bf16.mxu0 %v6933_v61  ;;  %v6945_v8 = vld [vmem:[#allocation2 + $0x5f4] ss:$28 sps:$4 sm:$0xff]  }
 0x869   :  { %v4623_v10 = vpop.f32.mrf.mxu1  ;;  %v4911_v1 = vpop.f32.mrf.mxu0 }
 0x86a   :  { %v9567_v36 = vadd.f32 %v4909_v13, %v4622_v23 }
 0x86b   :  { %v4624_v57 = vpop.f32.mrf.mxu1  ;;  %v4912_v4 = vpop.f32.mrf.mxu0 }
 0x86c   :  { %v4625_v26 = vadd.f32 %v4624_v57, %v3075_v11 }
 0x86d   :  { %v4626_v41 = vpop.f32.mrf.mxu1  ;;  %v4914_v24 = vpop.f32.mrf.mxu0 }
 0x86e   :  { %v9569_v42 = vadd.f32 %v4912_v4, %v4625_v26  ;;  %v6947_v4 = vld [vmem:[#allocation2 + $0x5e8] ss:$28 sps:$4 sm:$0xff]  }
 0x86f   :  { %v4629_v31 = vpop.f32.mrf.mxu1  ;;  %4820 = vmatmul.mubr.bf16.gmra.mxu1 %v6935_v32  ;;  %v4917_v27 = vpop.f32.mrf.mxu0  ;;  %5108 = vmatmul.mubr.bf16.gmra.mxu0 %v6936_v43  ;;  %v6948_v32 = vld [vmem:[#allocation2 + $0x5f0] ss:$28 sps:$4 sm:$0xff]   ;;  %v6951_v26 = vld [vmem:[#allocation2 + $0x624] ss:$28 sps:$4 sm:$0xff]  }
 0x870   :  { %v4630_v7 = vadd.f32 %v4629_v31, %v3080_v2  ;;  %4827 = vmatprep.mubr.bf16.mxu1 %v6937_v35  ;;  %5115 = vmatprep.mubr.bf16.mxu0 %v6939_v59  ;;  %v6954_v35 = vld [vmem:[#allocation2 + $0x62c] ss:$28 sps:$4 sm:$0xff]  }
 0x871   :  { %v4631_v53 = vpop.f32.mrf.mxu1  ;;  %v4919_v16 = vpop.f32.mrf.mxu0 }
 0x872   :  { %v9571_v38 = vadd.f32 %v4917_v27, %v4630_v7 }
 0x873   :  { %v4632_v49 = vpop.f32.mrf.mxu1  ;;  %v4920_v25 = vpop.f32.mrf.mxu0 }
 0x874   :  { %v4633_v21 = vadd.f32 %v4632_v49, %v3085_v55 }
 0x875   :  { %v4634_v61 = vpop.f32.mrf.mxu1  ;;  %v4922_v40 = vpop.f32.mrf.mxu0 }
 0x876   :  { %v9573_v6 = vadd.f32 %v4920_v25, %v4633_v21  ;;  %v6949_v25 = vld [vmem:[#allocation2 + $0x620] ss:$28 sps:$4 sm:$0xff]  }
 0x877   :  { %v4637_v13 = vpop.f32.mrf.mxu1  ;;  %4828 = vmatmul.mubr.bf16.gmra.mxu1 %v6941_v45  ;;  %v4925_v2 = vpop.f32.mrf.mxu0  ;;  %5116 = vmatmul.mubr.bf16.gmra.mxu0 %v6942_v29  ;;  %v6952_v45 = vld [vmem:[#allocation2 + $0x628] ss:$28 sps:$4 sm:$0xff]   ;;  %v6957_v21 = vld [vmem:[#allocation2 + $0x65c] ss:$28 sps:$4 sm:$0xff]  }
 0x878   :  { %v4638_v23 = vadd.f32 %v4637_v13, %v9555_v58  ;;  %4835 = vmatprep.mubr.bf16.mxu1 %v6943_v54  ;;  %5123 = vmatprep.mubr.bf16.mxu0 %v6945_v8  ;;  %v6960_v54 = vld [vmem:[#allocation2 + $0x664] ss:$28 sps:$4 sm:$0xff]  }
 0x879   :  { %v4639_v11 = vpop.f32.mrf.mxu1  ;;  %v4927_v10 = vpop.f32.mrf.mxu0 }
 0x87a   :  { %v9576_v1 = vadd.f32 %v4925_v2, %v4638_v23 }
 0x87b   :  { %v4640_v57 = vpop.f32.mrf.mxu1  ;;  %v4928_v55 = vpop.f32.mrf.mxu0 }
 0x87c   :  { %v4641_v43 = vadd.f32 %v4640_v57, %v9557_v62 }
 0x87d   :  { %v4642_v59 = vpop.f32.mrf.mxu1  ;;  %v4930_v41 = vpop.f32.mrf.mxu0 }
 0x87e   :  { %v9579_v24 = vadd.f32 %v4928_v55, %v4641_v43  ;;  %v6955_v55 = vld [vmem:[#allocation2 + $0x658] ss:$28 sps:$4 sm:$0xff]  }
 0x87f   :  { %v4645_v31 = vpop.f32.mrf.mxu1  ;;  %4836 = vmatmul.mubr.bf16.gmra.mxu1 %v6947_v4  ;;  %v4933_v58 = vpop.f32.mrf.mxu0  ;;  %5124 = vmatmul.mubr.bf16.gmra.mxu0 %v6948_v32  ;;  %v6958_v4 = vld [vmem:[#allocation2 + $0x660] ss:$28 sps:$4 sm:$0xff]   ;;  %v6963_v43 = vld [vmem:[#allocation2 + $0x694] ss:$28 sps:$4 sm:$0xff]  }
 0x880   :  { %v4646_v27 = vadd.f32 %v4645_v31, %v9547_v14  ;;  %4843 = vmatprep.mubr.bf16.mxu1 %v6951_v26  ;;  %5131 = vmatprep.mubr.bf16.mxu0 %v6954_v35  ;;  %v6966_v26 = vld [vmem:[#allocation2 + $0x69c] ss:$28 sps:$4 sm:$0xff]   ;;  %v9593_v31 = vpop.permute.xlu0 %3379 }
 0x881   :  { %v4647_v7 = vpop.f32.mrf.mxu1  ;;  %v4935_v53 = vpop.f32.mrf.mxu0 }
 0x882   :  { %v9582_v16 = vadd.f32 %v4933_v58, %v4646_v27  ;;  %v9596_v7 = vpop.permute.xlu1 %3299 }
 0x883   :  { %v4648_v49 = vpop.f32.mrf.mxu1  ;;  %v4936_v62 = vpop.f32.mrf.mxu0 }
 0x884   :  { %v4649_v29 = vadd.f32 %v4648_v49, %v9549_v51  ;;  %v3000_v49 = vld [vmem:[#allocation2 + $0x6c8] sm:$0x33] }
 0x885   :  { %v4650_v8 = vpop.f32.mrf.mxu1  ;;  %v4938_v61 = vpop.f32.mrf.mxu0 }
 0x886   :  { %v9585_v40 = vadd.f32 %v4936_v62, %v4649_v29  ;;  %v3001_v62 = vld [vmem:[#allocation2 + $0x6d0] sm:$0x33]  ;;  %v6281_v61 = vcombine.high %v3000_v49, %v3000_v49 }
 0x887   :  { %v4653_v13 = vpop.f32.mrf.mxu1  ;;  %4844 = vmatmul.mubr.bf16.gmra.mxu1 %v6949_v25  ;;  %v4941_v14 = vpop.f32.mrf.mxu0  ;;  %5132 = vmatmul.mubr.bf16.gmra.mxu0 %v6952_v45 }
 0x888   :  { %10097 = vst [vmem:[#allocation6_spill] sm:$0xff] %v9585_v40  ;;  %v4654_v2 = vadd.f32 %v4653_v13, %v9539_v44  ;;  %4851 = vmatprep.mubr.bf16.mxu1 %v6957_v21  ;;  %5139 = vmatprep.mubr.bf16.mxu0 %v6960_v54  ;;  %v6961_v21 = vld [vmem:[#allocation2 + $0x690] ss:$28 sps:$4 sm:$0xff]   ;;  %v6964_v54 = vld [vmem:[#allocation2 + $0x698] ss:$28 sps:$4 sm:$0xff]   ;;  %v6283_v13 = vcombine.high %v3001_v62, %v3001_v62 }
 0x889   :  { %v4655_v23 = vpop.f32.mrf.mxu1  ;;  %v4943_v11 = vpop.f32.mrf.mxu0 }
 0x88a   :  { %v9588_v10 = vadd.f32 %v4941_v14, %v4654_v2  ;;  %v9601_v14 = vpop.permute.xlu0 %3304  ;;  %v9605_v11 = vpop.permute.xlu1 %3369 }
 0x88b   :  { %v4656_v57 = vpop.f32.mrf.mxu1  ;;  %v4944_v51 = vpop.f32.mrf.mxu0 }
 0x88c   :  { %v4657_v32 = vadd.f32 %v4656_v57, %v9541_v34 }
 0x88d   :  { %v4658_v35 = vpop.f32.mrf.mxu1  ;;  %v4946_v59 = vpop.f32.mrf.mxu0 }
 0x88e   :  { %v9591_v41 = vadd.f32 %v4944_v51, %v4657_v32  ;;  %v6280_v59 = vcombine.low %v3000_v49, %v3000_v49 }
 0x88f   :  { %v4661_v44 = vpop.f32.mrf.mxu1  ;;  %4852 = vmatmul.mubr.bf16.gmra.mxu1 %v6955_v55  ;;  %v4949_v58 = vpop.f32.mrf.mxu0  ;;  %5140 = vmatmul.mubr.bf16.gmra.mxu0 %v6958_v4 }
 0x890   :  { %v4662_v27 = vadd.f32 %v4661_v44, %v9531_v9  ;;  %4859 = vmatprep.mubr.bf16.mxu1 %v6963_v43  ;;  %5147 = vmatprep.mubr.bf16.mxu0 %v6966_v26  ;;  %v9610_v43 = vpop.permute.xlu0 %3374  ;;  %v6282_v44 = vcombine.low %v3001_v62, %v3001_v62 }
 0x891   :  { %v4663_v53 = vpop.f32.mrf.mxu1  ;;  %v4951_v34 = vpop.f32.mrf.mxu0 }
 0x892   :  { %v9598_v25 = vadd.f32 %v4949_v58, %v4662_v27  ;;  %v6973_v27 = vld [vmem:[#allocation2 + $0x14] ss:$28 sps:$4 sm:$0xff]   ;;  %v9613_v34 = vpop.permute.xlu1 %3289 }
 0x893   :  { %v4664_v45 = vpop.f32.mrf.mxu1  ;;  %v4952_v29 = vpop.f32.mrf.mxu0  ;;  %v6976_v53 = vld [vmem:[#allocation2 + $0xf4] ss:$28 sps:$4 sm:$0xff]  }
 0x894   :  { %v4665_v8 = vadd.f32 %v4664_v45, %v9533_v18  ;;  %v9618_v49 = vpop.permute.xlu0 %3294 }
 0x895   :  { %v4666_v9 = vpop.f32.mrf.mxu1  ;;  %v4954_v2 = vpop.f32.mrf.mxu0 }
 0x896   :  { %v9603_v23 = vadd.f32 %v4952_v29, %v4665_v8 }
 0x897   :  { %v4669_v57 = vpop.f32.mrf.mxu1  ;;  %4860 = vmatmul.mubr.bf16.gmra.mxu1 %v6961_v21  ;;  %v4957_v51 = vpop.f32.mrf.mxu0  ;;  %5148 = vmatmul.mubr.bf16.gmra.mxu0 %v6964_v54 }
 0x898   :  { %v4670_v55 = vadd.f32 %v4669_v57, %v9523_v52  ;;  %4867 = vmatprep.mubr.bf16.mxu1 %v6281_v61  ;;  %5155 = vmatprep.mubr.bf16.mxu0 %v6283_v13  ;;  %v9622_v13 = vpop.permute.xlu1 %3359  ;;  %v6971_v57 = vld [vmem:[#allocation2 + $0x10] ss:$28 sps:$4 sm:$0xff]  }
 0x899   :  { %v4671_v4 = vpop.f32.mrf.mxu1  ;;  %v4959_v18 = vpop.f32.mrf.mxu0 }
 0x89a   :  { %v9608_v32 = vadd.f32 %v4957_v51, %v4670_v55  ;;  %v6974_v51 = vld [vmem:[#allocation2 + $0xf0] ss:$28 sps:$4 sm:$0xff]  }
 0x89b   :  { %v4672_v26 = vpop.f32.mrf.mxu1  ;;  %v4960_v35 = vpop.f32.mrf.mxu0  ;;  %v6979_v4 = vld [vmem:[#allocation2 + $0x4c] ss:$28 sps:$4 sm:$0xff]  }
 0x89c   :  { %v4673_v58 = vadd.f32 %v4672_v26, %v9525_v12  ;;  %v6982_v18 = vld [vmem:[#allocation2 + $0x12c] ss:$28 sps:$4 sm:$0xff]  }
 0x89d   :  { %v4674_v45 = vpop.f32.mrf.mxu1  ;;  %v4962_v52 = vpop.f32.mrf.mxu0 }
 0x89e   :  { %v9615_v29 = vadd.f32 %v4960_v35, %v4673_v58 }
 0x89f   :  { %v4677_v21 = vpop.f32.mrf.mxu1  ;;  %4868 = vmatmul.mubr.bf16.gmra.mxu1 %v6280_v59  ;;  %v4965_v54 = vpop.f32.mrf.mxu0  ;;  %5156 = vmatmul.mubr.bf16.gmra.mxu0 %v6282_v44 }
 0x8a0   :  { %v4678_v8 = vadd.f32 %v4677_v21, %v9513_v63  ;;  %5195 = vmatprep.mubr.bf16.mxu0 %v6973_v27  ;;  %5227 = vmatprep.mubr.bf16.mxu1 %v6976_v53  ;;  %v9627_v59 = vpop.permute.xlu0 %3364  ;;  %v9630_v53 = vpop.permute.xlu1 %3279 }
 0x8a1   :  { %v4679_v62 = vpop.f32.mrf.mxu1  ;;  %v4967_v12 = vpop.f32.mrf.mxu0 }
 0x8a2   :  { %v9620_v61 = vadd.f32 %v4965_v54, %v4678_v8  ;;  %v6977_v8 = vld [vmem:[#allocation2 + $0x48] ss:$28 sps:$4 sm:$0xff]  }
 0x8a3   :  { %v4680_v9 = vpop.f32.mrf.mxu1  ;;  %v4968_v2 = vpop.f32.mrf.mxu0  ;;  %v6980_v62 = vld [vmem:[#allocation2 + $0x128] ss:$28 sps:$4 sm:$0xff]  }
 0x8a4   :  { %v4681_v55 = vadd.f32 %v4680_v9, %v9517_v60  ;;  %v6985_v9 = vld [vmem:[#allocation2 + $0x84] ss:$28 sps:$4 sm:$0xff]  }
 0x8a5   :  { %v4682_v26 = vpop.f32.mrf.mxu1  ;;  %v4970_v63 = vpop.f32.mrf.mxu0 }
 0x8a6   :  { %v9625_v35 = vadd.f32 %v4968_v2, %v4681_v55  ;;  %v9637_v2 = vpop.permute.xlu0 %3284 }
 0x8a7   :  { %v4685_v44 = vpop.f32.mrf.mxu1  ;;  %v4973_v58 = vpop.f32.mrf.mxu0  ;;  %5196 = vmatmul.mubr.bf16.vlgmr.msra.gmra.mxu0 %v6971_v57  ;;  %5228 = vmatmul.mubr.bf16.vlgmr.msra.gmra.mxu1 %v6974_v51 }
 0x8a8   :  { %10098 = vst [vmem:[#allocation7_spill] sm:$0xff] %v9625_v35  ;;  %v4686_v27 = vadd.f32 %v4685_v44, %v9563_v22  ;;  %5203 = vmatprep.mubr.bf16.mxu0 %v6979_v4  ;;  %5235 = vmatprep.mubr.bf16.mxu1 %v6982_v18  ;;  %v6988_v22 = vld [vmem:[#allocation2 + $0x164] ss:$28 sps:$4 sm:$0xff]  }
 0x8a9   :  { %v4687_v45 = vpop.f32.mrf.mxu1  ;;  %v4975_v60 = vpop.f32.mrf.mxu0  ;;  %6416 = vmatpush3.bf16.msra.mxu0 %v9194_v33 }
 0x8aa   :  { %v9633_v52 = vadd.f32 %v4973_v58, %v4686_v27  ;;  %6417 = vmatprep.subr.bf16.mxu0 %v9186_v37  ;;  %v9642_v33 = vpop.permute.xlu1 %3349  ;;  %v9647_v58 = vpop.permute.xlu0 %3354  ;;  %v6983_v45 = vld [vmem:[#allocation2 + $0x80] ss:$28 sps:$4 sm:$0xff]  }
 0x8ab   :  { %v4688_v21 = vpop.f32.mrf.mxu1  ;;  %v4976_v54 = vpop.f32.mrf.mxu0  ;;  %v6986_v60 = vld [vmem:[#allocation2 + $0x160] ss:$28 sps:$4 sm:$0xff]  }
 0x8ac   :  { %10099 = vst [vmem:[#allocation8_spill] sm:$0xff] %v9633_v52  ;;  %v4689_v12 = vadd.f32 %v4688_v21, %v9565_v39 }
 0x8ad   :  { %v4690_v57 = vpop.f32.mrf.mxu1  ;;  %v4978_v51 = vpop.f32.mrf.mxu0  ;;  %6418 = vmatpush3.bf16.msra.mxu0 %v9186_v37 }
 0x8ae   :  { %v9640_v55 = vadd.f32 %v4976_v54, %v4689_v12  ;;  %v6991_v54 = vld [vmem:[#allocation2 + $0xbc] ss:$28 sps:$4 sm:$0xff]  }
 0x8af   :  { %v4693_v4 = vpop.f32.mrf.mxu1  ;;  %v4981_v18 = vpop.f32.mrf.mxu0  ;;  %5204 = vmatmul.mubr.bf16.gmra.mxu0 %v6977_v8  ;;  %5236 = vmatmul.mubr.bf16.gmra.mxu1 %v6980_v62  ;;  %v6994_v12 = vld [vmem:[#allocation2 + $0x19c] ss:$28 sps:$4 sm:$0xff]  }
 0x8b0   :  { %10100 = vst [vmem:[#allocation9_spill] sm:$0xff] %v9640_v55  ;;  %v4694_v26 = vadd.f32 %v4693_v4, %v9559_v48  ;;  %5211 = vmatprep.mubr.bf16.mxu0 %v6985_v9  ;;  %5243 = vmatprep.mubr.bf16.mxu1 %v6988_v22  ;;  %v9650_v8 = vpop.permute.xlu1 %3269  ;;  %v9655_v4 = vpop.permute.xlu0 %3274  ;;  %v7022_v55 = vld [vmem:[#allocation2 + $0x2ec] ss:$28 sps:$4 sm:$0xff]  }
 0x8b1   :  { %v4695_v39 = vpop.f32.mrf.mxu1  ;;  %v4983_v63 = vpop.f32.mrf.mxu0 }
 0x8b2   :  { %v9645_v44 = vadd.f32 %v4981_v18, %v4694_v26 }
 0x8b3   :  { %v4696_v27 = vpop.f32.mrf.mxu1  ;;  %v4984_v37 = vpop.f32.mrf.mxu0 }
 0x8b4   :  { %10101 = vst [vmem:[#allocation10_spill] sm:$0xff] %v9645_v44  ;;  %v4697_v21 = vadd.f32 %v4696_v27, %v9561_v3  ;;  %v9659_v39 = vpop.permute.xlu1 %3339  ;;  %v7018_v44 = vld [vmem:[#allocation2 + $0x1d8] ss:$28 sps:$4 sm:$0xff]  }
 0x8b5   :  { %v4698_v62 = vpop.f32.mrf.mxu1  ;;  %v4986_v48 = vpop.f32.mrf.mxu0 }
 0x8b6   :  { %v9652_v9 = vadd.f32 %v4984_v37, %v4697_v21  ;;  %v6989_v37 = vld [vmem:[#allocation2 + $0xb8] ss:$28 sps:$4 sm:$0xff]  }
 0x8b7   :  { %v4701_v22 = vpop.f32.mrf.mxu1  ;;  %v4989_v57 = vpop.f32.mrf.mxu0  ;;  %5212 = vmatmul.mubr.bf16.gmra.mxu0 %v6983_v45  ;;  %5244 = vmatmul.mubr.bf16.gmra.mxu1 %v6986_v60  ;;  %v6992_v21 = vld [vmem:[#allocation2 + $0x198] ss:$28 sps:$4 sm:$0xff]  }
 0x8b8   :  { %10102 = vst [vmem:[#allocation11_spill] sm:$0xff] %v9652_v9  ;;  %v4702_v51 = vadd.f32 %v4701_v22, %v9551_v46  ;;  %5219 = vmatprep.mubr.bf16.mxu0 %v6991_v54  ;;  %5251 = vmatprep.mubr.bf16.mxu1 %v6994_v12  ;;  %v6997_v45 = vld [vmem:[#allocation2 + $0x1d4] ss:$28 sps:$4 sm:$0xff]   ;;  %v9664_v12 = vpop.permute.xlu0 %3344 }
 0x8b9   :  { %v4703_v18 = vpop.f32.mrf.mxu1  ;;  %v4991_v3 = vpop.f32.mrf.mxu0  ;;  %v6998_v60 = vld [vmem:[#allocation2 + $0x18] ss:$28 sps:$4 sm:$0xff]  }
 0x8ba   :  { %v9657_v26 = vadd.f32 %v4989_v57, %v4702_v51  ;;  %v9668_v51 = vpop.permute.xlu1 %3259  ;;  %v7008_v9 = vld [vmem:[#allocation2 + $0xf8] ss:$28 sps:$4 sm:$0xff]  }
 0x8bb   :  { %v4704_v63 = vpop.f32.mrf.mxu1  ;;  %v4992_v27 = vpop.f32.mrf.mxu0 }
 0x8bc   :  { %10103 = vst [vmem:[#allocation12_spill] sm:$0xff] %v9657_v26  ;;  %v4705_v62 = vadd.f32 %v4704_v63, %v9553_v28 }
 0x8bd   :  { %v4706_v48 = vpop.f32.mrf.mxu1  ;;  %v4994_v46 = vpop.f32.mrf.mxu0 }
 0x8be   :  { %v9662_v54 = vadd.f32 %v4992_v27, %v4705_v62  ;;  %v5839_v27 = vld [vmem:[%s10090_s9 + $0x8] sm:$0x3] }
 0x8bf   :  { %v4709_v22 = vpop.f32.mrf.mxu1  ;;  %v4997_v18 = vpop.f32.mrf.mxu0  ;;  %5220 = vmatmul.mubr.bf16.gmra.mxu0 %v6989_v37  ;;  %5252 = vmatmul.mubr.bf16.gmra.mxu1 %v6992_v21  ;;  %v5838_v37 = vld [vmem:[%s10090_s9] sm:$0xff]  ;;  %v7002_v48 = vld [vmem:[#allocation2 + $0x20c] ss:$28 sps:$4 sm:$0xff]  }
 0x8c0   :  { %10104 = vst [vmem:[#allocation13_spill] sm:$0xff] %v9662_v54  ;;  %v4710_v57 = vadd.f32 %v4709_v22, %v9543_v50  ;;  %5259 = vmatprep.mubr.bf16.mxu1 %v6997_v45  ;;  %6419 = vmatprep.mubr.msk.bf16.mxu0 %vm1850_vm7, %v6998_v60  ;;  %v6995_v50 = vld [vmem:[#allocation2 + $0x1d0] ss:$28 sps:$4 sm:$0xff]   ;;  %v7003_v46 = vld [vmem:[#allocation2 + $0x88] ss:$28 sps:$4 sm:$0xff]   ;;  %v9679_v22 = vpop.permute.xlu0 %3264 }
 0x8c1   :  { %v4711_v28 = vpop.f32.mrf.mxu1  ;;  %v4999_v3 = vpop.f32.mrf.mxu0  ;;  %v6999_v45 = vld [vmem:[#allocation2 + $0x50] ss:$28 sps:$4 sm:$0xff]   ;;  %5847 = vperm.xlu0 %6779, %v5839_v27   ;;  %5842 = vperm.xlu1 %6780, %v5838_v37  }
 0x8c2   :  { %v9670_v63 = vadd.f32 %v4997_v18, %v4710_v57  ;;  %v9683_v3 = vpop.permute.xlu1 %3329 }
 0x8c3   :  { %v4712_v21 = vpop.f32.mrf.mxu1  ;;  %v5000_v62 = vpop.f32.mrf.mxu0 }
 0x8c4   :  { %10105 = vst [vmem:[#allocation14_spill] sm:$0xff] %v9670_v63  ;;  %v4713_v60 = vadd.f32 %v4712_v21, %v9545_v56 }
 0x8c5   :  { %v4714_v18 = vpop.f32.mrf.mxu1  ;;  %v5002_v57 = vpop.f32.mrf.mxu0 }
 0x8c6   :  { %v9681_v28 = vadd.f32 %v5000_v62, %v4713_v60  ;;  %v9690_v18 = vpop.permute.xlu0 %3334  ;;  %v7000_v57 = vld [vmem:[#allocation2 + $0x208] ss:$28 sps:$4 sm:$0xff]  }
 0x8c7   :  { %v4717_v54 = vpop.f32.mrf.mxu1  ;;  %v5005_v26 = vpop.f32.mrf.mxu0  ;;  %5260 = vmatmul.mubr.bf16.gmra.mxu1 %v6995_v50  ;;  %6420 = vmatmul.mubr.msk.bf16.vlgmr.msra.gmra.mxu0 %vm1850_vm7, %v6999_v45  ;;  %v7007_v50 = vld [vmem:[#allocation2 + $0x244] ss:$28 sps:$4 sm:$0xff]  }
 0x8c8   :  { %10106 = vst [vmem:[#allocation15_spill] sm:$0xff] %v9681_v28  ;;  %v4718_v27 = vadd.f32 %v4717_v54, %v9535_v15  ;;  %5267 = vmatprep.mubr.bf16.mxu1 %v7002_v48  ;;  %6423 = vmatprep.mubr.msk.bf16.mxu0 %vm1850_vm7, %v7003_v46  ;;  %v7004_v28 = vld [vmem:[#allocation2 + $0xc0] ss:$28 sps:$4 sm:$0xff]   ;;  %v9693_v45 = vpop.permute.xlu1 %3249 }
 0x8c9   :  { %v4719_v56 = vpop.f32.mrf.mxu1  ;;  %v5007_v37 = vpop.f32.mrf.mxu0 }
 0x8ca   :  { %v9688_v21 = vadd.f32 %v5005_v26, %v4718_v27  ;;  %v9700_v27 = vpop.permute.xlu0 %3254 }
 0x8cb   :  { %v4720_v62 = vpop.f32.mrf.mxu1  ;;  %v5008_v60 = vpop.f32.mrf.mxu0 }
 0x8cc   :  { %10107 = vst [vmem:[#allocation16_spill] sm:$0xff] %v9688_v21  ;;  %v4721_v63 = vadd.f32 %v4720_v62, %v9537_v19  ;;  %v7013_v21 = vld [vmem:[#allocation2 + $0x168] ss:$28 sps:$4 sm:$0xff]  }
 0x8cd   :  { %v4722_v15 = vpop.f32.mrf.mxu1  ;;  %v5010_v54 = vpop.f32.mrf.mxu0 }
 0x8ce   :  { %v9695_v48 = vadd.f32 %v5008_v60, %v4721_v63  ;;  %v9704_v15 = vpop.permute.xlu1 %3319  ;;  %v7005_v54 = vld [vmem:[#allocation2 + $0x240] ss:$28 sps:$4 sm:$0xff]  }
 0x8cf   :  { %v4725_v46 = vpop.f32.mrf.mxu1  ;;  %v5013_v56 = vpop.f32.mrf.mxu0  ;;  %5268 = vmatmul.mubr.bf16.gmra.mxu1 %v7000_v57  ;;  %6424 = vmatmul.mubr.msk.bf16.gmra.mxu0 %vm1850_vm7, %v7004_v28  ;;  %v7012_v28 = vld [vmem:[#allocation2 + $0x27c] ss:$28 sps:$4 sm:$0xff]  }
 0x8d0   :  { %10108 = vst [vmem:[#allocation17_spill] sm:$0xff] %v9695_v48  ;;  %v4726_v26 = vadd.f32 %v4725_v46, %v9527_v30  ;;  %5275 = vmatprep.mubr.bf16.mxu1 %v7007_v50  ;;  %6427 = vmatprep.mubr.msk.bf16.mxu0 %vm1850_vm7, %v7008_v9  ;;  %v7009_v48 = vld [vmem:[#allocation2 + $0x130] ss:$28 sps:$4 sm:$0xff]   ;;  %v9709_v9 = vpop.permute.xlu0 %3324 }
 0x8d1   :  { %v4727_v19 = vpop.f32.mrf.mxu1  ;;  %v5015_v37 = vpop.f32.mrf.mxu0 }
 0x8d2   :  { %v9702_v62 = vadd.f32 %v5013_v56, %v4726_v26  ;;  %v9714_v26 = vpop.permute.xlu1 %3239 }
 0x8d3   :  { %v4728_v63 = vpop.f32.mrf.mxu1  ;;  %v5016_v60 = vpop.f32.mrf.mxu0 }
 0x8d4   :  { %10109 = vst [vmem:[#allocation18_spill] sm:$0xff] %v9702_v62  ;;  %v4729_v57 = vadd.f32 %v4728_v63, %v9529_v5 }
 0x8d5   :  { %v4730_v30 = vpop.f32.mrf.mxu1  ;;  %v5018_v50 = vpop.f32.mrf.mxu0 }
 0x8d6   :  { %v9707_v46 = vadd.f32 %v5016_v60, %v4729_v57  ;;  %v7010_v50 = vld [vmem:[#allocation2 + $0x278] ss:$28 sps:$4 sm:$0xff]  }
 0x8d7   :  { %v4733_v19 = vpop.f32.mrf.mxu1  ;;  %v5021_v37 = vpop.f32.mrf.mxu0  ;;  %5276 = vmatmul.mubr.bf16.gmra.mxu1 %v7005_v54  ;;  %6428 = vmatmul.mubr.msk.bf16.gmra.mxu0 %vm1850_vm7, %v7009_v48  ;;  %v7017_v48 = vld [vmem:[#allocation2 + $0x2b4] ss:$28 sps:$4 sm:$0xff]  }
 0x8d8   :  { %10110 = vst [vmem:[#allocation19_spill] sm:$0xff] %v9707_v46  ;;  %v4734_v56 = vadd.f32 %v4733_v19, %v9519_v17  ;;  %5283 = vmatprep.mubr.bf16.mxu1 %v7012_v28  ;;  %6431 = vmatprep.mubr.msk.bf16.mxu0 %vm1850_vm7, %v7013_v21  ;;  %v7014_v46 = vld [vmem:[#allocation2 + $0x1a0] ss:$28 sps:$4 sm:$0xff]   ;;  %v9719_v54 = vpop.permute.xlu0 %3244  ;;  %v9723_v21 = vpop.permute.xlu1 %3309 }
 0x8d9   :  { %v4735_v5 = vpop.f32.mrf.mxu1  ;;  %v5023_v63 = vpop.f32.mrf.mxu0 }
 0x8da   :  { %v9716_v30 = vadd.f32 %v5021_v37, %v4734_v56 }
 0x8db   :  { %v4736_v60 = vpop.f32.mrf.mxu1  ;;  %v5024_v57 = vpop.f32.mrf.mxu0 }
 0x8dc   :  { %10111 = vst [vmem:[#allocation20_spill] sm:$0xff] %v9716_v30  ;;  %v4737_v62 = vadd.f32 %v4736_v60, %v9521_v20 }
 0x8dd   :  { %v4738_v17 = vpop.f32.mrf.mxu1  ;;  %v5026_v28 = vpop.f32.mrf.mxu0 }
 0x8de   :  { %v9721_v19 = vadd.f32 %v5024_v57, %v4737_v62  ;;  %v9730_v17 = vpop.permute.xlu0 %3314  ;;  %v7015_v28 = vld [vmem:[#allocation2 + $0x2b0] ss:$28 sps:$4 sm:$0xff]  }
 0x8df   :  { %v4741_v5 = vpop.f32.mrf.mxu1  ;;  %v5029_v63 = vpop.f32.mrf.mxu0  ;;  %5284 = vmatmul.mubr.bf16.gmra.mxu1 %v7010_v50  ;;  %6432 = vmatmul.mubr.msk.bf16.gmra.mxu0 %vm1850_vm7, %v7014_v46  ;;  %v7023_v46 = vld [vmem:[#allocation2 + $0x248] ss:$28 sps:$4 sm:$0xff]  }
 0x8e0   :  { %10112 = vst [vmem:[#allocation21_spill] sm:$0xff] %v9721_v19  ;;  %v4742_v37 = vadd.f32 %v4741_v5, %v9511_v0  ;;  %5291 = vmatprep.mubr.bf16.mxu1 %v7017_v48  ;;  %6435 = vmatprep.mubr.msk.bf16.mxu0 %vm1850_vm7, %v7018_v44  ;;  %v7019_v19 = vld [vmem:[#allocation2 + $0x210] ss:$28 sps:$4 sm:$0xff]   ;;  %v3230_v50 = vpop.permute.xlu1 %3229 }
 0x8e1   :  { %v4743_v20 = vpop.f32.mrf.mxu1  ;;  %v5031_v56 = vpop.f32.mrf.mxu0 }
 0x8e2   :  { %v9728_v60 = vadd.f32 %v5029_v63, %v4742_v37  ;;  %v3235_v37 = vpop.permute.xlu0 %3234 }
 0x8e3   :  { %v4744_v62 = vpop.f32.mrf.mxu1  ;;  %v5032_v57 = vpop.f32.mrf.mxu0 }
 0x8e4   :  { %10113 = vst [vmem:[#allocation22_spill] sm:$0xff] %v9728_v60  ;;  %v4745_v30 = vadd.f32 %v4744_v62, %v9515_v47 }
 0x8e5   :  { %v4746_v52 = vpop.f32.mrf.mxu1  ;;  %v5034_v0 = vpop.f32.mrf.mxu0 }
 0x8e6   :  { %v9733_v48 = vadd.f32 %v5032_v57, %v4745_v30  ;;  %v7020_v52 = vld [vmem:[#allocation2 + $0x2e8] ss:$28 sps:$4 sm:$0xff]   ;;  %v7024_v0 = vld [vmem:[#allocation2 + $0x280] ss:$28 sps:$4 sm:$0xff]  }
 0x8e7   :  { %v4749_v44 = vpop.f32.mrf.mxu1  ;;  %v5037_v5 = vpop.f32.mrf.mxu0  ;;  %5292 = vmatmul.mubr.bf16.gmra.mxu1 %v7015_v28  ;;  %6436 = vmatmul.mubr.msk.bf16.gmra.mxu0 %vm1850_vm7, %v7019_v19  ;;  %v7027_v57 = vld [vmem:[#allocation2 + $0x324] ss:$28 sps:$4 sm:$0xff]  }
 0x8e8   :  { %10114 = vst [vmem:[#allocation23_spill] sm:$0xff] %v9733_v48  ;;  %v4750_v63 = vadd.f32 %v4749_v44, %v3230_v50  ;;  %5299 = vmatprep.mubr.bf16.mxu1 %v7022_v55  ;;  %6439 = vmatprep.mubr.msk.bf16.mxu0 %vm1850_vm7, %v7023_v46  ;;  %v7028_v48 = vld [vmem:[#allocation2 + $0x2b8] ss:$28 sps:$4 sm:$0xff]  }
 0x8e9   :  { %v4751_v20 = vpop.f32.mrf.mxu1  ;;  %v5039_v56 = vpop.f32.mrf.mxu0 }
 0x8ea   :  { %v9737_v47 = vadd.f32 %v5037_v5, %v4750_v63  ;;  %v7029_v20 = vld [vmem:[#allocation2 + $0x2f0] ss:$28 sps:$4 sm:$0xff]   ;;  %v7032_v56 = vld [vmem:[#allocation2 + $0x35c] ss:$28 sps:$4 sm:$0xff]  }
 0x8eb   :  { %v4752_v62 = vpop.f32.mrf.mxu1  ;;  %v5040_v60 = vpop.f32.mrf.mxu0 }
 0x8ec   :  { %v4753_v30 = vadd.f32 %v4752_v62, %v3235_v37  ;;  %v7033_v62 = vld [vmem:[#allocation2 + $0x328] ss:$28 sps:$4 sm:$0xff]  }
 0x8ed   :  { %v4754_v35 = vpop.f32.mrf.mxu1  ;;  %v5042_v28 = vpop.f32.mrf.mxu0 }
 0x8ee   :  { %v9739_v40 = vadd.f32 %v5040_v60, %v4753_v30  ;;  %v7025_v35 = vld [vmem:[#allocation2 + $0x320] ss:$28 sps:$4 sm:$0xff]  }
 0x8ef   :  { %v4757_v19 = vpop.f32.mrf.mxu1  ;;  %v5045_v50 = vpop.f32.mrf.mxu0  ;;  %5300 = vmatmul.mubr.bf16.gmra.mxu1 %v7020_v52  ;;  %6440 = vmatmul.mubr.msk.bf16.gmra.mxu0 %vm1850_vm7, %v7024_v0 }
 0x8f0   :  { %v4758_v55 = vadd.f32 %v4757_v19, %v9714_v26  ;;  %5307 = vmatprep.mubr.bf16.mxu1 %v7027_v57  ;;  %6443 = vmatprep.mubr.msk.bf16.mxu0 %vm1850_vm7, %v7028_v48 }
 0x8f1   :  { %v4759_v46 = vpop.f32.mrf.mxu1  ;;  %v5047_v44 = vpop.f32.mrf.mxu0 }
 0x8f2   :  { %v9744_v5 = vadd.f32 %v5045_v50, %v4758_v55  ;;  %v7030_v46 = vld [vmem:[#allocation2 + $0x358] ss:$28 sps:$4 sm:$0xff]   ;;  %v7034_v44 = vld [vmem:[#allocation2 + $0x360] ss:$28 sps:$4 sm:$0xff]  }
 0x8f3   :  { %v4760_v63 = vpop.f32.mrf.mxu1  ;;  %v5048_v37 = vpop.f32.mrf.mxu0 }
 0x8f4   :  { %v4761_v60 = vadd.f32 %v4760_v63, %v9719_v54 }
 0x8f5   :  { %v4762_v52 = vpop.f32.mrf.mxu1  ;;  %v5050_v30 = vpop.f32.mrf.mxu0 }
 0x8f6   :  { %v9747_v0 = vadd.f32 %v5048_v37, %v4761_v60  ;;  %v7037_v37 = vld [vmem:[#allocation2 + $0x394] ss:$28 sps:$4 sm:$0xff]  }
 0x8f7   :  { %v4765_v26 = vpop.f32.mrf.mxu1  ;;  %v5053_v57 = vpop.f32.mrf.mxu0  ;;  %5308 = vmatmul.mubr.bf16.gmra.mxu1 %v7025_v35  ;;  %6444 = vmatmul.mubr.msk.bf16.gmra.mxu0 %vm1850_vm7, %v7029_v20  ;;  %v7038_v60 = vld [vmem:[#allocation2 + $0x398] ss:$28 sps:$4 sm:$0xff]  }
 0x8f8   :  { %v4766_v48 = vadd.f32 %v4765_v26, %v9693_v45  ;;  %5315 = vmatprep.mubr.bf16.mxu1 %v7032_v56  ;;  %6447 = vmatprep.mubr.msk.bf16.mxu0 %vm1850_vm7, %v7033_v62 }
 0x8f9   :  { %v4767_v28 = vpop.f32.mrf.mxu1  ;;  %v5055_v19 = vpop.f32.mrf.mxu0 }
 0x8fa   :  { %v9752_v50 = vadd.f32 %v5053_v57, %v4766_v48  ;;  %v7035_v28 = vld [vmem:[#allocation2 + $0x390] ss:$28 sps:$4 sm:$0xff]  }
 0x8fb   :  { %v4768_v54 = vpop.f32.mrf.mxu1  ;;  %v5056_v55 = vpop.f32.mrf.mxu0  ;;  %v7039_v19 = vld [vmem:[#allocation2 + $0x3d0] ss:$28 sps:$4 sm:$0xff]  }
 0x8fc   :  { %v4769_v63 = vadd.f32 %v4768_v54, %v9700_v27 }
 0x8fd   :  { %v4770_v35 = vpop.f32.mrf.mxu1  ;;  %v5058_v52 = vpop.f32.mrf.mxu0 }
 0x8fe   :  { %v9755_v20 = vadd.f32 %v5056_v55, %v4769_v63  ;;  %v7042_v55 = vld [vmem:[#allocation2 + $0x3cc] ss:$28 sps:$4 sm:$0xff]  }
 0x8ff   :  { %v4773_v45 = vpop.f32.mrf.mxu1  ;;  %v5061_v56 = vpop.f32.mrf.mxu0  ;;  %5316 = vmatmul.mubr.bf16.gmra.mxu1 %v7030_v46  ;;  %6448 = vmatmul.mubr.msk.bf16.gmra.mxu0 %vm1850_vm7, %v7034_v44  ;;  %v7046_v63 = vld [vmem:[#allocation2 + $0x408] ss:$28 sps:$4 sm:$0xff]  }
 0x900   :  { %v4774_v62 = vadd.f32 %v4773_v45, %v9668_v51  ;;  %5323 = vmatprep.mubr.bf16.mxu1 %v7037_v37  ;;  %6451 = vmatprep.mubr.msk.bf16.mxu0 %vm1850_vm7, %v7038_v60 }
 0x901   :  { %v4775_v30 = vpop.f32.mrf.mxu1  ;;  %v5063_v26 = vpop.f32.mrf.mxu0 }
 0x902   :  { %v9760_v57 = vadd.f32 %v5061_v56, %v4774_v62  ;;  %v7040_v30 = vld [vmem:[#allocation2 + $0x3c8] ss:$28 sps:$4 sm:$0xff]   ;;  %v7047_v26 = vld [vmem:[#allocation2 + $0x440] ss:$28 sps:$4 sm:$0xff]  }
 0x903   :  { %v4776_v27 = vpop.f32.mrf.mxu1  ;;  %v5064_v48 = vpop.f32.mrf.mxu0 }
 0x904   :  { %v4777_v54 = vadd.f32 %v4776_v27, %v9679_v22 }
 0x905   :  { %v4778_v46 = vpop.f32.mrf.mxu1  ;;  %v5066_v35 = vpop.f32.mrf.mxu0 }
 0x906   :  { %v9763_v44 = vadd.f32 %v5064_v48, %v4777_v54  ;;  %v7045_v48 = vld [vmem:[#allocation2 + $0x404] ss:$28 sps:$4 sm:$0xff]   ;;  %v7054_v54 = vld [vmem:[#allocation2 + $0x478] ss:$28 sps:$4 sm:$0xff]  }
 0x907   :  { %v4781_v51 = vpop.f32.mrf.mxu1  ;;  %v5069_v37 = vpop.f32.mrf.mxu0  ;;  %5324 = vmatmul.mubr.bf16.gmra.mxu1 %v7035_v28  ;;  %6452 = vmatmul.mubr.msk.bf16.gmra.mxu0 %vm1850_vm7, %v7039_v19 }
 0x908   :  { %v4782_v60 = vadd.f32 %v4781_v51, %v9650_v8  ;;  %5331 = vmatprep.mubr.bf16.mxu1 %v7042_v55  ;;  %6455 = vmatprep.mubr.msk.bf16.mxu0 %vm1850_vm7, %v7046_v63 }
 0x909   :  { %v4783_v52 = vpop.f32.mrf.mxu1  ;;  %v5071_v45 = vpop.f32.mrf.mxu0 }
 0x90a   :  { %v9768_v56 = vadd.f32 %v5069_v37, %v4782_v60  ;;  %v7043_v52 = vld [vmem:[#allocation2 + $0x400] ss:$28 sps:$4 sm:$0xff]   ;;  %v7055_v45 = vld [vmem:[#allocation2 + $0x4b0] ss:$28 sps:$4 sm:$0xff]  }
 0x90b   :  { %v4784_v22 = vpop.f32.mrf.mxu1  ;;  %v5072_v62 = vpop.f32.mrf.mxu0 }
 0x90c   :  { %v4785_v27 = vadd.f32 %v4784_v22, %v9655_v4 }
 0x90d   :  { %v4786_v28 = vpop.f32.mrf.mxu1  ;;  %v5074_v46 = vpop.f32.mrf.mxu0 }
 0x90e   :  { %v9771_v19 = vadd.f32 %v5072_v62, %v4785_v27  ;;  %v7050_v62 = vld [vmem:[#allocation2 + $0x43c] ss:$28 sps:$4 sm:$0xff]   ;;  %v7062_v27 = vld [vmem:[#allocation2 + $0x4e8] ss:$28 sps:$4 sm:$0xff]  }
 0x90f   :  { %v4789_v8 = vpop.f32.mrf.mxu1  ;;  %v5077_v55 = vpop.f32.mrf.mxu0  ;;  %5332 = vmatmul.mubr.bf16.gmra.mxu1 %v7040_v30  ;;  %6456 = vmatmul.mubr.msk.bf16.gmra.mxu0 %vm1850_vm7, %v7047_v26 }
 0x910   :  { %v4790_v63 = vadd.f32 %v4789_v8, %v9630_v53  ;;  %5339 = vmatprep.mubr.bf16.mxu1 %v7045_v48  ;;  %6459 = vmatprep.mubr.msk.bf16.mxu0 %vm1850_vm7, %v7054_v54 }
 0x911   :  { %v4791_v35 = vpop.f32.mrf.mxu1  ;;  %v5079_v51 = vpop.f32.mrf.mxu0 }
 0x912   :  { %v9776_v37 = vadd.f32 %v5077_v55, %v4790_v63  ;;  %v7048_v35 = vld [vmem:[#allocation2 + $0x438] ss:$28 sps:$4 sm:$0xff]   ;;  %v7063_v51 = vld [vmem:[#allocation2 + $0x520] ss:$28 sps:$4 sm:$0xff]  }
 0x913   :  { %v4792_v4 = vpop.f32.mrf.mxu1  ;;  %v5080_v60 = vpop.f32.mrf.mxu0 }
 0x914   :  { %v4793_v22 = vadd.f32 %v4792_v4, %v9637_v2 }
 0x915   :  { %v4794_v30 = vpop.f32.mrf.mxu1  ;;  %v5082_v28 = vpop.f32.mrf.mxu0 }
 0x916   :  { %v9779_v26 = vadd.f32 %v5080_v60, %v4793_v22  ;;  %v7053_v60 = vld [vmem:[#allocation2 + $0x474] ss:$28 sps:$4 sm:$0xff]  }
 0x917   :  { %v4797_v53 = vpop.f32.mrf.mxu1  ;;  %v5085_v48 = vpop.f32.mrf.mxu0  ;;  %5340 = vmatmul.mubr.bf16.gmra.mxu1 %v7043_v52  ;;  %6460 = vmatmul.mubr.msk.bf16.gmra.mxu0 %vm1850_vm7, %v7055_v45  ;;  %v7070_v22 = vld [vmem:[#allocation2 + $0x558] ss:$28 sps:$4 sm:$0xff]  }
 0x918   :  { %v4798_v54 = vadd.f32 %v4797_v53, %v9613_v34  ;;  %5347 = vmatprep.mubr.bf16.mxu1 %v7050_v62  ;;  %6463 = vmatprep.mubr.msk.bf16.mxu0 %vm1850_vm7, %v7062_v27 }
 0x919   :  { %v4799_v46 = vpop.f32.mrf.mxu1  ;;  %v5087_v8 = vpop.f32.mrf.mxu0 }
 0x91a   :  { %v9784_v55 = vadd.f32 %v5085_v48, %v4798_v54  ;;  %v7051_v46 = vld [vmem:[#allocation2 + $0x470] ss:$28 sps:$4 sm:$0xff]  }
 0x91b   :  { %v4800_v2 = vpop.f32.mrf.mxu1  ;;  %v5088_v63 = vpop.f32.mrf.mxu0  ;;  %v7071_v8 = vld [vmem:[#allocation2 + $0x590] ss:$28 sps:$4 sm:$0xff]  }
 0x91c   :  { %v4801_v4 = vadd.f32 %v4800_v2, %v9618_v49 }
 0x91d   :  { %v4802_v52 = vpop.f32.mrf.mxu1  ;;  %v5090_v30 = vpop.f32.mrf.mxu0 }
 0x91e   :  { %v9787_v45 = vadd.f32 %v5088_v63, %v4801_v4  ;;  %v7058_v63 = vld [vmem:[#allocation2 + $0x4ac] ss:$28 sps:$4 sm:$0xff]  }
 0x91f   :  { %v4805_v34 = vpop.f32.mrf.mxu1  ;;  %v5093_v62 = vpop.f32.mrf.mxu0  ;;  %5348 = vmatmul.mubr.bf16.gmra.mxu1 %v7048_v35  ;;  %6464 = vmatmul.mubr.msk.bf16.gmra.mxu0 %vm1850_vm7, %v7063_v51  ;;  %v7078_v4 = vld [vmem:[#allocation2 + $0x5c8] ss:$28 sps:$4 sm:$0xff]  }
 0x920   :  { %v4806_v27 = vadd.f32 %v4805_v34, %v9596_v7  ;;  %5355 = vmatprep.mubr.bf16.mxu1 %v7053_v60  ;;  %6467 = vmatprep.mubr.msk.bf16.mxu0 %vm1850_vm7, %v7070_v22 }
 0x921   :  { %v4807_v28 = vpop.f32.mrf.mxu1  ;;  %v5095_v53 = vpop.f32.mrf.mxu0 }
 0x922   :  { %v9792_v48 = vadd.f32 %v5093_v62, %v4806_v27  ;;  %v7056_v28 = vld [vmem:[#allocation2 + $0x4a8] ss:$28 sps:$4 sm:$0xff]   ;;  %v7079_v53 = vld [vmem:[#allocation2 + $0x600] ss:$28 sps:$4 sm:$0xff]  }
 0x923   :  { %v4808_v49 = vpop.f32.mrf.mxu1  ;;  %v5096_v54 = vpop.f32.mrf.mxu0 }
 0x924   :  { %v4809_v2 = vadd.f32 %v4808_v49, %v9601_v14 }
 0x925   :  { %v4810_v35 = vpop.f32.mrf.mxu1  ;;  %v5098_v52 = vpop.f32.mrf.mxu0 }
 0x926   :  { %v9795_v51 = vadd.f32 %v5096_v54, %v4809_v2  ;;  %v7061_v54 = vld [vmem:[#allocation2 + $0x4e4] ss:$28 sps:$4 sm:$0xff]   ;;  %v7086_v2 = vld [vmem:[#allocation2 + $0x638] ss:$28 sps:$4 sm:$0xff]  }
 0x927   :  { %v4813_v7 = vpop.f32.mrf.mxu1  ;;  %v5101_v60 = vpop.f32.mrf.mxu0  ;;  %5356 = vmatmul.mubr.bf16.gmra.mxu1 %v7051_v46  ;;  %6468 = vmatmul.mubr.msk.bf16.gmra.mxu0 %vm1850_vm7, %v7071_v8 }
 0x928   :  { %v4814_v22 = vadd.f32 %v4813_v7, %v9723_v21  ;;  %5363 = vmatprep.mubr.bf16.mxu1 %v7058_v63  ;;  %6471 = vmatprep.mubr.msk.bf16.mxu0 %vm1850_vm7, %v7078_v4 }
 0x929   :  { %v4815_v30 = vpop.f32.mrf.mxu1  ;;  %v5103_v34 = vpop.f32.mrf.mxu0 }
 0x92a   :  { %v9800_v62 = vadd.f32 %v5101_v60, %v4814_v22  ;;  %v7059_v30 = vld [vmem:[#allocation2 + $0x4e0] ss:$28 sps:$4 sm:$0xff]   ;;  %v7087_v34 = vld [vmem:[#allocation2 + $0x670] ss:$28 sps:$4 sm:$0xff]  }
 0x92b   :  { %v4816_v14 = vpop.f32.mrf.mxu1  ;;  %v5104_v27 = vpop.f32.mrf.mxu0 }
 0x92c   :  { %v4817_v49 = vadd.f32 %v4816_v14, %v9730_v17 }
 0x92d   :  { %v4818_v46 = vpop.f32.mrf.mxu1  ;;  %v5106_v35 = vpop.f32.mrf.mxu0 }
 0x92e   :  { %v9803_v8 = vadd.f32 %v5104_v27, %v4817_v49  ;;  %v7066_v27 = vld [vmem:[#allocation2 + $0x51c] ss:$28 sps:$4 sm:$0xff]   ;;  %v7094_v49 = vld [vmem:[#allocation2 + $0x6a8] ss:$28 sps:$4 sm:$0xff]  }
 0x92f   :  { %v4821_v21 = vpop.f32.mrf.mxu1  ;;  %v5109_v63 = vpop.f32.mrf.mxu0  ;;  %5364 = vmatmul.mubr.bf16.gmra.mxu1 %v7056_v28  ;;  %6472 = vmatmul.mubr.msk.bf16.gmra.mxu0 %vm1850_vm7, %v7079_v53 }
 0x930   :  { %v4822_v4 = vadd.f32 %v4821_v21, %v9704_v15  ;;  %5371 = vmatprep.mubr.bf16.mxu1 %v7061_v54  ;;  %6475 = vmatprep.mubr.msk.bf16.mxu0 %vm1850_vm7, %v7086_v2 }
 0x931   :  { %v4823_v52 = vpop.f32.mrf.mxu1  ;;  %v5111_v7 = vpop.f32.mrf.mxu0 }
 0x932   :  { %v9808_v60 = vadd.f32 %v5109_v63, %v4822_v4  ;;  %v7064_v52 = vld [vmem:[#allocation2 + $0x518] ss:$28 sps:$4 sm:$0xff]   ;;  %v7095_v7 = vld [vmem:[#allocation2 + $0x6e0] ss:$0 sps:$4 sm:$0x33]  }
 0x933   :  { %v4824_v17 = vpop.f32.mrf.mxu1  ;;  %v5112_v22 = vpop.f32.mrf.mxu0 }
 0x934   :  { %v4825_v14 = vadd.f32 %v4824_v17, %v9709_v9 }
 0x935   :  { %v4826_v28 = vpop.f32.mrf.mxu1  ;;  %v5114_v46 = vpop.f32.mrf.mxu0 }
 0x936   :  { %v9811_v53 = vadd.f32 %v5112_v22, %v4825_v14  ;;  %v7069_v22 = vld [vmem:[#allocation2 + $0x554] ss:$28 sps:$4 sm:$0xff]  }
 0x937   :  { %v4829_v15 = vpop.f32.mrf.mxu1  ;;  %v5117_v54 = vpop.f32.mrf.mxu0  ;;  %5372 = vmatmul.mubr.bf16.gmra.mxu1 %v7059_v30  ;;  %6476 = vmatmul.mubr.msk.bf16.gmra.mxu0 %vm1850_vm7, %v7087_v34 }
 0x938   :  { %v4830_v2 = vadd.f32 %v4829_v15, %v9683_v3  ;;  %5379 = vmatprep.mubr.bf16.mxu1 %v7066_v27  ;;  %6479 = vmatprep.mubr.msk.bf16.mxu0 %vm1850_vm7, %v7094_v49 }
 0x939   :  { %v4831_v35 = vpop.f32.mrf.mxu1  ;;  %v5119_v21 = vpop.f32.mrf.mxu0 }
 0x93a   :  { %v9816_v63 = vadd.f32 %v5117_v54, %v4830_v2  ;;  %v7074_v21 = vld [vmem:[#allocation2 + $0x58c] ss:$28 sps:$4 sm:$0xff]  }
 0x93b   :  { %v4832_v9 = vpop.f32.mrf.mxu1  ;;  %v5120_v4 = vpop.f32.mrf.mxu0 }
 0x93c   :  { %v4833_v17 = vadd.f32 %v4832_v9, %v9690_v18  ;;  %v7067_v18 = vld [vmem:[#allocation2 + $0x550] ss:$28 sps:$4 sm:$0xff]  }
 0x93d   :  { %v4834_v14 = vpop.f32.mrf.mxu1  ;;  %v5122_v30 = vpop.f32.mrf.mxu0 }
 0x93e   :  { %v9819_v28 = vadd.f32 %v5120_v4, %v4833_v17 }
 0x93f   :  { %v4837_v34 = vpop.f32.mrf.mxu1  ;;  %v5125_v3 = vpop.f32.mrf.mxu0  ;;  %5380 = vmatmul.mubr.bf16.gmra.mxu1 %v7064_v52  ;;  %6480 = vmatmul.mubr.msk.bf16.gmra.mxu0 %vm1850_vm7, %v7095_v7 }
 0x940   :  { %v4838_v27 = vadd.f32 %v4837_v34, %v9659_v39  ;;  %5387 = vmatprep.mubr.bf16.mxu1 %v7069_v22 }
 0x941   :  { %v4839_v49 = vpop.f32.mrf.mxu1  ;;  %v5127_v46 = vpop.f32.mrf.mxu0 }
 0x942   :  { %v9823_v15 = vadd.f32 %v5125_v3, %v4838_v27  ;;  %v7072_v27 = vld [vmem:[#allocation2 + $0x588] ss:$28 sps:$4 sm:$0xff]  }
 0x943   :  { %v4840_v54 = vpop.f32.mrf.mxu1  ;;  %v5128_v2 = vpop.f32.mrf.mxu0  ;;  %v7077_v49 = vld [vmem:[#allocation2 + $0x5c4] ss:$28 sps:$4 sm:$0xff]  }
 0x944   :  { %v4841_v35 = vadd.f32 %v4840_v54, %v9664_v12 }
 0x945   :  { %v4842_v9 = vpop.f32.mrf.mxu1  ;;  %v5130_v4 = vpop.f32.mrf.mxu0 }
 0x946   :  { %v9826_v17 = vadd.f32 %v5128_v2, %v4841_v35 }
 0x947   :  { %v4845_v52 = vpop.f32.mrf.mxu1  ;;  %v5133_v14 = vpop.f32.mrf.mxu0  ;;  %5388 = vmatmul.mubr.bf16.gmra.mxu1 %v7067_v18 }
 0x948   :  { %10115 = vst [vmem:[#allocation24_spill] sm:$0xff] %v9826_v17  ;;  %v4846_v39 = vadd.f32 %v4845_v52, %v9642_v33  ;;  %5395 = vmatprep.mubr.bf16.mxu1 %v7074_v21 }
 0x949   :  { %v4847_v7 = vpop.f32.mrf.mxu1  ;;  %v5135_v22 = vpop.f32.mrf.mxu0 }
 0x94a   :  { %v9829_v30 = vadd.f32 %v5133_v14, %v4846_v39  ;;  %v7075_v39 = vld [vmem:[#allocation2 + $0x5c0] ss:$28 sps:$4 sm:$0xff]  }
 0x94b   :  { %v4848_v34 = vpop.f32.mrf.mxu1  ;;  %v5136_v3 = vpop.f32.mrf.mxu0  ;;  %v7082_v7 = vld [vmem:[#allocation2 + $0x5fc] ss:$28 sps:$4 sm:$0xff]  }
 0x94c   :  { %10116 = vst [vmem:[#allocation25_spill] sm:$0xff] %v9829_v30  ;;  %v4849_v12 = vadd.f32 %v4848_v34, %v9647_v58  ;;  %v10133_v30 = vld [vmem:[#allocation18_spill] sm:$0xff] }
 0x94d   :  { %v4850_v46 = vpop.f32.mrf.mxu1  ;;  %v5138_v54 = vpop.f32.mrf.mxu0 }
 0x94e   :  { %v9832_v2 = vadd.f32 %v5136_v3, %v4849_v12 }
 0x94f   :  { %v4853_v35 = vpop.f32.mrf.mxu1  ;;  %v5141_v9 = vpop.f32.mrf.mxu0  ;;  %5396 = vmatmul.mubr.bf16.gmra.mxu1 %v7072_v27 }
 0x950   :  { %10117 = vst [vmem:[#allocation26_spill] sm:$0xff] %v9832_v2  ;;  %v4854_v33 = vadd.f32 %v4853_v35, %v9622_v13  ;;  %5403 = vmatprep.mubr.bf16.mxu1 %v7077_v49 }
 0x951   :  { %v4855_v18 = vpop.f32.mrf.mxu1  ;;  %v5143_v21 = vpop.f32.mrf.mxu0 }
 0x952   :  { %v9835_v4 = vadd.f32 %v5141_v9, %v4854_v33  ;;  %v7080_v33 = vld [vmem:[#allocation2 + $0x5f8] ss:$28 sps:$4 sm:$0xff]  }
 0x953   :  { %v4856_v52 = vpop.f32.mrf.mxu1  ;;  %v5144_v14 = vpop.f32.mrf.mxu0  ;;  %v7085_v18 = vld [vmem:[#allocation2 + $0x634] ss:$28 sps:$4 sm:$0xff]  }
 0x954   :  { %10118 = vst [vmem:[#allocation27_spill] sm:$0xff] %v9835_v4  ;;  %v4857_v58 = vadd.f32 %v4856_v52, %v9627_v59 }
 0x955   :  { %v4858_v22 = vpop.f32.mrf.mxu1  ;;  %v5146_v34 = vpop.f32.mrf.mxu0 }
 0x956   :  { %v9838_v3 = vadd.f32 %v5144_v14, %v4857_v58 }
 0x957   :  { %v4861_v12 = vpop.f32.mrf.mxu1  ;;  %v5149_v46 = vpop.f32.mrf.mxu0  ;;  %5404 = vmatmul.mubr.bf16.gmra.mxu1 %v7075_v39 }
 0x958   :  { %10119 = vst [vmem:[#allocation28_spill] sm:$0xff] %v9838_v3  ;;  %v4862_v13 = vadd.f32 %v4861_v12, %v9605_v11  ;;  %5411 = vmatprep.mubr.bf16.mxu1 %v7082_v7 }
 0x959   :  { %v4863_v27 = vpop.f32.mrf.mxu1  ;;  %v5151_v49 = vpop.f32.mrf.mxu0 }
 0x95a   :  { %v9841_v54 = vadd.f32 %v5149_v46, %v4862_v13  ;;  %v7083_v13 = vld [vmem:[#allocation2 + $0x630] ss:$28 sps:$4 sm:$0xff]  }
 0x95b   :  { %v4864_v35 = vpop.f32.mrf.mxu1  ;;  %v5152_v9 = vpop.f32.mrf.mxu0  ;;  %v7090_v27 = vld [vmem:[#allocation2 + $0x66c] ss:$28 sps:$4 sm:$0xff]  }
 0x95c   :  { %10120 = vst [vmem:[#allocation29_spill] sm:$0xff] %v9841_v54  ;;  %v4865_v59 = vadd.f32 %v4864_v35, %v9610_v43 }
 0x95d   :  { %v4866_v21 = vpop.f32.mrf.mxu1  ;;  %v5154_v52 = vpop.f32.mrf.mxu0 }
 0x95e   :  { %v9844_v14 = vadd.f32 %v5152_v9, %v4865_v59 }
 0x95f   :  { %v4869_v58 = vpop.f32.mrf.mxu1  ;;  %v5157_v22 = vpop.f32.mrf.mxu0  ;;  %5412 = vmatmul.mubr.bf16.gmra.mxu1 %v7080_v33 }
 0x960   :  { %10121 = vst [vmem:[#allocation30_spill] sm:$0xff] %v9844_v14  ;;  %v4870_v11 = vadd.f32 %v4869_v58, %v9593_v31  ;;  %5419 = vmatprep.mubr.bf16.mxu1 %v7085_v18  ;;  %v7100_v18 = vld [vmem:[%s10089_s8 + $0x4] ss:$16 sps:$4 sm:$0x1f]  }
 0x961   :  { %v4871_v39 = vpop.f32.mrf.mxu1  ;;  %v5159_v7 = vpop.f32.mrf.mxu0  ;;  %5908 = vmatprep.mubr.bf16.mxu0 %v7100_v18 }
 0x962   :  { %v9847_v34 = vadd.f32 %v5157_v22, %v4870_v11  ;;  %v7088_v22 = vld [vmem:[#allocation2 + $0x668] ss:$28 sps:$4 sm:$0xff]  }
 0x963   :  { %v4872_v12 = vpop.f32.mrf.mxu1  ;;  %v5160_v46 = vpop.f32.mrf.mxu0  ;;  %v7093_v39 = vld [vmem:[#allocation2 + $0x6a4] ss:$28 sps:$4 sm:$0xff]  }
 0x964   :  { %10122 = vst [vmem:[#allocation31_spill] sm:$0xff] %v9847_v34 }
 0x965   :  { %v4873_v43 = vpop.f32.mrf.mxu1  ;;  %v5161_v49 = vpop.f32.mrf.mxu0 }
 0x967   :  { %v5197_v35 = vpop.f32.mrf.mxu0  ;;  %v5229_v21 = vpop.f32.mrf.mxu1  ;;  %5420 = vmatmul.mubr.bf16.gmra.mxu1 %v7083_v13 }
 0x968   :  { %v9850_v9 = vadd.f32 %v5197_v35, %v9567_v36  ;;  %v9853_v33 = vadd.f32 %v5229_v21, %v9588_v10  ;;  %5427 = vmatprep.mubr.bf16.mxu1 %v7090_v27  ;;  %v3002_v35 = vld [vmem:[#allocation2 + $0x6d8] sm:$0x33] }
 0x969   :  { %v5199_v31 = vpop.f32.mrf.mxu0  ;;  %v5231_v59 = vpop.f32.mrf.mxu1  ;;  %v6285_v18 = vcombine.high %v3002_v35, %v3002_v35 }
 0x96a   :  { %v7091_v31 = vld [vmem:[#allocation2 + $0x6a0] ss:$28 sps:$4 sm:$0xff]  }
 0x96b   :  { %v5200_v52 = vpop.f32.mrf.mxu0  ;;  %v5232_v58 = vpop.f32.mrf.mxu1 }
 0x96c   :  { %v9859_v11 = vadd.f32 %v5200_v52, %v9569_v42  ;;  %v9862_v36 = vadd.f32 %v5232_v58, %v9591_v41 }
 0x96d   :  { %v5202_v10 = vpop.f32.mrf.mxu0  ;;  %v5234_v7 = vpop.f32.mrf.mxu1 }
 0x96f   :  { %v5205_v12 = vpop.f32.mrf.mxu0  ;;  %v5237_v46 = vpop.f32.mrf.mxu1  ;;  %5428 = vmatmul.mubr.bf16.gmra.mxu1 %v7088_v22 }
 0x970   :  { %v5206_v13 = vadd.f32 %v5205_v12, %v9571_v38  ;;  %v9866_v27 = vadd.f32 %v5237_v46, %v9598_v25  ;;  %5435 = vmatprep.mubr.bf16.mxu1 %v7093_v39 }
 0x971   :  { %v5207_v43 = vpop.f32.mrf.mxu0  ;;  %v5239_v49 = vpop.f32.mrf.mxu1 }
 0x973   :  { %v5208_v42 = vpop.f32.mrf.mxu0  ;;  %v5240_v21 = vpop.f32.mrf.mxu1 }
 0x974   :  { %v5209_v41 = vadd.f32 %v5208_v42, %v9573_v6  ;;  %v9870_v59 = vadd.f32 %v5240_v21, %v9603_v23  ;;  %v6284_v6 = vcombine.low %v3002_v35, %v3002_v35  ;;  %v10123_v35 = vld [vmem:[#allocation6_spill] sm:$0xff] }
 0x975   :  { %v5210_v52 = vpop.f32.mrf.mxu0  ;;  %v5242_v58 = vpop.f32.mrf.mxu1 }
 0x977   :  { %v5213_v22 = vpop.f32.mrf.mxu0  ;;  %v5245_v38 = vpop.f32.mrf.mxu1  ;;  %5436 = vmatmul.mubr.bf16.gmra.mxu1 %v7091_v31 }
 0x978   :  { %v5214_v25 = vadd.f32 %v5213_v22, %v9576_v1  ;;  %v9874_v39 = vadd.f32 %v5245_v38, %v9608_v32  ;;  %5443 = vmatprep.mubr.bf16.mxu1 %v6285_v18 }
 0x979   :  { %v5215_v10 = vpop.f32.mrf.mxu0  ;;  %v5247_v7 = vpop.f32.mrf.mxu1 }
 0x97b   :  { %v5216_v12 = vpop.f32.mrf.mxu0  ;;  %v5248_v46 = vpop.f32.mrf.mxu1 }
 0x97c   :  { %v5217_v23 = vadd.f32 %v5216_v12, %v9579_v24  ;;  %v9878_v43 = vadd.f32 %v5248_v46, %v9615_v29  ;;  %v10124_v24 = vld [vmem:[#allocation7_spill] sm:$0xff] }
 0x97d   :  { %v5218_v49 = vpop.f32.mrf.mxu0  ;;  %v5250_v42 = vpop.f32.mrf.mxu1 }
 0x97e   :  { %v10125_v49 = vld [vmem:[#allocation8_spill] sm:$0xff] }
 0x97f   :  { %v5221_v21 = vpop.f32.mrf.mxu0  ;;  %v5253_v31 = vpop.f32.mrf.mxu1  ;;  %5444 = vmatmul.mubr.bf16.gmra.mxu1 %v6284_v6 }
 0x980   :  { %v5222_v1 = vadd.f32 %v5221_v21, %v9582_v16  ;;  %v9882_v32 = vadd.f32 %v5253_v31, %v9620_v61 }
 0x981   :  { %v5223_v18 = vpop.f32.mrf.mxu0  ;;  %v5255_v52 = vpop.f32.mrf.mxu1 }
 0x982   :  { %v10126_v52 = vld [vmem:[#allocation9_spill] sm:$0xff] }
 0x983   :  { %v5224_v58 = vpop.f32.mrf.mxu0  ;;  %v5256_v22 = vpop.f32.mrf.mxu1 }
 0x984   :  { %v5225_v38 = vadd.f32 %v5224_v58, %v10123_v35  ;;  %v9886_v10 = vadd.f32 %v5256_v22, %v10124_v24 }
 0x985   :  { %v5226_v29 = vpop.f32.mrf.mxu0  ;;  %v5258_v7 = vpop.f32.mrf.mxu1 }
 0x987   :  { %v5261_v12 = vpop.f32.mrf.mxu1  ;;  %v6421_v46 = vpop.f32.mrf.mxu0 }
 0x988   :  { %v9889_v6 = vadd.f32 %v5261_v12, %v10125_v49  ;;  %v5494_v16 = vadd.f32 %v6421_v46, %v5206_v13 }
 0x989   :  { %v5263_v42 = vpop.f32.mrf.mxu1  ;;  %v5485_v61 = vpop.f32.mrf.mxu0 }
 0x98a   :  { %v5486_v21 = vadd.f32 %v5485_v61, %v9850_v9  ;;  %v5741_v24 = vmax.f32 %v5494_v16, 0.0  ;;  %v10127_v42 = vld [vmem:[#allocation10_spill] sm:$0xff]  ;;  %v10128_v16 = vld [vmem:[#allocation11_spill] sm:$0xff] }
 0x98b   :  { %v5264_v31 = vpop.f32.mrf.mxu1  ;;  %v6422_v18 = vpop.f32.mrf.mxu0 }
 0x98c   :  { %v9893_v34 = vadd.f32 %v5264_v31, %v10126_v52  ;;  %v5497_v58 = vadd.f32 %v6422_v18, %v5209_v41  ;;  %v5739_v14 = vmax.f32 %v5486_v21, 0.0 }
 0x98d   :  { %v5266_v22 = vpop.f32.mrf.mxu1  ;;  %v5488_v35 = vpop.f32.mrf.mxu0 }
 0x98e   :  { %v5742_v29 = vmax.f32 %v5497_v58, 0.0  ;;  %v5489_v7 = vadd.f32 %v5488_v35, %v9859_v11 }
 0x98f   :  { %v5269_v12 = vpop.f32.mrf.mxu1  ;;  %v6425_v49 = vpop.f32.mrf.mxu0 }
 0x990   :  { %v9896_v13 = vpack.c.bf16 %v5742_v29, %v5741_v24  ;;  %v5740_v46 = vmax.f32 %v5489_v7, 0.0  ;;  %v5270_v9 = vadd.f32 %v5269_v12, %v10127_v42  ;;  %v5510_v61 = vadd.f32 %v6425_v49, %v5222_v1 }
 0x991   :  { %v5271_v54 = vpop.f32.mrf.mxu1  ;;  %v5501_v3 = vpop.f32.mrf.mxu0 }
 0x992   :  { %v9899_v31 = vpack.c.bf16 %v5740_v46, %v5739_v14  ;;  %v5502_v41 = vadd.f32 %v5501_v3, %v5214_v25  ;;  %v5745_v35 = vmax.f32 %v5510_v61, 0.0 }
 0x993   :  { %v5272_v18 = vpop.f32.mrf.mxu1  ;;  %v6426_v52 = vpop.f32.mrf.mxu0 }
 0x994   :  { %v5273_v58 = vadd.f32 %v5272_v18, %v10128_v16  ;;  %v5513_v22 = vadd.f32 %v6426_v52, %v5225_v38  ;;  %v5743_v2 = vmax.f32 %v5502_v41, 0.0 }
 0x995   :  { %v5274_v11 = vpop.f32.mrf.mxu1  ;;  %v5504_v21 = vpop.f32.mrf.mxu0 }
 0x996   :  { %v5746_v4 = vmax.f32 %v5513_v22, 0.0  ;;  %v5505_v24 = vadd.f32 %v5504_v21, %v5217_v23 }
 0x997   :  { %v5277_v29 = vpop.f32.mrf.mxu1  ;;  %v6429_v7 = vpop.f32.mrf.mxu0 }
 0x998   :  { %v9902_v12 = vpack.c.bf16 %v5746_v4, %v5745_v35  ;;  %v5744_v54 = vmax.f32 %v5505_v24, 0.0  ;;  %v5526_v3 = vadd.f32 %v6429_v7, %v9866_v27 }
 0x999   :  { %v5279_v1 = vpop.f32.mrf.mxu1  ;;  %v5517_v14 = vpop.f32.mrf.mxu0 }
 0x99a   :  { %v9904_v49 = vpack.c.bf16 %v5744_v54, %v5743_v2  ;;  %v5518_v38 = vadd.f32 %v5517_v14, %v9853_v33  ;;  %v5749_v18 = vmax.f32 %v5526_v3, 0.0 }
 0x99b   :  { %v5280_v25 = vpop.f32.mrf.mxu1  ;;  %v6430_v46 = vpop.f32.mrf.mxu0 }
 0x99c   :  { %v5529_v42 = vadd.f32 %v6430_v46, %v9870_v59  ;;  %v5747_v22 = vmax.f32 %v5518_v38, 0.0 }
 0x99d   :  { %v5282_v61 = vpop.f32.mrf.mxu1  ;;  %v5520_v23 = vpop.f32.mrf.mxu0 }
 0x99e   :  { %v5750_v52 = vmax.f32 %v5529_v42, 0.0  ;;  %v5521_v4 = vadd.f32 %v5520_v23, %v9862_v36 }
 0x99f   :  { %v5285_v41 = vpop.f32.mrf.mxu1  ;;  %v6433_v16 = vpop.f32.mrf.mxu0 }
 0x9a0   :  { %v9910_v11 = vpack.c.bf16 %v5750_v52, %v5749_v18  ;;  %v5748_v2 = vmax.f32 %v5521_v4, 0.0  ;;  %v5542_v33 = vadd.f32 %v6433_v16, %v9882_v32 }
 0x9a1   :  { %v5287_v21 = vpop.f32.mrf.mxu1  ;;  %v5533_v27 = vpop.f32.mrf.mxu0 }
 0x9a2   :  { %v9912_v35 = vpack.c.bf16 %v5748_v2, %v5747_v22  ;;  %v5534_v7 = vadd.f32 %v5533_v27, %v9874_v39  ;;  %v5753_v14 = vmax.f32 %v5542_v33, 0.0 }
 0x9a3   :  { %v5288_v24 = vpop.f32.mrf.mxu1  ;;  %v6434_v59 = vpop.f32.mrf.mxu0 }
 0x9a4   :  { %v5545_v54 = vadd.f32 %v6434_v59, %v9886_v10  ;;  %v5751_v61 = vmax.f32 %v5534_v7, 0.0 }
 0x9a5   :  { %v5290_v1 = vpop.f32.mrf.mxu1  ;;  %v5536_v36 = vpop.f32.mrf.mxu0 }
 0x9a6   :  { %v5754_v3 = vmax.f32 %v5545_v54, 0.0  ;;  %v5537_v46 = vadd.f32 %v5536_v36, %v9878_v43  ;;  %v10129_v1 = vld [vmem:[#allocation14_spill] sm:$0xff] }
 0x9a7   :  { %v5293_v38 = vpop.f32.mrf.mxu1  ;;  %v6437_v42 = vpop.f32.mrf.mxu0  ;;  %v5286_v36 = vadd.f32 %v5285_v41, %v10129_v1 }
 0x9a8   :  { %v9918_v23 = vpack.c.bf16 %v5754_v3, %v5753_v14  ;;  %v5752_v18 = vmax.f32 %v5537_v46, 0.0  ;;  %v5558_v16 = vadd.f32 %v6437_v42, %v5270_v9 }
 0x9a9   :  { %v5295_v52 = vpop.f32.mrf.mxu1  ;;  %v5549_v32 = vpop.f32.mrf.mxu0 }
 0x9aa   :  { %v9920_v4 = vpack.c.bf16 %v5752_v18, %v5751_v61  ;;  %v5550_v10 = vadd.f32 %v5549_v32, %v9889_v6  ;;  %v5757_v33 = vmax.f32 %v5558_v16, 0.0  ;;  %v10130_v61 = vld [vmem:[#allocation12_spill] sm:$0xff]  ;;  %v10131_v6 = vld [vmem:[#allocation15_spill] sm:$0xff] }
 0x9ab   :  { %v5296_v39 = vpop.f32.mrf.mxu1  ;;  %v6438_v22 = vpop.f32.mrf.mxu0  ;;  %v5278_v18 = vadd.f32 %v5277_v29, %v10130_v61 }
 0x9ac   :  { %v5561_v2 = vadd.f32 %v6438_v22, %v5273_v58  ;;  %v5755_v14 = vmax.f32 %v5550_v10, 0.0  ;;  %v5289_v58 = vadd.f32 %v5288_v24, %v10131_v6 }
 0x9ad   :  { %v5298_v21 = vpop.f32.mrf.mxu1  ;;  %v5552_v27 = vpop.f32.mrf.mxu0 }
 0x9ae   :  { %v5758_v43 = vmax.f32 %v5561_v2, 0.0  ;;  %v5553_v59 = vadd.f32 %v5552_v27, %v9893_v34  ;;  %v10132_v34 = vld [vmem:[#allocation13_spill] sm:$0xff] }
 0x9af   :  { %v5301_v7 = vpop.f32.mrf.mxu1  ;;  %v6441_v54 = vpop.f32.mrf.mxu0  ;;  %v5281_v2 = vadd.f32 %v5280_v25, %v10132_v34  ;;  %v10135_v25 = vld [vmem:[#allocation19_spill] sm:$0xff]  ;;  %v10136_v34 = vld [vmem:[#allocation17_spill] sm:$0xff] }
 0x9b0   :  { %v9925_v3 = vpack.c.bf16 %v5758_v43, %v5757_v33  ;;  %v5756_v46 = vmax.f32 %v5553_v59, 0.0  ;;  %v5574_v32 = vadd.f32 %v6441_v54, %v5286_v36  ;;  %v5302_v29 = vadd.f32 %v5301_v7, %v10133_v30 }
 0x9b1   :  { %v5303_v9 = vpop.f32.mrf.mxu1  ;;  %v5565_v42 = vpop.f32.mrf.mxu0 }
 0x9b2   :  { %v9929_v52 = vpack.c.bf16 %v5756_v46, %v5755_v14  ;;  %v5566_v21 = vadd.f32 %v5565_v42, %v5278_v18  ;;  %v5761_v33 = vmax.f32 %v5574_v32, 0.0  ;;  %v10134_v46 = vld [vmem:[#allocation16_spill] sm:$0xff] }
 0x9b3   :  { %v5304_v16 = vpop.f32.mrf.mxu1  ;;  %v6442_v22 = vpop.f32.mrf.mxu0  ;;  %v5294_v6 = vadd.f32 %v5293_v38, %v10134_v46 }
 0x9b4   :  { %v5577_v27 = vadd.f32 %v6442_v22, %v5289_v58  ;;  %v5759_v61 = vmax.f32 %v5566_v21, 0.0  ;;  %v5305_v42 = vadd.f32 %v5304_v16, %v10135_v25  ;;  %v10137_v16 = vld [vmem:[#allocation22_spill] sm:$0xff] }
 0x9b5   :  { %v5306_v41 = vpop.f32.mrf.mxu1  ;;  %v5568_v10 = vpop.f32.mrf.mxu0 }
 0x9b6   :  { %v5762_v43 = vmax.f32 %v5577_v27, 0.0  ;;  %v5569_v59 = vadd.f32 %v5568_v10, %v5281_v2  ;;  %v5297_v2 = vadd.f32 %v5296_v39, %v10136_v34  ;;  %v10140_v34 = vld [vmem:[#allocation23_spill] sm:$0xff] }
 0x9b7   :  { %v5309_v1 = vpop.f32.mrf.mxu1  ;;  %v6445_v9 = vpop.f32.mrf.mxu0 }
 0x9b8   :  { %v9933_v24 = vpack.c.bf16 %v5762_v43, %v5761_v33  ;;  %v5760_v14 = vmax.f32 %v5569_v59, 0.0  ;;  %v5590_v58 = vadd.f32 %v6445_v9, %v5302_v29  ;;  %v10138_v29 = vld [vmem:[#allocation20_spill] sm:$0xff] }
 0x9b9   :  { %v5311_v54 = vpop.f32.mrf.mxu1  ;;  %v5581_v36 = vpop.f32.mrf.mxu0  ;;  %v5310_v25 = vadd.f32 %v5309_v1, %v10138_v29 }
 0x9ba   :  { %v9937_v18 = vpack.c.bf16 %v5760_v14, %v5759_v61  ;;  %v5582_v27 = vadd.f32 %v5581_v36, %v5294_v6  ;;  %v5765_v21 = vmax.f32 %v5590_v58, 0.0 }
 0x9bb   :  { %v5312_v32 = vpop.f32.mrf.mxu1  ;;  %v6446_v22 = vpop.f32.mrf.mxu0 }
 0x9bc   :  { %v5593_v41 = vadd.f32 %v6446_v22, %v5305_v42  ;;  %v5763_v54 = vmax.f32 %v5582_v27, 0.0  ;;  %v10139_v42 = vld [vmem:[#allocation21_spill] sm:$0xff] }
 0x9bd   :  { %v5314_v30 = vpop.f32.mrf.mxu1  ;;  %v5584_v7 = vpop.f32.mrf.mxu0  ;;  %v5313_v22 = vadd.f32 %v5312_v32, %v10139_v42 }
 0x9be   :  { %v5766_v10 = vmax.f32 %v5593_v41, 0.0  ;;  %v5585_v33 = vadd.f32 %v5584_v7, %v5297_v2 }
 0x9bf   :  { %v5317_v43 = vpop.f32.mrf.mxu1  ;;  %v6449_v59 = vpop.f32.mrf.mxu0 }
 0x9c0   :  { %v5815_v38 = vpack.c.bf16 %v5766_v10, %v5765_v21  ;;  %v5764_v46 = vmax.f32 %v5585_v33, 0.0  ;;  %v5318_v61 = vadd.f32 %v5317_v43, %v10137_v16 }
 0x9c1   :  { %v5319_v14 = vpop.f32.mrf.mxu1  ;;  %v5597_v9 = vpop.f32.mrf.mxu0 }
 0x9c2   :  { %v5814_v17 = vpack.c.bf16 %v5764_v46, %v5763_v54  ;;  %v5606_v39 = vadd.f32 %v6449_v59, %v5318_v61  ;;  %v5598_v58 = vadd.f32 %v5597_v9, %v5310_v25 }
 0x9c3   :  { %v5320_v36 = vpop.f32.mrf.mxu1  ;;  %v6450_v6 = vpop.f32.mrf.mxu0 }
 0x9c4   :  { %v5321_v2 = vadd.f32 %v5320_v36, %v10140_v34  ;;  %v5769_v21 = vmax.f32 %v5606_v39, 0.0  ;;  %v5767_v43 = vmax.f32 %v5598_v58, 0.0 }
 0x9c5   :  { %v5322_v41 = vpop.f32.mrf.mxu1  ;;  %v5600_v30 = vpop.f32.mrf.mxu0 }
 0x9c6   :  { %v5609_v27 = vadd.f32 %v6450_v6, %v5321_v2  ;;  %v5601_v7 = vadd.f32 %v5600_v30, %v5313_v22 }
 0x9c7   :  { %v5325_v10 = vpop.f32.mrf.mxu1  ;;  %v6453_v33 = vpop.f32.mrf.mxu0 }
 0x9c8   :  { %v5770_v16 = vmax.f32 %v5609_v27, 0.0  ;;  %v5768_v14 = vmax.f32 %v5601_v7, 0.0  ;;  %v5326_v1 = vadd.f32 %v5325_v10, %v9737_v47 }
 0x9c9   :  { %v5327_v59 = vpop.f32.mrf.mxu1  ;;  %v5613_v54 = vpop.f32.mrf.mxu0 }
 0x9ca   :  { %v5817_v46 = vpack.c.bf16 %v5770_v16, %v5769_v21  ;;  %v5816_v61 = vpack.c.bf16 %v5768_v14, %v5767_v43  ;;  %v5614_v32 = vadd.f32 %v5613_v54, %v5326_v1 }
 0x9cb   :  { %v5328_v9 = vpop.f32.mrf.mxu1  ;;  %v6454_v29 = vpop.f32.mrf.mxu0 }
 0x9cc   :  { %v5329_v25 = vadd.f32 %v5328_v9, %v9739_v40  ;;  %6363 = vmatprep.subr.bf16.mxu0 %v5817_v46  ;;  %v5771_v58 = vmax.f32 %v5614_v32, 0.0 }
 0x9cd   :  { %v5330_v36 = vpop.f32.mrf.mxu1  ;;  %v5616_v6 = vpop.f32.mrf.mxu0  ;;  %6364 = vmatpush3.bf16.msra.mxu0 %v9918_v23 }
 0x9ce   :  { %v5617_v39 = vadd.f32 %v5616_v6, %v5329_v25  ;;  %6365 = vmatprep.subr.bf16.mxu0 %v5816_v61 }
 0x9cf   :  { %v5333_v42 = vpop.f32.mrf.mxu1  ;;  %v6457_v22 = vpop.f32.mrf.mxu0 }
 0x9d0   :  { %v5772_v47 = vmax.f32 %v5617_v39, 0.0  ;;  %v5334_v34 = vadd.f32 %v5333_v42, %v9744_v5 }
 0x9d1   :  { %v5335_v2 = vpop.f32.mrf.mxu1  ;;  %6366 = vmatpush3.bf16.msra.mxu0 %v9920_v4  ;;  %v5629_v41 = vpop.f32.mrf.mxu0 }
 0x9d2   :  { %v9949_v30 = vpack.c.bf16 %v5772_v47, %v5771_v58  ;;  %v5622_v40 = vadd.f32 %v6453_v33, %v5334_v34  ;;  %6367 = vmatprep.subr.bf16.mxu0 %v5815_v38 }
 0x9d3   :  { %v5336_v27 = vpop.f32.mrf.mxu1  ;;  %v6458_v7 = vpop.f32.mrf.mxu0 }
 0x9d4   :  { %v5337_v23 = vadd.f32 %v5336_v27, %v9747_v0  ;;  %v5773_v14 = vmax.f32 %v5622_v40, 0.0 }
 0x9d5   :  { %v5338_v21 = vpop.f32.mrf.mxu1  ;;  %6368 = vmatpush3.bf16.msra.mxu0 %v9910_v11  ;;  %v5632_v10 = vpop.f32.mrf.mxu0 }
 0x9d6   :  { %v5625_v43 = vadd.f32 %v6454_v29, %v5337_v23  ;;  %6369 = vmatprep.subr.bf16.mxu0 %v5814_v17 }
 0x9d7   :  { %v5341_v16 = vpop.f32.mrf.mxu1  ;;  %v9953_v5 = vpop.f32.mrf.mxu0 }
 0x9d8   :  { %v5774_v4 = vmax.f32 %v5625_v43, 0.0  ;;  %v5342_v1 = vadd.f32 %v5341_v16, %v9752_v50 }
 0x9d9   :  { %v5343_v59 = vpop.f32.mrf.mxu1  ;;  %6370 = vmatpush3.bf16.msra.mxu0 %v9912_v35  ;;  %v5645_v38 = vpop.f32.mrf.mxu0 }
 0x9da   :  { %v9957_v33 = vpack.c.bf16 %v5774_v4, %v5773_v14  ;;  %v5630_v0 = vadd.f32 %v5629_v41, %v5342_v1  ;;  %6371 = vmatprep.subr.bf16.mxu0 %v9933_v24 }
 0x9db   :  { %v5344_v11 = vpop.f32.mrf.mxu1  ;;  %v6462_v54 = vpop.f32.mrf.mxu0 }
 0x9dc   :  { %v5345_v17 = vadd.f32 %v5344_v11, %v9755_v20  ;;  %v5775_v35 = vmax.f32 %v5630_v0, 0.0 }
 0x9dd   :  { %v5346_v46 = vpop.f32.mrf.mxu1  ;;  %6372 = vmatpush3.bf16.msra.mxu0 %v9902_v12  ;;  %v5648_v61 = vpop.f32.mrf.mxu0 }
 0x9de   :  { %v5633_v32 = vadd.f32 %v5632_v10, %v5345_v17  ;;  %6373 = vmatprep.subr.bf16.mxu0 %v9937_v18 }
 0x9df   :  { %v5349_v50 = vpop.f32.mrf.mxu1  ;;  %v9963_v9 = vpop.f32.mrf.mxu0 }
 0x9e0   :  { %v5776_v29 = vmax.f32 %v5633_v32, 0.0  ;;  %v5350_v25 = vadd.f32 %v5349_v50, %v9760_v57 }
 0x9e1   :  { %v5351_v36 = vpop.f32.mrf.mxu1  ;;  %6374 = vmatpush3.bf16.msra.mxu0 %v9904_v49  ;;  %v5661_v24 = vpop.f32.mrf.mxu0 }
 0x9e2   :  { %v9967_v6 = vpack.c.bf16 %v5776_v29, %v5775_v35  ;;  %v5638_v20 = vadd.f32 %v6457_v22, %v5350_v25  ;;  %6375 = vmatprep.subr.bf16.mxu0 %v9925_v3  ;;  %v7098_v3 = vld [vmem:[%s10089_s8] ss:$16 sps:$4 sm:$0x1f]  }
 0x9e3   :  { %v5352_v12 = vpop.f32.mrf.mxu1  ;;  %v9970_v39 = vpop.f32.mrf.mxu0 }
 0x9e4   :  { %v5353_v18 = vadd.f32 %v5352_v12, %v9763_v44  ;;  %v5777_v34 = vmax.f32 %v5638_v20, 0.0 }
 0x9e5   :  { %v5354_v42 = vpop.f32.mrf.mxu1  ;;  %6376 = vmatpush3.bf16.msra.mxu0 %v9896_v13  ;;  %v5664_v58 = vpop.f32.mrf.mxu0  ;;  %v7103_v13 = vld [vmem:[%s10089_s8 + $0xc] ss:$16 sps:$4 sm:$0x1f]  }
 0x9e6   :  { %v5641_v47 = vadd.f32 %v6458_v7, %v5353_v18  ;;  %6377 = vmatprep.subr.bf16.mxu0 %v9929_v52 }
 0x9e7   :  { %v5357_v57 = vpop.f32.mrf.mxu1  ;;  %v9975_v49 = vpop.f32.mrf.mxu0 }
 0x9e8   :  { %v5778_v2 = vmax.f32 %v5641_v47, 0.0  ;;  %v5358_v22 = vadd.f32 %v5357_v57, %v9768_v56 }
 0x9e9   :  { %v5359_v41 = vpop.f32.mrf.mxu1  ;;  %6378 = vmatpush3.bf16.msra.mxu0 %v9899_v31  ;;  %v9982_v44 = vpop.f32.mrf.mxu0 }
 0x9ea   :  { %v9987_v52 = vpack.c.bf16 %v5778_v2, %v5777_v34  ;;  %v5646_v40 = vadd.f32 %v5645_v38, %v5358_v22 }
 0x9eb   :  { %v5360_v27 = vpop.f32.mrf.mxu1  ;;  %v9989_v7 = vpop.f32.mrf.mxu0 }
 0x9ec   :  { %v5361_v56 = vadd.f32 %v5360_v27, %v9771_v19  ;;  %5909 = vmatmul.mubr.bf16.vlgmr.msra.gmra.mxu0 %v7098_v3  ;;  %v5779_v16 = vmax.f32 %v5646_v40, 0.0 }
 0x9ed   :  { %v5362_v23 = vpop.f32.mrf.mxu1  ;;  %v5680_v21 = vpop.f32.mrf.mxu0  ;;  %6323 = vmatprep.mubr.msk.bf16.mxu0 %vm5869_vm0, %v7103_v13 }
 0x9ee   :  { %v5649_v31 = vadd.f32 %v5648_v61, %v5361_v56 }
 0x9ef   :  { %v5365_v10 = vpop.f32.mrf.mxu1  ;;  %v9992_v43 = vpop.f32.mrf.mxu0 }
 0x9f0   :  { %v5780_v14 = vmax.f32 %v5649_v31, 0.0  ;;  %v5366_v4 = vadd.f32 %v5365_v10, %v9776_v37 }
 0x9f1   :  { %v5367_v1 = vpop.f32.mrf.mxu1  ;;  %v9995_v59 = vpop.f32.mrf.mxu0 }
 0x9f2   :  { %v9997_v38 = vpack.c.bf16 %v5780_v14, %v5779_v16  ;;  %v5654_v0 = vadd.f32 %v9953_v5, %v5366_v4 }
 0x9f3   :  { %v5368_v19 = vpop.f32.mrf.mxu1  ;;  %v10000_v11 = vpop.f32.mrf.mxu0 }
 0x9f4   :  { %v5369_v17 = vadd.f32 %v5368_v19, %v9779_v26  ;;  %v5781_v37 = vmax.f32 %v5654_v0, 0.0 }
 0x9f5   :  { %v5370_v46 = vpop.f32.mrf.mxu1  ;;  %v10003_v61 = vpop.f32.mrf.mxu0 }
 0x9f6   :  { %v5657_v32 = vadd.f32 %v6462_v54, %v5369_v17 }
 0x9f7   :  { %v5373_v50 = vpop.f32.mrf.mxu1  ;;  %v10005_v35 = vpop.f32.mrf.mxu0 }
 0x9f8   :  { %v5782_v29 = vmax.f32 %v5657_v32, 0.0  ;;  %v5374_v25 = vadd.f32 %v5373_v50, %v9784_v55 }
 0x9f9   :  { %v5375_v36 = vpop.f32.mrf.mxu1  ;;  %v10008_v20 = vpop.f32.mrf.mxu0 }
 0x9fa   :  { %v10010_v5 = vpack.c.bf16 %v5782_v29, %v5781_v37  ;;  %v5662_v12 = vadd.f32 %v5661_v24, %v5374_v25 }
 0x9fb   :  { %v5376_v18 = vpop.f32.mrf.mxu1  ;;  %v10012_v42 = vpop.f32.mrf.mxu0 }
 0x9fc   :  { %v5377_v26 = vadd.f32 %v5376_v18, %v9787_v45  ;;  %v5783_v22 = vmax.f32 %v5662_v12, 0.0 }
 0x9fd   :  { %v5378_v47 = vpop.f32.mrf.mxu1  ;;  %v10015_v54 = vpop.f32.mrf.mxu0 }
 0x9fe   :  { %v5665_v57 = vadd.f32 %v5664_v58, %v5377_v26 }
 0x9ff   :  { %v5381_v34 = vpop.f32.mrf.mxu1  ;;  %v10017_v2 = vpop.f32.mrf.mxu0 }
 0xa00   :  { %v5784_v55 = vmax.f32 %v5665_v57, 0.0  ;;  %v5382_v3 = vadd.f32 %v5381_v34, %v9792_v48 }
 0xa01   :  { %v5383_v41 = vpop.f32.mrf.mxu1  ;;  %v10020_v13 = vpop.f32.mrf.mxu0 }
 0xa02   :  { %v10022_v24 = vpack.c.bf16 %v5784_v55, %v5783_v22  ;;  %v5670_v40 = vadd.f32 %v9963_v9, %v5382_v3 }
 0xa03   :  { %v5384_v27 = vpop.f32.mrf.mxu1  ;;  %v6482_v45 = vpop.f32.mrf.mxu0 }
 0xa04   :  { %v5385_v56 = vadd.f32 %v5384_v27, %v9795_v51  ;;  %v5785_v10 = vmax.f32 %v5670_v40, 0.0  ;;  %v10141_v45 = vld [vmem:[#allocation24_spill] sm:$0xff] }
 0xa05   :  { %v5386_v23 = vpop.f32.mrf.mxu1 }
 0xa06   :  { %v5673_v58 = vadd.f32 %v9970_v39, %v5385_v56 }
 0xa07   :  { %v5389_v31 = vpop.f32.mrf.mxu1 }
 0xa08   :  { %v5786_v16 = vmax.f32 %v5673_v58, 0.0  ;;  %v5390_v14 = vadd.f32 %v5389_v31, %v9800_v62 }
 0xa09   :  { %v5391_v48 = vpop.f32.mrf.mxu1 }
 0xa0a   :  { %v10028_v4 = vpack.c.bf16 %v5786_v16, %v5785_v10  ;;  %v5678_v1 = vadd.f32 %v9982_v44, %v5390_v14  ;;  %v10142_v10 = vld [vmem:[#allocation25_spill] sm:$0xff] }
 0xa0b   :  { %v5392_v0 = vpop.f32.mrf.mxu1 }
 0xa0c   :  { %v5393_v9 = vadd.f32 %v5392_v0, %v9803_v8  ;;  %v5787_v51 = vmax.f32 %v5678_v1, 0.0  ;;  %v10143_v1 = vld [vmem:[#allocation26_spill] sm:$0xff] }
 0xa0d   :  { %v5394_v19 = vpop.f32.mrf.mxu1 }
 0xa0e   :  { %v5681_v17 = vadd.f32 %v5680_v21, %v5393_v9 }
 0xa0f   :  { %v5397_v46 = vpop.f32.mrf.mxu1 }
 0xa10   :  { %v5788_v32 = vmax.f32 %v5681_v17, 0.0  ;;  %v5398_v39 = vadd.f32 %v5397_v46, %v9808_v60 }
 0xa11   :  { %v5399_v50 = vpop.f32.mrf.mxu1 }
 0xa12   :  { %v10033_v37 = vpack.c.bf16 %v5788_v32, %v5787_v51  ;;  %v5686_v62 = vadd.f32 %v9975_v49, %v5398_v39  ;;  %v10144_v51 = vld [vmem:[#allocation27_spill] sm:$0xff] }
 0xa13   :  { %v5400_v29 = vpop.f32.mrf.mxu1 }
 0xa14   :  { %v5401_v25 = vadd.f32 %v5400_v29, %v9811_v53  ;;  %v5789_v8 = vmax.f32 %v5686_v62, 0.0  ;;  %v10145_v29 = vld [vmem:[#allocation28_spill] sm:$0xff] }
 0xa15   :  { %v5402_v36 = vpop.f32.mrf.mxu1 }
 0xa16   :  { %v5689_v44 = vadd.f32 %v9989_v7, %v5401_v25 }
 0xa17   :  { %v5405_v12 = vpop.f32.mrf.mxu1 }
 0xa18   :  { %v5790_v18 = vmax.f32 %v5689_v44, 0.0  ;;  %v5406_v21 = vadd.f32 %v5405_v12, %v9816_v63 }
 0xa19   :  { %v5407_v26 = vpop.f32.mrf.mxu1 }
 0xa1a   :  { %v5694_v47 = vadd.f32 %v9995_v59, %v5406_v21  ;;  %v10040_v60 = vpack.c.bf16 %v5790_v18, %v5789_v8  ;;  %v10146_v18 = vld [vmem:[#allocation29_spill] sm:$0xff] }
 0xa1b   :  { %v5408_v57 = vpop.f32.mrf.mxu1 }
 0xa1c   :  { %v5409_v34 = vadd.f32 %v5408_v57, %v9819_v28  ;;  %v5791_v55 = vmax.f32 %v5694_v47, 0.0 }
 0xa1d   :  { %v5410_v49 = vpop.f32.mrf.mxu1 }
 0xa1e   :  { %v5697_v22 = vadd.f32 %v10003_v61, %v5409_v34  ;;  %v5728_v34 = vpop.f32.mrf.mxu0  ;;  %v10147_v49 = vld [vmem:[#allocation30_spill] sm:$0xff] }
 0xa1f   :  { %v5413_v53 = vpop.f32.mrf.mxu1 }
 0xa20   :  { %v5792_v3 = vmax.f32 %v5697_v22, 0.0  ;;  %v5414_v7 = vadd.f32 %v5413_v53, %v9823_v15 }
 0xa21   :  { %v5415_v41 = vpop.f32.mrf.mxu1 }
 0xa22   :  { %v5828_v40 = vpack.c.bf16 %v5792_v3, %v5791_v55  ;;  %v5702_v63 = vadd.f32 %v9992_v43, %v5414_v7  ;;  %v10148_v41 = vld [vmem:[#allocation31_spill] sm:$0xff] }
 0xa23   :  { %v5416_v27 = vpop.f32.mrf.mxu1 }
 0xa24   :  { %v5417_v59 = vadd.f32 %v5416_v27, %v10141_v45  ;;  %v5793_v28 = vmax.f32 %v5702_v63, 0.0 }
 0xa25   :  { %v5418_v56 = vpop.f32.mrf.mxu1 }
 0xa26   :  { %v5705_v23 = vadd.f32 %v10000_v11, %v5417_v59 }
 0xa27   :  { %v5421_v58 = vpop.f32.mrf.mxu1 }
 0xa28   :  { %v5794_v31 = vmax.f32 %v5705_v23, 0.0  ;;  %v5422_v61 = vadd.f32 %v5421_v58, %v10142_v10  ;;  %v5848_v10 = vpop.permute.xlu0 %5847 }
 0xa29   :  { %v5423_v16 = vpop.f32.mrf.mxu1 }
 0xa2a   :  { %v5710_v14 = vadd.f32 %v10008_v20, %v5422_v61  ;;  %v5829_v48 = vpack.c.bf16 %v5794_v31, %v5793_v28 }
 0xa2b   :  { %v5424_v15 = vpop.f32.mrf.mxu1 }
 0xa2c   :  { %v5425_v0 = vadd.f32 %v5424_v15, %v10143_v1  ;;  %v5795_v17 = vmax.f32 %v5710_v14, 0.0 }
 0xa2d   :  { %v5426_v9 = vpop.f32.mrf.mxu1 }
 0xa2e   :  { %v5713_v43 = vadd.f32 %v10015_v54, %v5425_v0 }
 0xa2f   :  { %v5429_v19 = vpop.f32.mrf.mxu1 }
 0xa30   :  { %v5796_v46 = vmax.f32 %v5713_v43, 0.0  ;;  %v5430_v11 = vadd.f32 %v5429_v19, %v10144_v51 }
 0xa31   :  { %v5431_v32 = vpop.f32.mrf.mxu1 }
 0xa32   :  { %v5830_v39 = vpack.c.bf16 %v5796_v46, %v5795_v17  ;;  %v5718_v50 = vadd.f32 %v10005_v35, %v5430_v11 }
 0xa33   :  { %v5432_v62 = vpop.f32.mrf.mxu1 }
 0xa34   :  { %v5433_v25 = vadd.f32 %v5432_v62, %v10145_v29  ;;  %v5797_v12 = vmax.f32 %v5718_v50, 0.0 }
 0xa35   :  { %v5434_v20 = vpop.f32.mrf.mxu1 }
 0xa36   :  { %v5721_v36 = vadd.f32 %v10012_v42, %v5433_v25 }
 0xa37   :  { %v5437_v44 = vpop.f32.mrf.mxu1 }
 0xa38   :  { %v5798_v8 = vmax.f32 %v5721_v36, 0.0  ;;  %v5438_v54 = vadd.f32 %v5437_v44, %v10146_v18 }
 0xa39   :  { %v5439_v21 = vpop.f32.mrf.mxu1 }
 0xa3a   :  { %v5726_v26 = vadd.f32 %v10020_v13, %v5438_v54  ;;  %v5831_v47 = vpack.c.bf16 %v5798_v8, %v5797_v12 }
 0xa3b   :  { %v5440_v57 = vpop.f32.mrf.mxu1 }
 0xa3c   :  { %v5441_v22 = vadd.f32 %v5440_v57, %v10147_v49  ;;  %v5799_v3 = vmax.f32 %v5726_v26, 0.0 }
 0xa3d   :  { %v5442_v35 = vpop.f32.mrf.mxu1 }
 0xa3e   :  { %v5729_v53 = vadd.f32 %v5728_v34, %v5441_v22 }
 0xa3f   :  { %v5445_v55 = vpop.f32.mrf.mxu1 }
 0xa40   :  { %v5800_v7 = vmax.f32 %v5729_v53, 0.0  ;;  %v5446_v42 = vadd.f32 %v5445_v55, %v10148_v41 }
 0xa41   :  { %v5447_v63 = vpop.f32.mrf.mxu1 }
 0xa42   :  { %v5832_v27 = vpack.c.bf16 %v5800_v7, %v5799_v3  ;;  %v5734_v45 = vadd.f32 %v10017_v2, %v5446_v42  ;;  %v7101_v2 = vld [vmem:[%s10089_s8 + $0x8] ss:$16 sps:$4 sm:$0x1f]  }
 0xa43   :  { %v5448_v59 = vpop.f32.mrf.mxu1 }
 0xa44   :  { %v5801_v56 = vmax.f32 %v5734_v45, 0.0 }
 0xa45   :  { %v5449_v23 = vpop.f32.mrf.mxu1 }
 0xa46   :  { %v5833_v13 = vpack.c.bf16 %v5801_v56, %v5801_v56 }
 0xa48   :  { %6515 = vmatprep.subr.msk.bf16.mxu0 %vm2497_vm11, %v5833_v13 }
 0xa49   :  { %6386 = vmatpush3.bf16.msra.mxu0 %v10028_v4 }
 0xa4a   :  { %6387 = vmatprep.subr.bf16.mxu0 %v5832_v27 }
 0xa4d   :  { %6388 = vmatpush3.bf16.msra.mxu0 %v10022_v24 }
 0xa4e   :  { %6389 = vmatprep.subr.bf16.mxu0 %v5831_v47 }
 0xa51   :  { %6390 = vmatpush3.bf16.msra.mxu0 %v10010_v5 }
 0xa52   :  { %6391 = vmatprep.subr.bf16.mxu0 %v5830_v39 }
 0xa55   :  { %6392 = vmatpush3.bf16.msra.mxu0 %v9997_v38 }
 0xa56   :  { %6393 = vmatprep.subr.bf16.mxu0 %v5829_v48 }
 0xa59   :  { %6394 = vmatpush3.bf16.msra.mxu0 %v9987_v52 }
 0xa5a   :  { %6395 = vmatprep.subr.bf16.mxu0 %v5828_v40 }
 0xa5d   :  { %6396 = vmatpush3.bf16.msra.mxu0 %v9967_v6  ;;  %v5843_v6 = vpop.permute.xlu1 %5842 }
 0xa5e   :  { %6397 = vmatprep.subr.bf16.mxu0 %v10040_v60 }
 0xa61   :  { %6398 = vmatpush3.bf16.msra.mxu0 %v9957_v33 }
 0xa62   :  { %6399 = vmatprep.subr.bf16.mxu0 %v10033_v37 }
 0xa65   :  { %6400 = vmatpush3.bf16.msra.mxu0 %v9949_v30 }
 0xa68   :  { %5950 = vmatmul.mubr.bf16.vlgmr.msra.gmra.mxu0 %v7101_v2 }
 0xaac   :  { %v6379_v38 = vpop.f32.mrf.mxu0 }
 0xaae   :  { %v6380_v5 = vpop.f32.mrf.mxu0 }
 0xaaf   :  { %v6381_v4 = vadd.f32 %v6380_v5, %v6379_v38 }
 0xab0   :  { %v6382_v24 = vpop.f32.mrf.mxu0 }
 0xab1   :  { %v5911_v60 = vadd.f32 %v6381_v4, %v5843_v6 }
 0xab2   :  { %v6383_v52 = vpop.f32.mrf.mxu0 }
 0xab3   :  { %v6384_v28 = vadd.f32 %v6383_v52, %v6382_v24 }
 0xab5   :  { %v5914_v16 = vadd.f32 %v6384_v28, %v5848_v10 }
 0xb28   :  { %v6401_v40 = vpop.f32.mrf.mxu0 }
 0xb2a   :  { %v6402_v58 = vpop.f32.mrf.mxu0 }
 0xb2b   :  { %v6403_v33 = vadd.f32 %v6402_v58, %v6401_v40 }
 0xb2c   :  { %v6404_v37 = vpop.f32.mrf.mxu0 }
 0xb2d   :  { %v5952_v31 = vadd.f32 %v6403_v33, %v5911_v60 }
 0xb2e   :  { %v6405_v61 = vpop.f32.mrf.mxu0 }
 0xb2f   :  { %5959 = vst.msk [vmem:[%s10091_s10] sm:$0xff] %vm5958_vm1, %v5952_v31  ;;  %v6406_v30 = vadd.f32 %v6405_v61, %v6404_v37 }
 0xb31   :  { %v5955_v14 = vadd.f32 %v6406_v30, %v5914_v16 }
 0xb33   :  { %5961 = vst.msk [vmem:[%s10091_s10 + $0x8] sm:$0x3] %vm5960_vm14, %v5955_v14 }
 0xb34   :  { %5966 = vsyncmov [#allocation3] }
 0xb37   :  { %s5967_s24 = vpop.sfrf %5966 }
 0xb38   :  { %p6324_p0 = scmp.ne.s32.totalorder %s5967_s24, 0 }
 0xb3a   :  { %5971 = shalt.err (%p6324_p0)  }

</bundles_post_ra>
